<compile_context>
chip_gen: v5e
topology: v5e:2x2
jax: 0.10.0
libtpu: 0.0.40
codegen_flags: <defaults>
</compile_context>

<pallas_src>
import functools

import jax
import jax.numpy as jnp
from jax import lax
from jax.experimental import pallas as pl
from jax.experimental.pallas import tpu as pltpu


# --------------------------------------------------------------------------- fused kernel

def _client_head_kernel(xph_ref, w1_ref, b1_ref, wb_ref, bb_ref, mask_ref,
                        out_ref,
                        mp_ref, row_ref, act_ref, pad_ref,
                        *, cin, ho_out, wo_out, h2, w2):
    """Whole ResNet18 client head for ONE image (grid axis = batch).

    conv1(7x7,s2,p3)+BN+ReLU -> maxpool(3x3,s2,p1) -> 2x BasicBlock(64->64),
    with every intermediate activation resident in VMEM.
    """
    s2 = h2 * w2
    padr = w2 + 1  # zero rows on each side of the flattened layer1 activation

    # Zero-bordered scratches.  Re-zeroed every grid step (scratch persists across
    # steps and may live on either TensorCore under megacore sharding).
    mp_ref[...] = jnp.zeros_like(mp_ref)
    pad_ref[pl.ds(0, padr), :] = jnp.zeros((padr, 64), jnp.float32)
    pad_ref[pl.ds(padr + s2, padr), :] = jnp.zeros((padr, 64), jnp.float32)

    bias1 = b1_ref[...]          # (1, 64) f32  (BN bias; BN scale folded into weights)
    m_left = mask_ref[0]         # (s2, 1) f32: 0 where output column x == 0
    m_right = mask_ref[1]        # (s2, 1) f32: 0 where output column x == w2 - 1

    # ---- conv1: 7x7 stride-2 pad-3 + folded BN + ReLU ------------------------------
    # Input arrives phase-split (even/odd rows x even/odd cols of the padded image) and
    # already in bf16, so every tap is a unit-stride 2-D slice fed straight to the MXU.
    # One output row per loop step; the 49 taps accumulate into an f32 accumulator.
    @pl.loop(0, ho_out)
    def _(ho):
        acc = jnp.zeros((wo_out, 64), jnp.float32)
        for di in range(7):
            a = di // 2
            for dj in range(7):
                p = (di % 2) * 2 + (dj % 2)
                b = dj // 2
                tap = xph_ref[p, ho + a, pl.ds(b, wo_out), :]          # (wo_out, cin) bf16
                acc = acc + jnp.dot(tap, w1_ref[di * 7 + dj],
                                    preferred_element_type=jnp.float32)
        row = jnp.maximum(acc + bias1, 0.0)
        # Write into the zero-padded pool buffer.  Border stays 0; post-ReLU values
        # are >= 0, so 0-padding is equivalent to -inf padding for the maxpool.
        mp_ref[ho + 1, pl.ds(1, wo_out), :] = row

    # ---- maxpool 3x3 stride-2 pad-1 --------------------------------------------------
    for yo in range(h2):
        r = jnp.maximum(jnp.maximum(mp_ref[2 * yo], mp_ref[2 * yo + 1]),
                        mp_ref[2 * yo + 2])                            # (wo_out+2, 64)
        row_ref[...] = r
        c = jnp.maximum(
            jnp.maximum(row_ref[pl.ds(0, w2, 2), :],
                        row_ref[pl.ds(1, w2, 2), :]),
            row_ref[pl.ds(2, w2, 2), :])                               # (w2, 64)
        act_ref[pl.ds(yo * w2, w2), :] = c

    # ---- layer1: two BasicBlocks (3x3 convs, folded BN, residual, ReLU) --------------
    def conv3x3(x_val, idx):
        # x_val: (s2, 64) flattened NHWC activation.  Each tap is a row-shifted slice
        # of a zero-padded copy; left/right column wrap-around is masked out.
        pad_ref[pl.ds(padr, s2), :] = x_val
        acc = None
        for di in range(3):
            for dj in range(3):
                off = padr + (di - 1) * w2 + (dj - 1)
                t = pad_ref[pl.ds(off, s2), :]
                if dj == 0:
                    t = t * m_left
                elif dj == 2:
                    t = t * m_right
                d = jnp.dot(t.astype(jnp.bfloat16), wb_ref[idx, di * 3 + dj],
                            preferred_element_type=jnp.float32)
                acc = d if acc is None else acc + d
        return acc

    x0 = act_ref[...]                                                  # (s2, 64)
    h = jnp.maximum(conv3x3(x0, 0) + bb_ref[0], 0.0)
    y = jnp.maximum(conv3x3(h, 1) + bb_ref[1] + x0, 0.0)
    h = jnp.maximum(conv3x3(y, 2) + bb_ref[2], 0.0)
    z = jnp.maximum(conv3x3(h, 3) + bb_ref[3] + y, 0.0)
    out_ref[0] = z


# --------------------------------------------------------------------------- wrapper glue

def _fold_bn(w, g, b, m, v, eps=1e-5):
    """Fold eval-mode BN into the conv: returns (kh*kw, Cin, Cout) bf16 weights + f32 bias."""
    scale = g / jnp.sqrt(v + eps)                     # (Cout,)
    wf = w * scale[:, None, None, None]               # OIHW, scale over O
    bias = (b - m * scale).reshape(1, -1).astype(jnp.float32)
    cout, cin, kh, kw = w.shape
    wk = jnp.transpose(wf, (2, 3, 1, 0)).reshape(kh * kw, cin, cout)
    return wk.astype(jnp.bfloat16), bias


@jax.jit
def resnet18_client_forward(x_nchw, params):
    """x_nchw: (N, C, H, W) float32 -> (N, 64, H//4, W//4) float32 (same as the PyTorch module)."""
    N, Cin, H, W = x_nchw.shape
    assert H % 4 == 0 and W % 4 == 0, "spatial dims must be multiples of 4"
    Ho, Wo = H // 2, W // 2        # conv1 stride-2 output
    H2, W2 = Ho // 2, Wo // 2      # maxpool stride-2 output
    S2 = H2 * W2

    x = jnp.transpose(x_nchw, (0, 2, 3, 1)).astype(jnp.float32)        # NHWC
    # pad 3 for the 7x7 conv (plus one never-read row/col so the phase split is even)
    hp, wp = H + 6, W + 6
    xp = jnp.pad(x, ((0, 0), (3, hp - H - 3), (3, wp - W - 3), (0, 0)))
    # even/odd-row x even/odd-col phases: total bytes == padded input, no inflation.
    phases = [xp[:, pi::2, pj::2, :] for pi in (0, 1) for pj in (0, 1)]
    xph = jnp.stack(phases, axis=1)                                    # (N, 4, hp/2, wp/2, Cin)
    HPH, WPH = hp // 2, wp // 2
    xph = xph.reshape(N * 4, HPH, WPH, Cin).astype(jnp.bfloat16)       # MXU-native, half the DMA

    # Fold BN scale into weights (bf16); keep biases in f32.
    w1k, b1 = _fold_bn(params["conv1_w"], params["conv1_g"], params["conv1_b"],
                       params["conv1_m"], params["conv1_v"])
    wbs, bbs = [], []
    for blk in params["blocks"]:
        wk, bk = _fold_bn(blk["w1"], blk["g1"], blk["b1"], blk["m1"], blk["v1"])
        wbs.append(wk); bbs.append(bk)
        wk, bk = _fold_bn(blk["w2"], blk["g2"], blk["b2"], blk["m2"], blk["v2"])
        wbs.append(wk); bbs.append(bk)
    wb = jnp.stack(wbs, axis=0)                                        # (4, 9, 64, 64) bf16
    bb = jnp.stack(bbs, axis=0)                                        # (4, 1, 64) f32

    # Left/right column masks for the flattened 3x3-conv taps (hoisted out of the kernel).
    xcol = jnp.arange(S2, dtype=jnp.int32) % W2
    masks = jnp.stack([(xcol != 0).astype(jnp.float32),
                       (xcol != W2 - 1).astype(jnp.float32)], axis=0).reshape(2, S2, 1)

    kernel = functools.partial(_client_head_kernel, cin=Cin,
                               ho_out=Ho, wo_out=Wo, h2=H2, w2=W2)
    out = pl.pallas_call(
        kernel,
        out_shape=jax.ShapeDtypeStruct((N, S2, 64), jnp.float32),
        grid_spec=pltpu.PrefetchScalarGridSpec(
            num_scalar_prefetch=0,
            grid=(N,),
            in_specs=[
                pl.BlockSpec((4, HPH, WPH, Cin), lambda n: (n, 0, 0, 0)),   # phase-split image (bf16)
                pl.BlockSpec((49, Cin, 64), lambda n: (0, 0, 0)),           # conv1 weights
                pl.BlockSpec((1, 64), lambda n: (0, 0)),                    # conv1 BN bias
                pl.BlockSpec((4, 9, 64, 64), lambda n: (0, 0, 0, 0)),       # layer1 weights
                pl.BlockSpec((4, 1, 64), lambda n: (0, 0, 0)),              # layer1 BN biases
                pl.BlockSpec((2, S2, 1), lambda n: (0, 0, 0)),              # column masks
            ],
            out_specs=pl.BlockSpec((1, S2, 64), lambda n: (n, 0, 0)),
            scratch_shapes=[
                pltpu.VMEM((Ho + 2, Wo + 2, 64), jnp.float32),    # conv1 out / pool input (0-padded)
                pltpu.VMEM((Wo + 2, 64), jnp.float32),            # row-max buffer for the pool
                pltpu.VMEM((S2, 64), jnp.float32),                # running layer1 activation
                pltpu.VMEM((S2 + 2 * (W2 + 1), 64), jnp.float32), # 0-padded buffer for 3x3 taps
            ],
        ),
        compiler_params=pltpu.CompilerParams(
            dimension_semantics=("parallel",),
            vmem_limit_bytes=32 * 1024 * 1024,
        ),
    )(xph, w1k, b1, wb, bb, masks)

    out = out.reshape(N, H2, W2, 64)
    return jnp.transpose(out, (0, 3, 1, 2))                            # NHWC -> NCHW


# --------------------------------------------------------------------------- params / reference

def init_params(key, input_channel):
    """kaiming_normal (fan_out, relu) conv weights; BN gamma=1, beta=0, running mean=0, var=1."""

    def kaiming(k, shape):  # (Cout, Cin, kh, kw)
        fan_out = shape[0] * shape[2] * shape[3]
        return (2.0 / fan_out) ** 0.5 * jax.random.normal(k, shape, jnp.float32)

    def bn(c):
        return (jnp.ones((c,), jnp.float32), jnp.zeros((c,), jnp.float32),
                jnp.zeros((c,), jnp.float32), jnp.ones((c,), jnp.float32))

    keys = jax.random.split(key, 3)
    params = {"conv1_w": kaiming(keys[0], (64, input_channel, 7, 7))}
    g, b, m, v = bn(64)
    params["conv1_g"], params["conv1_b"], params["conv1_m"], params["conv1_v"] = g, b, m, v
    blocks = []
    for i in range(2):
        k1, k2 = jax.random.split(keys[1 + i])
        g1, b1, m1, v1 = bn(64)
        g2, b2, m2, v2 = bn(64)
        blocks.append(dict(w1=kaiming(k1, (64, 64, 3, 3)), g1=g1, b1=b1, m1=m1, v1=v1,
                           w2=kaiming(k2, (64, 64, 3, 3)), g2=g2, b2=b2, m2=m2, v2=v2))
    params["blocks"] = blocks
    return params


def _ref_forward(x_nchw, params, eps=1e-5):
    """Pure-JAX (XLA) reference of the same forward pass, for a loose numerical check."""
    x = jnp.transpose(x_nchw, (0, 2, 3, 1))

    def conv_bn(x, w, g, b, m, v, stride, pad, relu, residual=None):
        y = lax.conv_general_dilated(
            x, jnp.transpose(w, (2, 3, 1, 0)), (stride, stride),
            ((pad, pad), (pad, pad)), dimension_numbers=("NHWC", "HWIO", "NHWC"))
        scale = g / jnp.sqrt(v + eps)
        y = y * scale + (b - m * scale)
        if residual is not None:
            y = y + residual
        return jnp.maximum(y, 0.0) if relu else y

    x = conv_bn(x, params["conv1_w"], params["conv1_g"], params["conv1_b"],
                params["conv1_m"], params["conv1_v"], 2, 3, True)
    x = lax.reduce_window(x, -jnp.inf, lax.max, (1, 3, 3, 1), (1, 2, 2, 1),
                          ((0, 0), (1, 1), (1, 1), (0, 0)))
    for p in params["blocks"]:
        h = conv_bn(x, p["w1"], p["g1"], p["b1"], p["m1"], p["v1"], 1, 1, True)
        x = conv_bn(h, p["w2"], p["g2"], p["b2"], p["m2"], p["v2"], 1, 1, True, residual=x)
    return jnp.transpose(x, (0, 3, 1, 2))


if __name__ == "__main__":
    key = jax.random.PRNGKey(0)
    k_par, k_x = jax.random.split(key)
    input_channel = 4
    params = init_params(k_par, input_channel)
    x = jax.random.normal(k_x, (2, input_channel, 16, 16), dtype=jnp.float32)

    out = jax.block_until_ready(resnet18_client_forward(x, params))
    assert out.shape == (2, 64, 4, 4), out.shape
    assert bool(jnp.all(jnp.isfinite(out))), "non-finite output"

    ref = jax.block_until_ready(_ref_forward(x, params))
    max_err = float(jnp.max(jnp.abs(out - ref)))
    assert max_err < 1e-1, f"mismatch vs reference: max abs err = {max_err}"
    print("KERNEL_OK")
</pallas_src>

<mosaic_0001>
module attributes {stable_mosaic.version = 11 : i64} {
  func.func @_client_head_kernel(%arg0: i32, %arg1: memref<4x11x11x4xbf16, #tpu.memory_space<vmem>>, %arg2: memref<49x4x64xbf16, #tpu.memory_space<vmem>>, %arg3: memref<1x64xf32, #tpu.memory_space<vmem>>, %arg4: memref<4x9x64x64xbf16, #tpu.memory_space<vmem>>, %arg5: memref<4x1x64xf32, #tpu.memory_space<vmem>>, %arg6: memref<2x16x1xf32, #tpu.memory_space<vmem>>, %arg7: memref<1x16x64xf32, #tpu.memory_space<vmem>>, %arg8: memref<10x10x64xf32, #tpu.memory_space<vmem>>, %arg9: memref<10x64xf32, #tpu.memory_space<vmem>>, %arg10: memref<16x64xf32, #tpu.memory_space<vmem>>, %arg11: memref<26x64xf32, #tpu.memory_space<vmem>>) attributes {dimension_semantics = [#tpu.dimension_semantics<parallel>], iteration_bounds = array<i64: 2>, scalar_prefetch = 0 : i64, scratch_operands = 4 : i64, tpu.core_type = #tpu.core_type<tc>, window_params = [{transform_indices = @transform_0, window_bounds = array<i64: 4, 11, 11, 4>}, {pipeline_mode = #tpu.pipeline_mode<synchronous>, transform_indices = @transform_1, window_bounds = array<i64: 49, 4, 64>}, {pipeline_mode = #tpu.pipeline_mode<synchronous>, transform_indices = @transform_2, window_bounds = array<i64: 1, 64>}, {pipeline_mode = #tpu.pipeline_mode<synchronous>, transform_indices = @transform_3, window_bounds = array<i64: 4, 9, 64, 64>}, {pipeline_mode = #tpu.pipeline_mode<synchronous>, transform_indices = @transform_4, window_bounds = array<i64: 4, 1, 64>}, {pipeline_mode = #tpu.pipeline_mode<synchronous>, transform_indices = @transform_5, window_bounds = array<i64: 2, 16, 1>}, {transform_indices = @transform_6, window_bounds = array<i64: 1, 16, 64>}]} {
    %cst = arith.constant 0.000000e+00 : f32
    %0 = vector.broadcast %cst : f32 to vector<10x10x64xf32>
    %c0 = arith.constant 0 : index
    %c0_0 = arith.constant 0 : index
    %c0_1 = arith.constant 0 : index
    %1 = vector.load %arg8[%c0, %c0_0, %c0_1] : memref<10x10x64xf32, #tpu.memory_space<vmem>>, vector<10x10x64xf32>
    tpu.vector_store %arg8[%c0, %c0_0, %c0_1], %0 {strides = array<i32>} : memref<10x10x64xf32, #tpu.memory_space<vmem>>, vector<10x10x64xf32>,
    %cst_2 = arith.constant 0.000000e+00 : f32
    %2 = vector.broadcast %cst_2 : f32 to vector<5x64xf32>
    %c0_3 = arith.constant 0 : index
    %c0_4 = arith.constant 0 : index
    %3 = vector.load %arg11[%c0_3, %c0_4] : memref<26x64xf32, #tpu.memory_space<vmem>>, vector<5x64xf32>
    tpu.vector_store %arg11[%c0_3, %c0_4], %2 {strides = array<i32>} : memref<26x64xf32, #tpu.memory_space<vmem>>, vector<5x64xf32>,
    %cst_5 = arith.constant 0.000000e+00 : f32
    %4 = vector.broadcast %cst_5 : f32 to vector<5x64xf32>
    %c21 = arith.constant 21 : index
    %c0_6 = arith.constant 0 : index
    %5 = vector.load %arg11[%c21, %c0_6] : memref<26x64xf32, #tpu.memory_space<vmem>>, vector<5x64xf32>
    tpu.vector_store %arg11[%c21, %c0_6], %4 {strides = array<i32>} : memref<26x64xf32, #tpu.memory_space<vmem>>, vector<5x64xf32>,
    %c0_7 = arith.constant 0 : index
    %c0_8 = arith.constant 0 : index
    %6 = vector.load %arg3[%c0_7, %c0_8] : memref<1x64xf32, #tpu.memory_space<vmem>>, vector<1x64xf32>
    %c0_9 = arith.constant 0 : index
    %c0_10 = arith.constant 0 : index
    %c0_11 = arith.constant 0 : index
    %7 = vector.load %arg6[%c0_9, %c0_10, %c0_11] : memref<2x16x1xf32, #tpu.memory_space<vmem>>, vector<1x16x1xf32>
    %8 = vector.shape_cast %7 : vector<1x16x1xf32> to vector<16x1xf32>
    %c1 = arith.constant 1 : index
    %c0_12 = arith.constant 0 : index
    %c0_13 = arith.constant 0 : index
    %9 = vector.load %arg6[%c1, %c0_12, %c0_13] : memref<2x16x1xf32, #tpu.memory_space<vmem>>, vector<1x16x1xf32>
    %10 = vector.shape_cast %9 : vector<1x16x1xf32> to vector<16x1xf32>
    %c0_i32 = arith.constant 0 : i32
    %c8_i32 = arith.constant 8 : i32
    %11 = arith.addi %c0_i32, %c8_i32 : i32
    %c1_i32 = arith.constant 1 : i32
    scf.for %arg12 = %c0_i32 to %11 step %c1_i32  : i32 {
      %c1_i32_362 = arith.constant 1 : i32
      %366 = arith.muli %arg12, %c1_i32_362 : i32
      %c0_i32_363 = arith.constant 0 : i32
      %367 = arith.addi %c0_i32_363, %366 : i32
      %cst_364 = arith.constant 0.000000e+00 : f32
      %368 = vector.broadcast %cst_364 : f32 to vector<8x64xf32>
      %c0_i32_365 = arith.constant 0 : i32
      %369 = arith.addi %367, %c0_i32_365 : i32
      %c0_366 = arith.constant 0 : index
      %370 = arith.index_cast %369 : i32 to index
      %c0_367 = arith.constant 0 : index
      %c0_368 = arith.constant 0 : index
      %371 = vector.load %arg1[%c0_366, %370, %c0_367, %c0_368] : memref<4x11x11x4xbf16, #tpu.memory_space<vmem>>, vector<1x1x8x4xbf16>
      %372 = vector.shape_cast %371 : vector<1x1x8x4xbf16> to vector<8x4xbf16>
      %c0_369 = arith.constant 0 : index
      %c0_370 = arith.constant 0 : index
      %c0_371 = arith.constant 0 : index
      %373 = vector.load %arg2[%c0_369, %c0_370, %c0_371] : memref<49x4x64xbf16, #tpu.memory_space<vmem>>, vector<1x4x64xbf16>
      %374 = vector.shape_cast %373 : vector<1x4x64xbf16> to vector<4x64xbf16>
      %cst_372 = arith.constant dense<0.000000e+00> : vector<8x64xf32>
      %375 = tpu.matmul %372, %374, %cst_372 {dimension_numbers = #tpu.dot_dimension_numbers<[1], [0], [0], [1], [0, 0, 1, 1], [], []>} : vector<8x4xbf16>, vector<4x64xbf16>, vector<8x64xf32> -> vector<8x64xf32>
      %376 = arith.addf %368, %375 : vector<8x64xf32>
      %c0_i32_373 = arith.constant 0 : i32
      %377 = arith.addi %367, %c0_i32_373 : i32
      %c1_374 = arith.constant 1 : index
      %378 = arith.index_cast %377 : i32 to index
      %c0_375 = arith.constant 0 : index
      %c0_376 = arith.constant 0 : index
      %379 = vector.load %arg1[%c1_374, %378, %c0_375, %c0_376] : memref<4x11x11x4xbf16, #tpu.memory_space<vmem>>, vector<1x1x8x4xbf16>
      %380 = vector.shape_cast %379 : vector<1x1x8x4xbf16> to vector<8x4xbf16>
      %c1_377 = arith.constant 1 : index
      %c0_378 = arith.constant 0 : index
      %c0_379 = arith.constant 0 : index
      %381 = vector.load %arg2[%c1_377, %c0_378, %c0_379] : memref<49x4x64xbf16, #tpu.memory_space<vmem>>, vector<1x4x64xbf16>
      %382 = vector.shape_cast %381 : vector<1x4x64xbf16> to vector<4x64xbf16>
      %cst_380 = arith.constant dense<0.000000e+00> : vector<8x64xf32>
      %383 = tpu.matmul %380, %382, %cst_380 {dimension_numbers = #tpu.dot_dimension_numbers<[1], [0], [0], [1], [0, 0, 1, 1], [], []>} : vector<8x4xbf16>, vector<4x64xbf16>, vector<8x64xf32> -> vector<8x64xf32>
      %384 = arith.addf %376, %383 : vector<8x64xf32>
      %c0_i32_381 = arith.constant 0 : i32
      %385 = arith.addi %367, %c0_i32_381 : i32
      %c0_382 = arith.constant 0 : index
      %386 = arith.index_cast %385 : i32 to index
      %c1_383 = arith.constant 1 : index
      %c0_384 = arith.constant 0 : index
      %387 = vector.load %arg1[%c0_382, %386, %c1_383, %c0_384] : memref<4x11x11x4xbf16, #tpu.memory_space<vmem>>, vector<1x1x8x4xbf16>
      %388 = vector.shape_cast %387 : vector<1x1x8x4xbf16> to vector<8x4xbf16>
      %c2_385 = arith.constant 2 : index
      %c0_386 = arith.constant 0 : index
      %c0_387 = arith.constant 0 : index
      %389 = vector.load %arg2[%c2_385, %c0_386, %c0_387] : memref<49x4x64xbf16, #tpu.memory_space<vmem>>, vector<1x4x64xbf16>
      %390 = vector.shape_cast %389 : vector<1x4x64xbf16> to vector<4x64xbf16>
      %cst_388 = arith.constant dense<0.000000e+00> : vector<8x64xf32>
      %391 = tpu.matmul %388, %390, %cst_388 {dimension_numbers = #tpu.dot_dimension_numbers<[1], [0], [0], [1], [0, 0, 1, 1], [], []>} : vector<8x4xbf16>, vector<4x64xbf16>, vector<8x64xf32> -> vector<8x64xf32>
      %392 = arith.addf %384, %391 : vector<8x64xf32>
      %c0_i32_389 = arith.constant 0 : i32
      %393 = arith.addi %367, %c0_i32_389 : i32
      %c1_390 = arith.constant 1 : index
      %394 = arith.index_cast %393 : i32 to index
      %c1_391 = arith.constant 1 : index
      %c0_392 = arith.constant 0 : index
      %395 = vector.load %arg1[%c1_390, %394, %c1_391, %c0_392] : memref<4x11x11x4xbf16, #tpu.memory_space<vmem>>, vector<1x1x8x4xbf16>
      %396 = vector.shape_cast %395 : vector<1x1x8x4xbf16> to vector<8x4xbf16>
      %c3_393 = arith.constant 3 : index
      %c0_394 = arith.constant 0 : index
      %c0_395 = arith.constant 0 : index
      %397 = vector.load %arg2[%c3_393, %c0_394, %c0_395] : memref<49x4x64xbf16, #tpu.memory_space<vmem>>, vector<1x4x64xbf16>
      %398 = vector.shape_cast %397 : vector<1x4x64xbf16> to vector<4x64xbf16>
      %cst_396 = arith.constant dense<0.000000e+00> : vector<8x64xf32>
      %399 = tpu.matmul %396, %398, %cst_396 {dimension_numbers = #tpu.dot_dimension_numbers<[1], [0], [0], [1], [0, 0, 1, 1], [], []>} : vector<8x4xbf16>, vector<4x64xbf16>, vector<8x64xf32> -> vector<8x64xf32>
      %400 = arith.addf %392, %399 : vector<8x64xf32>
      %c0_i32_397 = arith.constant 0 : i32
      %401 = arith.addi %367, %c0_i32_397 : i32
      %c0_398 = arith.constant 0 : index
      %402 = arith.index_cast %401 : i32 to index
      %c2_399 = arith.constant 2 : index
      %c0_400 = arith.constant 0 : index
      %403 = vector.load %arg1[%c0_398, %402, %c2_399, %c0_400] : memref<4x11x11x4xbf16, #tpu.memory_space<vmem>>, vector<1x1x8x4xbf16>
      %404 = vector.shape_cast %403 : vector<1x1x8x4xbf16> to vector<8x4xbf16>
      %c4_401 = arith.constant 4 : index
      %c0_402 = arith.constant 0 : index
      %c0_403 = arith.constant 0 : index
      %405 = vector.load %arg2[%c4_401, %c0_402, %c0_403] : memref<49x4x64xbf16, #tpu.memory_space<vmem>>, vector<1x4x64xbf16>
      %406 = vector.shape_cast %405 : vector<1x4x64xbf16> to vector<4x64xbf16>
      %cst_404 = arith.constant dense<0.000000e+00> : vector<8x64xf32>
      %407 = tpu.matmul %404, %406, %cst_404 {dimension_numbers = #tpu.dot_dimension_numbers<[1], [0], [0], [1], [0, 0, 1, 1], [], []>} : vector<8x4xbf16>, vector<4x64xbf16>, vector<8x64xf32> -> vector<8x64xf32>
      %408 = arith.addf %400, %407 : vector<8x64xf32>
      %c0_i32_405 = arith.constant 0 : i32
      %409 = arith.addi %367, %c0_i32_405 : i32
      %c1_406 = arith.constant 1 : index
      %410 = arith.index_cast %409 : i32 to index
      %c2_407 = arith.constant 2 : index
      %c0_408 = arith.constant 0 : index
      %411 = vector.load %arg1[%c1_406, %410, %c2_407, %c0_408] : memref<4x11x11x4xbf16, #tpu.memory_space<vmem>>, vector<1x1x8x4xbf16>
      %412 = vector.shape_cast %411 : vector<1x1x8x4xbf16> to vector<8x4xbf16>
      %c5_409 = arith.constant 5 : index
      %c0_410 = arith.constant 0 : index
      %c0_411 = arith.constant 0 : index
      %413 = vector.load %arg2[%c5_409, %c0_410, %c0_411] : memref<49x4x64xbf16, #tpu.memory_space<vmem>>, vector<1x4x64xbf16>
      %414 = vector.shape_cast %413 : vector<1x4x64xbf16> to vector<4x64xbf16>
      %cst_412 = arith.constant dense<0.000000e+00> : vector<8x64xf32>
      %415 = tpu.matmul %412, %414, %cst_412 {dimension_numbers = #tpu.dot_dimension_numbers<[1], [0], [0], [1], [0, 0, 1, 1], [], []>} : vector<8x4xbf16>, vector<4x64xbf16>, vector<8x64xf32> -> vector<8x64xf32>
      %416 = arith.addf %408, %415 : vector<8x64xf32>
      %c0_i32_413 = arith.constant 0 : i32
      %417 = arith.addi %367, %c0_i32_413 : i32
      %c0_414 = arith.constant 0 : index
      %418 = arith.index_cast %417 : i32 to index
      %c3_415 = arith.constant 3 : index
      %c0_416 = arith.constant 0 : index
      %419 = vector.load %arg1[%c0_414, %418, %c3_415, %c0_416] : memref<4x11x11x4xbf16, #tpu.memory_space<vmem>>, vector<1x1x8x4xbf16>
      %420 = vector.shape_cast %419 : vector<1x1x8x4xbf16> to vector<8x4xbf16>
      %c6_417 = arith.constant 6 : index
      %c0_418 = arith.constant 0 : index
      %c0_419 = arith.constant 0 : index
      %421 = vector.load %arg2[%c6_417, %c0_418, %c0_419] : memref<49x4x64xbf16, #tpu.memory_space<vmem>>, vector<1x4x64xbf16>
      %422 = vector.shape_cast %421 : vector<1x4x64xbf16> to vector<4x64xbf16>
      %cst_420 = arith.constant dense<0.000000e+00> : vector<8x64xf32>
      %423 = tpu.matmul %420, %422, %cst_420 {dimension_numbers = #tpu.dot_dimension_numbers<[1], [0], [0], [1], [0, 0, 1, 1], [], []>} : vector<8x4xbf16>, vector<4x64xbf16>, vector<8x64xf32> -> vector<8x64xf32>
      %424 = arith.addf %416, %423 : vector<8x64xf32>
      %c0_i32_421 = arith.constant 0 : i32
      %425 = arith.addi %367, %c0_i32_421 : i32
      %c2_422 = arith.constant 2 : index
      %426 = arith.index_cast %425 : i32 to index
      %c0_423 = arith.constant 0 : index
      %c0_424 = arith.constant 0 : index
      %427 = vector.load %arg1[%c2_422, %426, %c0_423, %c0_424] : memref<4x11x11x4xbf16, #tpu.memory_space<vmem>>, vector<1x1x8x4xbf16>
      %428 = vector.shape_cast %427 : vector<1x1x8x4xbf16> to vector<8x4xbf16>
      %c7_425 = arith.constant 7 : index
      %c0_426 = arith.constant 0 : index
      %c0_427 = arith.constant 0 : index
      %429 = vector.load %arg2[%c7_425, %c0_426, %c0_427] : memref<49x4x64xbf16, #tpu.memory_space<vmem>>, vector<1x4x64xbf16>
      %430 = vector.shape_cast %429 : vector<1x4x64xbf16> to vector<4x64xbf16>
      %cst_428 = arith.constant dense<0.000000e+00> : vector<8x64xf32>
      %431 = tpu.matmul %428, %430, %cst_428 {dimension_numbers = #tpu.dot_dimension_numbers<[1], [0], [0], [1], [0, 0, 1, 1], [], []>} : vector<8x4xbf16>, vector<4x64xbf16>, vector<8x64xf32> -> vector<8x64xf32>
      %432 = arith.addf %424, %431 : vector<8x64xf32>
      %c0_i32_429 = arith.constant 0 : i32
      %433 = arith.addi %367, %c0_i32_429 : i32
      %c3_430 = arith.constant 3 : index
      %434 = arith.index_cast %433 : i32 to index
      %c0_431 = arith.constant 0 : index
      %c0_432 = arith.constant 0 : index
      %435 = vector.load %arg1[%c3_430, %434, %c0_431, %c0_432] : memref<4x11x11x4xbf16, #tpu.memory_space<vmem>>, vector<1x1x8x4xbf16>
      %436 = vector.shape_cast %435 : vector<1x1x8x4xbf16> to vector<8x4xbf16>
      %c8_433 = arith.constant 8 : index
      %c0_434 = arith.constant 0 : index
      %c0_435 = arith.constant 0 : index
      %437 = vector.load %arg2[%c8_433, %c0_434, %c0_435] : memref<49x4x64xbf16, #tpu.memory_space<vmem>>, vector<1x4x64xbf16>
      %438 = vector.shape_cast %437 : vector<1x4x64xbf16> to vector<4x64xbf16>
      %cst_436 = arith.constant dense<0.000000e+00> : vector<8x64xf32>
      %439 = tpu.matmul %436, %438, %cst_436 {dimension_numbers = #tpu.dot_dimension_numbers<[1], [0], [0], [1], [0, 0, 1, 1], [], []>} : vector<8x4xbf16>, vector<4x64xbf16>, vector<8x64xf32> -> vector<8x64xf32>
      %440 = arith.addf %432, %439 : vector<8x64xf32>
      %c0_i32_437 = arith.constant 0 : i32
      %441 = arith.addi %367, %c0_i32_437 : i32
      %c2_438 = arith.constant 2 : index
      %442 = arith.index_cast %441 : i32 to index
      %c1_439 = arith.constant 1 : index
      %c0_440 = arith.constant 0 : index
      %443 = vector.load %arg1[%c2_438, %442, %c1_439, %c0_440] : memref<4x11x11x4xbf16, #tpu.memory_space<vmem>>, vector<1x1x8x4xbf16>
      %444 = vector.shape_cast %443 : vector<1x1x8x4xbf16> to vector<8x4xbf16>
      %c9_441 = arith.constant 9 : index
      %c0_442 = arith.constant 0 : index
      %c0_443 = arith.constant 0 : index
      %445 = vector.load %arg2[%c9_441, %c0_442, %c0_443] : memref<49x4x64xbf16, #tpu.memory_space<vmem>>, vector<1x4x64xbf16>
      %446 = vector.shape_cast %445 : vector<1x4x64xbf16> to vector<4x64xbf16>
      %cst_444 = arith.constant dense<0.000000e+00> : vector<8x64xf32>
      %447 = tpu.matmul %444, %446, %cst_444 {dimension_numbers = #tpu.dot_dimension_numbers<[1], [0], [0], [1], [0, 0, 1, 1], [], []>} : vector<8x4xbf16>, vector<4x64xbf16>, vector<8x64xf32> -> vector<8x64xf32>
      %448 = arith.addf %440, %447 : vector<8x64xf32>
      %c0_i32_445 = arith.constant 0 : i32
      %449 = arith.addi %367, %c0_i32_445 : i32
      %c3_446 = arith.constant 3 : index
      %450 = arith.index_cast %449 : i32 to index
      %c1_447 = arith.constant 1 : index
      %c0_448 = arith.constant 0 : index
      %451 = vector.load %arg1[%c3_446, %450, %c1_447, %c0_448] : memref<4x11x11x4xbf16, #tpu.memory_space<vmem>>, vector<1x1x8x4xbf16>
      %452 = vector.shape_cast %451 : vector<1x1x8x4xbf16> to vector<8x4xbf16>
      %c10_449 = arith.constant 10 : index
      %c0_450 = arith.constant 0 : index
      %c0_451 = arith.constant 0 : index
      %453 = vector.load %arg2[%c10_449, %c0_450, %c0_451] : memref<49x4x64xbf16, #tpu.memory_space<vmem>>, vector<1x4x64xbf16>
      %454 = vector.shape_cast %453 : vector<1x4x64xbf16> to vector<4x64xbf16>
      %cst_452 = arith.constant dense<0.000000e+00> : vector<8x64xf32>
      %455 = tpu.matmul %452, %454, %cst_452 {dimension_numbers = #tpu.dot_dimension_numbers<[1], [0], [0], [1], [0, 0, 1, 1], [], []>} : vector<8x4xbf16>, vector<4x64xbf16>, vector<8x64xf32> -> vector<8x64xf32>
      %456 = arith.addf %448, %455 : vector<8x64xf32>
      %c0_i32_453 = arith.constant 0 : i32
      %457 = arith.addi %367, %c0_i32_453 : i32
      %c2_454 = arith.constant 2 : index
      %458 = arith.index_cast %457 : i32 to index
      %c2_455 = arith.constant 2 : index
      %c0_456 = arith.constant 0 : index
      %459 = vector.load %arg1[%c2_454, %458, %c2_455, %c0_456] : memref<4x11x11x4xbf16, #tpu.memory_space<vmem>>, vector<1x1x8x4xbf16>
      %460 = vector.shape_cast %459 : vector<1x1x8x4xbf16> to vector<8x4xbf16>
      %c11 = arith.constant 11 : index
      %c0_457 = arith.constant 0 : index
      %c0_458 = arith.constant 0 : index
      %461 = vector.load %arg2[%c11, %c0_457, %c0_458] : memref<49x4x64xbf16, #tpu.memory_space<vmem>>, vector<1x4x64xbf16>
      %462 = vector.shape_cast %461 : vector<1x4x64xbf16> to vector<4x64xbf16>
      %cst_459 = arith.constant dense<0.000000e+00> : vector<8x64xf32>
      %463 = tpu.matmul %460, %462, %cst_459 {dimension_numbers = #tpu.dot_dimension_numbers<[1], [0], [0], [1], [0, 0, 1, 1], [], []>} : vector<8x4xbf16>, vector<4x64xbf16>, vector<8x64xf32> -> vector<8x64xf32>
      %464 = arith.addf %456, %463 : vector<8x64xf32>
      %c0_i32_460 = arith.constant 0 : i32
      %465 = arith.addi %367, %c0_i32_460 : i32
      %c3_461 = arith.constant 3 : index
      %466 = arith.index_cast %465 : i32 to index
      %c2_462 = arith.constant 2 : index
      %c0_463 = arith.constant 0 : index
      %467 = vector.load %arg1[%c3_461, %466, %c2_462, %c0_463] : memref<4x11x11x4xbf16, #tpu.memory_space<vmem>>, vector<1x1x8x4xbf16>
      %468 = vector.shape_cast %467 : vector<1x1x8x4xbf16> to vector<8x4xbf16>
      %c12_464 = arith.constant 12 : index
      %c0_465 = arith.constant 0 : index
      %c0_466 = arith.constant 0 : index
      %469 = vector.load %arg2[%c12_464, %c0_465, %c0_466] : memref<49x4x64xbf16, #tpu.memory_space<vmem>>, vector<1x4x64xbf16>
      %470 = vector.shape_cast %469 : vector<1x4x64xbf16> to vector<4x64xbf16>
      %cst_467 = arith.constant dense<0.000000e+00> : vector<8x64xf32>
      %471 = tpu.matmul %468, %470, %cst_467 {dimension_numbers = #tpu.dot_dimension_numbers<[1], [0], [0], [1], [0, 0, 1, 1], [], []>} : vector<8x4xbf16>, vector<4x64xbf16>, vector<8x64xf32> -> vector<8x64xf32>
      %472 = arith.addf %464, %471 : vector<8x64xf32>
      %c0_i32_468 = arith.constant 0 : i32
      %473 = arith.addi %367, %c0_i32_468 : i32
      %c2_469 = arith.constant 2 : index
      %474 = arith.index_cast %473 : i32 to index
      %c3_470 = arith.constant 3 : index
      %c0_471 = arith.constant 0 : index
      %475 = vector.load %arg1[%c2_469, %474, %c3_470, %c0_471] : memref<4x11x11x4xbf16, #tpu.memory_space<vmem>>, vector<1x1x8x4xbf16>
      %476 = vector.shape_cast %475 : vector<1x1x8x4xbf16> to vector<8x4xbf16>
      %c13 = arith.constant 13 : index
      %c0_472 = arith.constant 0 : index
      %c0_473 = arith.constant 0 : index
      %477 = vector.load %arg2[%c13, %c0_472, %c0_473] : memref<49x4x64xbf16, #tpu.memory_space<vmem>>, vector<1x4x64xbf16>
      %478 = vector.shape_cast %477 : vector<1x4x64xbf16> to vector<4x64xbf16>
      %cst_474 = arith.constant dense<0.000000e+00> : vector<8x64xf32>
      %479 = tpu.matmul %476, %478, %cst_474 {dimension_numbers = #tpu.dot_dimension_numbers<[1], [0], [0], [1], [0, 0, 1, 1], [], []>} : vector<8x4xbf16>, vector<4x64xbf16>, vector<8x64xf32> -> vector<8x64xf32>
      %480 = arith.addf %472, %479 : vector<8x64xf32>
      %c1_i32_475 = arith.constant 1 : i32
      %481 = arith.addi %367, %c1_i32_475 : i32
      %c0_476 = arith.constant 0 : index
      %482 = arith.index_cast %481 : i32 to index
      %c0_477 = arith.constant 0 : index
      %c0_478 = arith.constant 0 : index
      %483 = vector.load %arg1[%c0_476, %482, %c0_477, %c0_478] : memref<4x11x11x4xbf16, #tpu.memory_space<vmem>>, vector<1x1x8x4xbf16>
      %484 = vector.shape_cast %483 : vector<1x1x8x4xbf16> to vector<8x4xbf16>
      %c14 = arith.constant 14 : index
      %c0_479 = arith.constant 0 : index
      %c0_480 = arith.constant 0 : index
      %485 = vector.load %arg2[%c14, %c0_479, %c0_480] : memref<49x4x64xbf16, #tpu.memory_space<vmem>>, vector<1x4x64xbf16>
      %486 = vector.shape_cast %485 : vector<1x4x64xbf16> to vector<4x64xbf16>
      %cst_481 = arith.constant dense<0.000000e+00> : vector<8x64xf32>
      %487 = tpu.matmul %484, %486, %cst_481 {dimension_numbers = #tpu.dot_dimension_numbers<[1], [0], [0], [1], [0, 0, 1, 1], [], []>} : vector<8x4xbf16>, vector<4x64xbf16>, vector<8x64xf32> -> vector<8x64xf32>
      %488 = arith.addf %480, %487 : vector<8x64xf32>
      %c1_i32_482 = arith.constant 1 : i32
      %489 = arith.addi %367, %c1_i32_482 : i32
      %c1_483 = arith.constant 1 : index
      %490 = arith.index_cast %489 : i32 to index
      %c0_484 = arith.constant 0 : index
      %c0_485 = arith.constant 0 : index
      %491 = vector.load %arg1[%c1_483, %490, %c0_484, %c0_485] : memref<4x11x11x4xbf16, #tpu.memory_space<vmem>>, vector<1x1x8x4xbf16>
      %492 = vector.shape_cast %491 : vector<1x1x8x4xbf16> to vector<8x4xbf16>
      %c15 = arith.constant 15 : index
      %c0_486 = arith.constant 0 : index
      %c0_487 = arith.constant 0 : index
      %493 = vector.load %arg2[%c15, %c0_486, %c0_487] : memref<49x4x64xbf16, #tpu.memory_space<vmem>>, vector<1x4x64xbf16>
      %494 = vector.shape_cast %493 : vector<1x4x64xbf16> to vector<4x64xbf16>
      %cst_488 = arith.constant dense<0.000000e+00> : vector<8x64xf32>
      %495 = tpu.matmul %492, %494, %cst_488 {dimension_numbers = #tpu.dot_dimension_numbers<[1], [0], [0], [1], [0, 0, 1, 1], [], []>} : vector<8x4xbf16>, vector<4x64xbf16>, vector<8x64xf32> -> vector<8x64xf32>
      %496 = arith.addf %488, %495 : vector<8x64xf32>
      %c1_i32_489 = arith.constant 1 : i32
      %497 = arith.addi %367, %c1_i32_489 : i32
      %c0_490 = arith.constant 0 : index
      %498 = arith.index_cast %497 : i32 to index
      %c1_491 = arith.constant 1 : index
      %c0_492 = arith.constant 0 : index
      %499 = vector.load %arg1[%c0_490, %498, %c1_491, %c0_492] : memref<4x11x11x4xbf16, #tpu.memory_space<vmem>>, vector<1x1x8x4xbf16>
      %500 = vector.shape_cast %499 : vector<1x1x8x4xbf16> to vector<8x4xbf16>
      %c16 = arith.constant 16 : index
      %c0_493 = arith.constant 0 : index
      %c0_494 = arith.constant 0 : index
      %501 = vector.load %arg2[%c16, %c0_493, %c0_494] : memref<49x4x64xbf16, #tpu.memory_space<vmem>>, vector<1x4x64xbf16>
      %502 = vector.shape_cast %501 : vector<1x4x64xbf16> to vector<4x64xbf16>
      %cst_495 = arith.constant dense<0.000000e+00> : vector<8x64xf32>
      %503 = tpu.matmul %500, %502, %cst_495 {dimension_numbers = #tpu.dot_dimension_numbers<[1], [0], [0], [1], [0, 0, 1, 1], [], []>} : vector<8x4xbf16>, vector<4x64xbf16>, vector<8x64xf32> -> vector<8x64xf32>
      %504 = arith.addf %496, %503 : vector<8x64xf32>
      %c1_i32_496 = arith.constant 1 : i32
      %505 = arith.addi %367, %c1_i32_496 : i32
      %c1_497 = arith.constant 1 : index
      %506 = arith.index_cast %505 : i32 to index
      %c1_498 = arith.constant 1 : index
      %c0_499 = arith.constant 0 : index
      %507 = vector.load %arg1[%c1_497, %506, %c1_498, %c0_499] : memref<4x11x11x4xbf16, #tpu.memory_space<vmem>>, vector<1x1x8x4xbf16>
      %508 = vector.shape_cast %507 : vector<1x1x8x4xbf16> to vector<8x4xbf16>
      %c17 = arith.constant 17 : index
      %c0_500 = arith.constant 0 : index
      %c0_501 = arith.constant 0 : index
      %509 = vector.load %arg2[%c17, %c0_500, %c0_501] : memref<49x4x64xbf16, #tpu.memory_space<vmem>>, vector<1x4x64xbf16>
      %510 = vector.shape_cast %509 : vector<1x4x64xbf16> to vector<4x64xbf16>
      %cst_502 = arith.constant dense<0.000000e+00> : vector<8x64xf32>
      %511 = tpu.matmul %508, %510, %cst_502 {dimension_numbers = #tpu.dot_dimension_numbers<[1], [0], [0], [1], [0, 0, 1, 1], [], []>} : vector<8x4xbf16>, vector<4x64xbf16>, vector<8x64xf32> -> vector<8x64xf32>
      %512 = arith.addf %504, %511 : vector<8x64xf32>
      %c1_i32_503 = arith.constant 1 : i32
      %513 = arith.addi %367, %c1_i32_503 : i32
      %c0_504 = arith.constant 0 : index
      %514 = arith.index_cast %513 : i32 to index
      %c2_505 = arith.constant 2 : index
      %c0_506 = arith.constant 0 : index
      %515 = vector.load %arg1[%c0_504, %514, %c2_505, %c0_506] : memref<4x11x11x4xbf16, #tpu.memory_space<vmem>>, vector<1x1x8x4xbf16>
      %516 = vector.shape_cast %515 : vector<1x1x8x4xbf16> to vector<8x4xbf16>
      %c18 = arith.constant 18 : index
      %c0_507 = arith.constant 0 : index
      %c0_508 = arith.constant 0 : index
      %517 = vector.load %arg2[%c18, %c0_507, %c0_508] : memref<49x4x64xbf16, #tpu.memory_space<vmem>>, vector<1x4x64xbf16>
      %518 = vector.shape_cast %517 : vector<1x4x64xbf16> to vector<4x64xbf16>
      %cst_509 = arith.constant dense<0.000000e+00> : vector<8x64xf32>
      %519 = tpu.matmul %516, %518, %cst_509 {dimension_numbers = #tpu.dot_dimension_numbers<[1], [0], [0], [1], [0, 0, 1, 1], [], []>} : vector<8x4xbf16>, vector<4x64xbf16>, vector<8x64xf32> -> vector<8x64xf32>
      %520 = arith.addf %512, %519 : vector<8x64xf32>
      %c1_i32_510 = arith.constant 1 : i32
      %521 = arith.addi %367, %c1_i32_510 : i32
      %c1_511 = arith.constant 1 : index
      %522 = arith.index_cast %521 : i32 to index
      %c2_512 = arith.constant 2 : index
      %c0_513 = arith.constant 0 : index
      %523 = vector.load %arg1[%c1_511, %522, %c2_512, %c0_513] : memref<4x11x11x4xbf16, #tpu.memory_space<vmem>>, vector<1x1x8x4xbf16>
      %524 = vector.shape_cast %523 : vector<1x1x8x4xbf16> to vector<8x4xbf16>
      %c19 = arith.constant 19 : index
      %c0_514 = arith.constant 0 : index
      %c0_515 = arith.constant 0 : index
      %525 = vector.load %arg2[%c19, %c0_514, %c0_515] : memref<49x4x64xbf16, #tpu.memory_space<vmem>>, vector<1x4x64xbf16>
      %526 = vector.shape_cast %525 : vector<1x4x64xbf16> to vector<4x64xbf16>
      %cst_516 = arith.constant dense<0.000000e+00> : vector<8x64xf32>
      %527 = tpu.matmul %524, %526, %cst_516 {dimension_numbers = #tpu.dot_dimension_numbers<[1], [0], [0], [1], [0, 0, 1, 1], [], []>} : vector<8x4xbf16>, vector<4x64xbf16>, vector<8x64xf32> -> vector<8x64xf32>
      %528 = arith.addf %520, %527 : vector<8x64xf32>
      %c1_i32_517 = arith.constant 1 : i32
      %529 = arith.addi %367, %c1_i32_517 : i32
      %c0_518 = arith.constant 0 : index
      %530 = arith.index_cast %529 : i32 to index
      %c3_519 = arith.constant 3 : index
      %c0_520 = arith.constant 0 : index
      %531 = vector.load %arg1[%c0_518, %530, %c3_519, %c0_520] : memref<4x11x11x4xbf16, #tpu.memory_space<vmem>>, vector<1x1x8x4xbf16>
      %532 = vector.shape_cast %531 : vector<1x1x8x4xbf16> to vector<8x4xbf16>
      %c20 = arith.constant 20 : index
      %c0_521 = arith.constant 0 : index
      %c0_522 = arith.constant 0 : index
      %533 = vector.load %arg2[%c20, %c0_521, %c0_522] : memref<49x4x64xbf16, #tpu.memory_space<vmem>>, vector<1x4x64xbf16>
      %534 = vector.shape_cast %533 : vector<1x4x64xbf16> to vector<4x64xbf16>
      %cst_523 = arith.constant dense<0.000000e+00> : vector<8x64xf32>
      %535 = tpu.matmul %532, %534, %cst_523 {dimension_numbers = #tpu.dot_dimension_numbers<[1], [0], [0], [1], [0, 0, 1, 1], [], []>} : vector<8x4xbf16>, vector<4x64xbf16>, vector<8x64xf32> -> vector<8x64xf32>
      %536 = arith.addf %528, %535 : vector<8x64xf32>
      %c1_i32_524 = arith.constant 1 : i32
      %537 = arith.addi %367, %c1_i32_524 : i32
      %c2_525 = arith.constant 2 : index
      %538 = arith.index_cast %537 : i32 to index
      %c0_526 = arith.constant 0 : index
      %c0_527 = arith.constant 0 : index
      %539 = vector.load %arg1[%c2_525, %538, %c0_526, %c0_527] : memref<4x11x11x4xbf16, #tpu.memory_space<vmem>>, vector<1x1x8x4xbf16>
      %540 = vector.shape_cast %539 : vector<1x1x8x4xbf16> to vector<8x4xbf16>
      %c21_528 = arith.constant 21 : index
      %c0_529 = arith.constant 0 : index
      %c0_530 = arith.constant 0 : index
      %541 = vector.load %arg2[%c21_528, %c0_529, %c0_530] : memref<49x4x64xbf16, #tpu.memory_space<vmem>>, vector<1x4x64xbf16>
      %542 = vector.shape_cast %541 : vector<1x4x64xbf16> to vector<4x64xbf16>
      %cst_531 = arith.constant dense<0.000000e+00> : vector<8x64xf32>
      %543 = tpu.matmul %540, %542, %cst_531 {dimension_numbers = #tpu.dot_dimension_numbers<[1], [0], [0], [1], [0, 0, 1, 1], [], []>} : vector<8x4xbf16>, vector<4x64xbf16>, vector<8x64xf32> -> vector<8x64xf32>
      %544 = arith.addf %536, %543 : vector<8x64xf32>
      %c1_i32_532 = arith.constant 1 : i32
      %545 = arith.addi %367, %c1_i32_532 : i32
      %c3_533 = arith.constant 3 : index
      %546 = arith.index_cast %545 : i32 to index
      %c0_534 = arith.constant 0 : index
      %c0_535 = arith.constant 0 : index
      %547 = vector.load %arg1[%c3_533, %546, %c0_534, %c0_535] : memref<4x11x11x4xbf16, #tpu.memory_space<vmem>>, vector<1x1x8x4xbf16>
      %548 = vector.shape_cast %547 : vector<1x1x8x4xbf16> to vector<8x4xbf16>
      %c22 = arith.constant 22 : index
      %c0_536 = arith.constant 0 : index
      %c0_537 = arith.constant 0 : index
      %549 = vector.load %arg2[%c22, %c0_536, %c0_537] : memref<49x4x64xbf16, #tpu.memory_space<vmem>>, vector<1x4x64xbf16>
      %550 = vector.shape_cast %549 : vector<1x4x64xbf16> to vector<4x64xbf16>
      %cst_538 = arith.constant dense<0.000000e+00> : vector<8x64xf32>
      %551 = tpu.matmul %548, %550, %cst_538 {dimension_numbers = #tpu.dot_dimension_numbers<[1], [0], [0], [1], [0, 0, 1, 1], [], []>} : vector<8x4xbf16>, vector<4x64xbf16>, vector<8x64xf32> -> vector<8x64xf32>
      %552 = arith.addf %544, %551 : vector<8x64xf32>
      %c1_i32_539 = arith.constant 1 : i32
      %553 = arith.addi %367, %c1_i32_539 : i32
      %c2_540 = arith.constant 2 : index
      %554 = arith.index_cast %553 : i32 to index
      %c1_541 = arith.constant 1 : index
      %c0_542 = arith.constant 0 : index
      %555 = vector.load %arg1[%c2_540, %554, %c1_541, %c0_542] : memref<4x11x11x4xbf16, #tpu.memory_space<vmem>>, vector<1x1x8x4xbf16>
      %556 = vector.shape_cast %555 : vector<1x1x8x4xbf16> to vector<8x4xbf16>
      %c23 = arith.constant 23 : index
      %c0_543 = arith.constant 0 : index
      %c0_544 = arith.constant 0 : index
      %557 = vector.load %arg2[%c23, %c0_543, %c0_544] : memref<49x4x64xbf16, #tpu.memory_space<vmem>>, vector<1x4x64xbf16>
      %558 = vector.shape_cast %557 : vector<1x4x64xbf16> to vector<4x64xbf16>
      %cst_545 = arith.constant dense<0.000000e+00> : vector<8x64xf32>
      %559 = tpu.matmul %556, %558, %cst_545 {dimension_numbers = #tpu.dot_dimension_numbers<[1], [0], [0], [1], [0, 0, 1, 1], [], []>} : vector<8x4xbf16>, vector<4x64xbf16>, vector<8x64xf32> -> vector<8x64xf32>
      %560 = arith.addf %552, %559 : vector<8x64xf32>
      %c1_i32_546 = arith.constant 1 : i32
      %561 = arith.addi %367, %c1_i32_546 : i32
      %c3_547 = arith.constant 3 : index
      %562 = arith.index_cast %561 : i32 to index
      %c1_548 = arith.constant 1 : index
      %c0_549 = arith.constant 0 : index
      %563 = vector.load %arg1[%c3_547, %562, %c1_548, %c0_549] : memref<4x11x11x4xbf16, #tpu.memory_space<vmem>>, vector<1x1x8x4xbf16>
      %564 = vector.shape_cast %563 : vector<1x1x8x4xbf16> to vector<8x4xbf16>
      %c24 = arith.constant 24 : index
      %c0_550 = arith.constant 0 : index
      %c0_551 = arith.constant 0 : index
      %565 = vector.load %arg2[%c24, %c0_550, %c0_551] : memref<49x4x64xbf16, #tpu.memory_space<vmem>>, vector<1x4x64xbf16>
      %566 = vector.shape_cast %565 : vector<1x4x64xbf16> to vector<4x64xbf16>
      %cst_552 = arith.constant dense<0.000000e+00> : vector<8x64xf32>
      %567 = tpu.matmul %564, %566, %cst_552 {dimension_numbers = #tpu.dot_dimension_numbers<[1], [0], [0], [1], [0, 0, 1, 1], [], []>} : vector<8x4xbf16>, vector<4x64xbf16>, vector<8x64xf32> -> vector<8x64xf32>
      %568 = arith.addf %560, %567 : vector<8x64xf32>
      %c1_i32_553 = arith.constant 1 : i32
      %569 = arith.addi %367, %c1_i32_553 : i32
      %c2_554 = arith.constant 2 : index
      %570 = arith.index_cast %569 : i32 to index
      %c2_555 = arith.constant 2 : index
      %c0_556 = arith.constant 0 : index
      %571 = vector.load %arg1[%c2_554, %570, %c2_555, %c0_556] : memref<4x11x11x4xbf16, #tpu.memory_space<vmem>>, vector<1x1x8x4xbf16>
      %572 = vector.shape_cast %571 : vector<1x1x8x4xbf16> to vector<8x4xbf16>
      %c25 = arith.constant 25 : index
      %c0_557 = arith.constant 0 : index
      %c0_558 = arith.constant 0 : index
      %573 = vector.load %arg2[%c25, %c0_557, %c0_558] : memref<49x4x64xbf16, #tpu.memory_space<vmem>>, vector<1x4x64xbf16>
      %574 = vector.shape_cast %573 : vector<1x4x64xbf16> to vector<4x64xbf16>
      %cst_559 = arith.constant dense<0.000000e+00> : vector<8x64xf32>
      %575 = tpu.matmul %572, %574, %cst_559 {dimension_numbers = #tpu.dot_dimension_numbers<[1], [0], [0], [1], [0, 0, 1, 1], [], []>} : vector<8x4xbf16>, vector<4x64xbf16>, vector<8x64xf32> -> vector<8x64xf32>
      %576 = arith.addf %568, %575 : vector<8x64xf32>
      %c1_i32_560 = arith.constant 1 : i32
      %577 = arith.addi %367, %c1_i32_560 : i32
      %c3_561 = arith.constant 3 : index
      %578 = arith.index_cast %577 : i32 to index
      %c2_562 = arith.constant 2 : index
      %c0_563 = arith.constant 0 : index
      %579 = vector.load %arg1[%c3_561, %578, %c2_562, %c0_563] : memref<4x11x11x4xbf16, #tpu.memory_space<vmem>>, vector<1x1x8x4xbf16>
      %580 = vector.shape_cast %579 : vector<1x1x8x4xbf16> to vector<8x4xbf16>
      %c26 = arith.constant 26 : index
      %c0_564 = arith.constant 0 : index
      %c0_565 = arith.constant 0 : index
      %581 = vector.load %arg2[%c26, %c0_564, %c0_565] : memref<49x4x64xbf16, #tpu.memory_space<vmem>>, vector<1x4x64xbf16>
      %582 = vector.shape_cast %581 : vector<1x4x64xbf16> to vector<4x64xbf16>
      %cst_566 = arith.constant dense<0.000000e+00> : vector<8x64xf32>
      %583 = tpu.matmul %580, %582, %cst_566 {dimension_numbers = #tpu.dot_dimension_numbers<[1], [0], [0], [1], [0, 0, 1, 1], [], []>} : vector<8x4xbf16>, vector<4x64xbf16>, vector<8x64xf32> -> vector<8x64xf32>
      %584 = arith.addf %576, %583 : vector<8x64xf32>
      %c1_i32_567 = arith.constant 1 : i32
      %585 = arith.addi %367, %c1_i32_567 : i32
      %c2_568 = arith.constant 2 : index
      %586 = arith.index_cast %585 : i32 to index
      %c3_569 = arith.constant 3 : index
      %c0_570 = arith.constant 0 : index
      %587 = vector.load %arg1[%c2_568, %586, %c3_569, %c0_570] : memref<4x11x11x4xbf16, #tpu.memory_space<vmem>>, vector<1x1x8x4xbf16>
      %588 = vector.shape_cast %587 : vector<1x1x8x4xbf16> to vector<8x4xbf16>
      %c27 = arith.constant 27 : index
      %c0_571 = arith.constant 0 : index
      %c0_572 = arith.constant 0 : index
      %589 = vector.load %arg2[%c27, %c0_571, %c0_572] : memref<49x4x64xbf16, #tpu.memory_space<vmem>>, vector<1x4x64xbf16>
      %590 = vector.shape_cast %589 : vector<1x4x64xbf16> to vector<4x64xbf16>
      %cst_573 = arith.constant dense<0.000000e+00> : vector<8x64xf32>
      %591 = tpu.matmul %588, %590, %cst_573 {dimension_numbers = #tpu.dot_dimension_numbers<[1], [0], [0], [1], [0, 0, 1, 1], [], []>} : vector<8x4xbf16>, vector<4x64xbf16>, vector<8x64xf32> -> vector<8x64xf32>
      %592 = arith.addf %584, %591 : vector<8x64xf32>
      %c2_i32 = arith.constant 2 : i32
      %593 = arith.addi %367, %c2_i32 : i32
      %c0_574 = arith.constant 0 : index
      %594 = arith.index_cast %593 : i32 to index
      %c0_575 = arith.constant 0 : index
      %c0_576 = arith.constant 0 : index
      %595 = vector.load %arg1[%c0_574, %594, %c0_575, %c0_576] : memref<4x11x11x4xbf16, #tpu.memory_space<vmem>>, vector<1x1x8x4xbf16>
      %596 = vector.shape_cast %595 : vector<1x1x8x4xbf16> to vector<8x4xbf16>
      %c28 = arith.constant 28 : index
      %c0_577 = arith.constant 0 : index
      %c0_578 = arith.constant 0 : index
      %597 = vector.load %arg2[%c28, %c0_577, %c0_578] : memref<49x4x64xbf16, #tpu.memory_space<vmem>>, vector<1x4x64xbf16>
      %598 = vector.shape_cast %597 : vector<1x4x64xbf16> to vector<4x64xbf16>
      %cst_579 = arith.constant dense<0.000000e+00> : vector<8x64xf32>
      %599 = tpu.matmul %596, %598, %cst_579 {dimension_numbers = #tpu.dot_dimension_numbers<[1], [0], [0], [1], [0, 0, 1, 1], [], []>} : vector<8x4xbf16>, vector<4x64xbf16>, vector<8x64xf32> -> vector<8x64xf32>
      %600 = arith.addf %592, %599 : vector<8x64xf32>
      %c2_i32_580 = arith.constant 2 : i32
      %601 = arith.addi %367, %c2_i32_580 : i32
      %c1_581 = arith.constant 1 : index
      %602 = arith.index_cast %601 : i32 to index
      %c0_582 = arith.constant 0 : index
      %c0_583 = arith.constant 0 : index
      %603 = vector.load %arg1[%c1_581, %602, %c0_582, %c0_583] : memref<4x11x11x4xbf16, #tpu.memory_space<vmem>>, vector<1x1x8x4xbf16>
      %604 = vector.shape_cast %603 : vector<1x1x8x4xbf16> to vector<8x4xbf16>
      %c29 = arith.constant 29 : index
      %c0_584 = arith.constant 0 : index
      %c0_585 = arith.constant 0 : index
      %605 = vector.load %arg2[%c29, %c0_584, %c0_585] : memref<49x4x64xbf16, #tpu.memory_space<vmem>>, vector<1x4x64xbf16>
      %606 = vector.shape_cast %605 : vector<1x4x64xbf16> to vector<4x64xbf16>
      %cst_586 = arith.constant dense<0.000000e+00> : vector<8x64xf32>
      %607 = tpu.matmul %604, %606, %cst_586 {dimension_numbers = #tpu.dot_dimension_numbers<[1], [0], [0], [1], [0, 0, 1, 1], [], []>} : vector<8x4xbf16>, vector<4x64xbf16>, vector<8x64xf32> -> vector<8x64xf32>
      %608 = arith.addf %600, %607 : vector<8x64xf32>
      %c2_i32_587 = arith.constant 2 : i32
      %609 = arith.addi %367, %c2_i32_587 : i32
      %c0_588 = arith.constant 0 : index
      %610 = arith.index_cast %609 : i32 to index
      %c1_589 = arith.constant 1 : index
      %c0_590 = arith.constant 0 : index
      %611 = vector.load %arg1[%c0_588, %610, %c1_589, %c0_590] : memref<4x11x11x4xbf16, #tpu.memory_space<vmem>>, vector<1x1x8x4xbf16>
      %612 = vector.shape_cast %611 : vector<1x1x8x4xbf16> to vector<8x4xbf16>
      %c30 = arith.constant 30 : index
      %c0_591 = arith.constant 0 : index
      %c0_592 = arith.constant 0 : index
      %613 = vector.load %arg2[%c30, %c0_591, %c0_592] : memref<49x4x64xbf16, #tpu.memory_space<vmem>>, vector<1x4x64xbf16>
      %614 = vector.shape_cast %613 : vector<1x4x64xbf16> to vector<4x64xbf16>
      %cst_593 = arith.constant dense<0.000000e+00> : vector<8x64xf32>
      %615 = tpu.matmul %612, %614, %cst_593 {dimension_numbers = #tpu.dot_dimension_numbers<[1], [0], [0], [1], [0, 0, 1, 1], [], []>} : vector<8x4xbf16>, vector<4x64xbf16>, vector<8x64xf32> -> vector<8x64xf32>
      %616 = arith.addf %608, %615 : vector<8x64xf32>
      %c2_i32_594 = arith.constant 2 : i32
      %617 = arith.addi %367, %c2_i32_594 : i32
      %c1_595 = arith.constant 1 : index
      %618 = arith.index_cast %617 : i32 to index
      %c1_596 = arith.constant 1 : index
      %c0_597 = arith.constant 0 : index
      %619 = vector.load %arg1[%c1_595, %618, %c1_596, %c0_597] : memref<4x11x11x4xbf16, #tpu.memory_space<vmem>>, vector<1x1x8x4xbf16>
      %620 = vector.shape_cast %619 : vector<1x1x8x4xbf16> to vector<8x4xbf16>
      %c31 = arith.constant 31 : index
      %c0_598 = arith.constant 0 : index
      %c0_599 = arith.constant 0 : index
      %621 = vector.load %arg2[%c31, %c0_598, %c0_599] : memref<49x4x64xbf16, #tpu.memory_space<vmem>>, vector<1x4x64xbf16>
      %622 = vector.shape_cast %621 : vector<1x4x64xbf16> to vector<4x64xbf16>
      %cst_600 = arith.constant dense<0.000000e+00> : vector<8x64xf32>
      %623 = tpu.matmul %620, %622, %cst_600 {dimension_numbers = #tpu.dot_dimension_numbers<[1], [0], [0], [1], [0, 0, 1, 1], [], []>} : vector<8x4xbf16>, vector<4x64xbf16>, vector<8x64xf32> -> vector<8x64xf32>
      %624 = arith.addf %616, %623 : vector<8x64xf32>
      %c2_i32_601 = arith.constant 2 : i32
      %625 = arith.addi %367, %c2_i32_601 : i32
      %c0_602 = arith.constant 0 : index
      %626 = arith.index_cast %625 : i32 to index
      %c2_603 = arith.constant 2 : index
      %c0_604 = arith.constant 0 : index
      %627 = vector.load %arg1[%c0_602, %626, %c2_603, %c0_604] : memref<4x11x11x4xbf16, #tpu.memory_space<vmem>>, vector<1x1x8x4xbf16>
      %628 = vector.shape_cast %627 : vector<1x1x8x4xbf16> to vector<8x4xbf16>
      %c32 = arith.constant 32 : index
      %c0_605 = arith.constant 0 : index
      %c0_606 = arith.constant 0 : index
      %629 = vector.load %arg2[%c32, %c0_605, %c0_606] : memref<49x4x64xbf16, #tpu.memory_space<vmem>>, vector<1x4x64xbf16>
      %630 = vector.shape_cast %629 : vector<1x4x64xbf16> to vector<4x64xbf16>
      %cst_607 = arith.constant dense<0.000000e+00> : vector<8x64xf32>
      %631 = tpu.matmul %628, %630, %cst_607 {dimension_numbers = #tpu.dot_dimension_numbers<[1], [0], [0], [1], [0, 0, 1, 1], [], []>} : vector<8x4xbf16>, vector<4x64xbf16>, vector<8x64xf32> -> vector<8x64xf32>
      %632 = arith.addf %624, %631 : vector<8x64xf32>
      %c2_i32_608 = arith.constant 2 : i32
      %633 = arith.addi %367, %c2_i32_608 : i32
      %c1_609 = arith.constant 1 : index
      %634 = arith.index_cast %633 : i32 to index
      %c2_610 = arith.constant 2 : index
      %c0_611 = arith.constant 0 : index
      %635 = vector.load %arg1[%c1_609, %634, %c2_610, %c0_611] : memref<4x11x11x4xbf16, #tpu.memory_space<vmem>>, vector<1x1x8x4xbf16>
      %636 = vector.shape_cast %635 : vector<1x1x8x4xbf16> to vector<8x4xbf16>
      %c33 = arith.constant 33 : index
      %c0_612 = arith.constant 0 : index
      %c0_613 = arith.constant 0 : index
      %637 = vector.load %arg2[%c33, %c0_612, %c0_613] : memref<49x4x64xbf16, #tpu.memory_space<vmem>>, vector<1x4x64xbf16>
      %638 = vector.shape_cast %637 : vector<1x4x64xbf16> to vector<4x64xbf16>
      %cst_614 = arith.constant dense<0.000000e+00> : vector<8x64xf32>
      %639 = tpu.matmul %636, %638, %cst_614 {dimension_numbers = #tpu.dot_dimension_numbers<[1], [0], [0], [1], [0, 0, 1, 1], [], []>} : vector<8x4xbf16>, vector<4x64xbf16>, vector<8x64xf32> -> vector<8x64xf32>
      %640 = arith.addf %632, %639 : vector<8x64xf32>
      %c2_i32_615 = arith.constant 2 : i32
      %641 = arith.addi %367, %c2_i32_615 : i32
      %c0_616 = arith.constant 0 : index
      %642 = arith.index_cast %641 : i32 to index
      %c3_617 = arith.constant 3 : index
      %c0_618 = arith.constant 0 : index
      %643 = vector.load %arg1[%c0_616, %642, %c3_617, %c0_618] : memref<4x11x11x4xbf16, #tpu.memory_space<vmem>>, vector<1x1x8x4xbf16>
      %644 = vector.shape_cast %643 : vector<1x1x8x4xbf16> to vector<8x4xbf16>
      %c34 = arith.constant 34 : index
      %c0_619 = arith.constant 0 : index
      %c0_620 = arith.constant 0 : index
      %645 = vector.load %arg2[%c34, %c0_619, %c0_620] : memref<49x4x64xbf16, #tpu.memory_space<vmem>>, vector<1x4x64xbf16>
      %646 = vector.shape_cast %645 : vector<1x4x64xbf16> to vector<4x64xbf16>
      %cst_621 = arith.constant dense<0.000000e+00> : vector<8x64xf32>
      %647 = tpu.matmul %644, %646, %cst_621 {dimension_numbers = #tpu.dot_dimension_numbers<[1], [0], [0], [1], [0, 0, 1, 1], [], []>} : vector<8x4xbf16>, vector<4x64xbf16>, vector<8x64xf32> -> vector<8x64xf32>
      %648 = arith.addf %640, %647 : vector<8x64xf32>
      %c2_i32_622 = arith.constant 2 : i32
      %649 = arith.addi %367, %c2_i32_622 : i32
      %c2_623 = arith.constant 2 : index
      %650 = arith.index_cast %649 : i32 to index
      %c0_624 = arith.constant 0 : index
      %c0_625 = arith.constant 0 : index
      %651 = vector.load %arg1[%c2_623, %650, %c0_624, %c0_625] : memref<4x11x11x4xbf16, #tpu.memory_space<vmem>>, vector<1x1x8x4xbf16>
      %652 = vector.shape_cast %651 : vector<1x1x8x4xbf16> to vector<8x4xbf16>
      %c35 = arith.constant 35 : index
      %c0_626 = arith.constant 0 : index
      %c0_627 = arith.constant 0 : index
      %653 = vector.load %arg2[%c35, %c0_626, %c0_627] : memref<49x4x64xbf16, #tpu.memory_space<vmem>>, vector<1x4x64xbf16>
      %654 = vector.shape_cast %653 : vector<1x4x64xbf16> to vector<4x64xbf16>
      %cst_628 = arith.constant dense<0.000000e+00> : vector<8x64xf32>
      %655 = tpu.matmul %652, %654, %cst_628 {dimension_numbers = #tpu.dot_dimension_numbers<[1], [0], [0], [1], [0, 0, 1, 1], [], []>} : vector<8x4xbf16>, vector<4x64xbf16>, vector<8x64xf32> -> vector<8x64xf32>
      %656 = arith.addf %648, %655 : vector<8x64xf32>
      %c2_i32_629 = arith.constant 2 : i32
      %657 = arith.addi %367, %c2_i32_629 : i32
      %c3_630 = arith.constant 3 : index
      %658 = arith.index_cast %657 : i32 to index
      %c0_631 = arith.constant 0 : index
      %c0_632 = arith.constant 0 : index
      %659 = vector.load %arg1[%c3_630, %658, %c0_631, %c0_632] : memref<4x11x11x4xbf16, #tpu.memory_space<vmem>>, vector<1x1x8x4xbf16>
      %660 = vector.shape_cast %659 : vector<1x1x8x4xbf16> to vector<8x4xbf16>
      %c36 = arith.constant 36 : index
      %c0_633 = arith.constant 0 : index
      %c0_634 = arith.constant 0 : index
      %661 = vector.load %arg2[%c36, %c0_633, %c0_634] : memref<49x4x64xbf16, #tpu.memory_space<vmem>>, vector<1x4x64xbf16>
      %662 = vector.shape_cast %661 : vector<1x4x64xbf16> to vector<4x64xbf16>
      %cst_635 = arith.constant dense<0.000000e+00> : vector<8x64xf32>
      %663 = tpu.matmul %660, %662, %cst_635 {dimension_numbers = #tpu.dot_dimension_numbers<[1], [0], [0], [1], [0, 0, 1, 1], [], []>} : vector<8x4xbf16>, vector<4x64xbf16>, vector<8x64xf32> -> vector<8x64xf32>
      %664 = arith.addf %656, %663 : vector<8x64xf32>
      %c2_i32_636 = arith.constant 2 : i32
      %665 = arith.addi %367, %c2_i32_636 : i32
      %c2_637 = arith.constant 2 : index
      %666 = arith.index_cast %665 : i32 to index
      %c1_638 = arith.constant 1 : index
      %c0_639 = arith.constant 0 : index
      %667 = vector.load %arg1[%c2_637, %666, %c1_638, %c0_639] : memref<4x11x11x4xbf16, #tpu.memory_space<vmem>>, vector<1x1x8x4xbf16>
      %668 = vector.shape_cast %667 : vector<1x1x8x4xbf16> to vector<8x4xbf16>
      %c37 = arith.constant 37 : index
      %c0_640 = arith.constant 0 : index
      %c0_641 = arith.constant 0 : index
      %669 = vector.load %arg2[%c37, %c0_640, %c0_641] : memref<49x4x64xbf16, #tpu.memory_space<vmem>>, vector<1x4x64xbf16>
      %670 = vector.shape_cast %669 : vector<1x4x64xbf16> to vector<4x64xbf16>
      %cst_642 = arith.constant dense<0.000000e+00> : vector<8x64xf32>
      %671 = tpu.matmul %668, %670, %cst_642 {dimension_numbers = #tpu.dot_dimension_numbers<[1], [0], [0], [1], [0, 0, 1, 1], [], []>} : vector<8x4xbf16>, vector<4x64xbf16>, vector<8x64xf32> -> vector<8x64xf32>
      %672 = arith.addf %664, %671 : vector<8x64xf32>
      %c2_i32_643 = arith.constant 2 : i32
      %673 = arith.addi %367, %c2_i32_643 : i32
      %c3_644 = arith.constant 3 : index
      %674 = arith.index_cast %673 : i32 to index
      %c1_645 = arith.constant 1 : index
      %c0_646 = arith.constant 0 : index
      %675 = vector.load %arg1[%c3_644, %674, %c1_645, %c0_646] : memref<4x11x11x4xbf16, #tpu.memory_space<vmem>>, vector<1x1x8x4xbf16>
      %676 = vector.shape_cast %675 : vector<1x1x8x4xbf16> to vector<8x4xbf16>
      %c38 = arith.constant 38 : index
      %c0_647 = arith.constant 0 : index
      %c0_648 = arith.constant 0 : index
      %677 = vector.load %arg2[%c38, %c0_647, %c0_648] : memref<49x4x64xbf16, #tpu.memory_space<vmem>>, vector<1x4x64xbf16>
      %678 = vector.shape_cast %677 : vector<1x4x64xbf16> to vector<4x64xbf16>
      %cst_649 = arith.constant dense<0.000000e+00> : vector<8x64xf32>
      %679 = tpu.matmul %676, %678, %cst_649 {dimension_numbers = #tpu.dot_dimension_numbers<[1], [0], [0], [1], [0, 0, 1, 1], [], []>} : vector<8x4xbf16>, vector<4x64xbf16>, vector<8x64xf32> -> vector<8x64xf32>
      %680 = arith.addf %672, %679 : vector<8x64xf32>
      %c2_i32_650 = arith.constant 2 : i32
      %681 = arith.addi %367, %c2_i32_650 : i32
      %c2_651 = arith.constant 2 : index
      %682 = arith.index_cast %681 : i32 to index
      %c2_652 = arith.constant 2 : index
      %c0_653 = arith.constant 0 : index
      %683 = vector.load %arg1[%c2_651, %682, %c2_652, %c0_653] : memref<4x11x11x4xbf16, #tpu.memory_space<vmem>>, vector<1x1x8x4xbf16>
      %684 = vector.shape_cast %683 : vector<1x1x8x4xbf16> to vector<8x4xbf16>
      %c39 = arith.constant 39 : index
      %c0_654 = arith.constant 0 : index
      %c0_655 = arith.constant 0 : index
      %685 = vector.load %arg2[%c39, %c0_654, %c0_655] : memref<49x4x64xbf16, #tpu.memory_space<vmem>>, vector<1x4x64xbf16>
      %686 = vector.shape_cast %685 : vector<1x4x64xbf16> to vector<4x64xbf16>
      %cst_656 = arith.constant dense<0.000000e+00> : vector<8x64xf32>
      %687 = tpu.matmul %684, %686, %cst_656 {dimension_numbers = #tpu.dot_dimension_numbers<[1], [0], [0], [1], [0, 0, 1, 1], [], []>} : vector<8x4xbf16>, vector<4x64xbf16>, vector<8x64xf32> -> vector<8x64xf32>
      %688 = arith.addf %680, %687 : vector<8x64xf32>
      %c2_i32_657 = arith.constant 2 : i32
      %689 = arith.addi %367, %c2_i32_657 : i32
      %c3_658 = arith.constant 3 : index
      %690 = arith.index_cast %689 : i32 to index
      %c2_659 = arith.constant 2 : index
      %c0_660 = arith.constant 0 : index
      %691 = vector.load %arg1[%c3_658, %690, %c2_659, %c0_660] : memref<4x11x11x4xbf16, #tpu.memory_space<vmem>>, vector<1x1x8x4xbf16>
      %692 = vector.shape_cast %691 : vector<1x1x8x4xbf16> to vector<8x4xbf16>
      %c40 = arith.constant 40 : index
      %c0_661 = arith.constant 0 : index
      %c0_662 = arith.constant 0 : index
      %693 = vector.load %arg2[%c40, %c0_661, %c0_662] : memref<49x4x64xbf16, #tpu.memory_space<vmem>>, vector<1x4x64xbf16>
      %694 = vector.shape_cast %693 : vector<1x4x64xbf16> to vector<4x64xbf16>
      %cst_663 = arith.constant dense<0.000000e+00> : vector<8x64xf32>
      %695 = tpu.matmul %692, %694, %cst_663 {dimension_numbers = #tpu.dot_dimension_numbers<[1], [0], [0], [1], [0, 0, 1, 1], [], []>} : vector<8x4xbf16>, vector<4x64xbf16>, vector<8x64xf32> -> vector<8x64xf32>
      %696 = arith.addf %688, %695 : vector<8x64xf32>
      %c2_i32_664 = arith.constant 2 : i32
      %697 = arith.addi %367, %c2_i32_664 : i32
      %c2_665 = arith.constant 2 : index
      %698 = arith.index_cast %697 : i32 to index
      %c3_666 = arith.constant 3 : index
      %c0_667 = arith.constant 0 : index
      %699 = vector.load %arg1[%c2_665, %698, %c3_666, %c0_667] : memref<4x11x11x4xbf16, #tpu.memory_space<vmem>>, vector<1x1x8x4xbf16>
      %700 = vector.shape_cast %699 : vector<1x1x8x4xbf16> to vector<8x4xbf16>
      %c41 = arith.constant 41 : index
      %c0_668 = arith.constant 0 : index
      %c0_669 = arith.constant 0 : index
      %701 = vector.load %arg2[%c41, %c0_668, %c0_669] : memref<49x4x64xbf16, #tpu.memory_space<vmem>>, vector<1x4x64xbf16>
      %702 = vector.shape_cast %701 : vector<1x4x64xbf16> to vector<4x64xbf16>
      %cst_670 = arith.constant dense<0.000000e+00> : vector<8x64xf32>
      %703 = tpu.matmul %700, %702, %cst_670 {dimension_numbers = #tpu.dot_dimension_numbers<[1], [0], [0], [1], [0, 0, 1, 1], [], []>} : vector<8x4xbf16>, vector<4x64xbf16>, vector<8x64xf32> -> vector<8x64xf32>
      %704 = arith.addf %696, %703 : vector<8x64xf32>
      %c3_i32 = arith.constant 3 : i32
      %705 = arith.addi %367, %c3_i32 : i32
      %c0_671 = arith.constant 0 : index
      %706 = arith.index_cast %705 : i32 to index
      %c0_672 = arith.constant 0 : index
      %c0_673 = arith.constant 0 : index
      %707 = vector.load %arg1[%c0_671, %706, %c0_672, %c0_673] : memref<4x11x11x4xbf16, #tpu.memory_space<vmem>>, vector<1x1x8x4xbf16>
      %708 = vector.shape_cast %707 : vector<1x1x8x4xbf16> to vector<8x4xbf16>
      %c42 = arith.constant 42 : index
      %c0_674 = arith.constant 0 : index
      %c0_675 = arith.constant 0 : index
      %709 = vector.load %arg2[%c42, %c0_674, %c0_675] : memref<49x4x64xbf16, #tpu.memory_space<vmem>>, vector<1x4x64xbf16>
      %710 = vector.shape_cast %709 : vector<1x4x64xbf16> to vector<4x64xbf16>
      %cst_676 = arith.constant dense<0.000000e+00> : vector<8x64xf32>
      %711 = tpu.matmul %708, %710, %cst_676 {dimension_numbers = #tpu.dot_dimension_numbers<[1], [0], [0], [1], [0, 0, 1, 1], [], []>} : vector<8x4xbf16>, vector<4x64xbf16>, vector<8x64xf32> -> vector<8x64xf32>
      %712 = arith.addf %704, %711 : vector<8x64xf32>
      %c3_i32_677 = arith.constant 3 : i32
      %713 = arith.addi %367, %c3_i32_677 : i32
      %c1_678 = arith.constant 1 : index
      %714 = arith.index_cast %713 : i32 to index
      %c0_679 = arith.constant 0 : index
      %c0_680 = arith.constant 0 : index
      %715 = vector.load %arg1[%c1_678, %714, %c0_679, %c0_680] : memref<4x11x11x4xbf16, #tpu.memory_space<vmem>>, vector<1x1x8x4xbf16>
      %716 = vector.shape_cast %715 : vector<1x1x8x4xbf16> to vector<8x4xbf16>
      %c43 = arith.constant 43 : index
      %c0_681 = arith.constant 0 : index
      %c0_682 = arith.constant 0 : index
      %717 = vector.load %arg2[%c43, %c0_681, %c0_682] : memref<49x4x64xbf16, #tpu.memory_space<vmem>>, vector<1x4x64xbf16>
      %718 = vector.shape_cast %717 : vector<1x4x64xbf16> to vector<4x64xbf16>
      %cst_683 = arith.constant dense<0.000000e+00> : vector<8x64xf32>
      %719 = tpu.matmul %716, %718, %cst_683 {dimension_numbers = #tpu.dot_dimension_numbers<[1], [0], [0], [1], [0, 0, 1, 1], [], []>} : vector<8x4xbf16>, vector<4x64xbf16>, vector<8x64xf32> -> vector<8x64xf32>
      %720 = arith.addf %712, %719 : vector<8x64xf32>
      %c3_i32_684 = arith.constant 3 : i32
      %721 = arith.addi %367, %c3_i32_684 : i32
      %c0_685 = arith.constant 0 : index
      %722 = arith.index_cast %721 : i32 to index
      %c1_686 = arith.constant 1 : index
      %c0_687 = arith.constant 0 : index
      %723 = vector.load %arg1[%c0_685, %722, %c1_686, %c0_687] : memref<4x11x11x4xbf16, #tpu.memory_space<vmem>>, vector<1x1x8x4xbf16>
      %724 = vector.shape_cast %723 : vector<1x1x8x4xbf16> to vector<8x4xbf16>
      %c44 = arith.constant 44 : index
      %c0_688 = arith.constant 0 : index
      %c0_689 = arith.constant 0 : index
      %725 = vector.load %arg2[%c44, %c0_688, %c0_689] : memref<49x4x64xbf16, #tpu.memory_space<vmem>>, vector<1x4x64xbf16>
      %726 = vector.shape_cast %725 : vector<1x4x64xbf16> to vector<4x64xbf16>
      %cst_690 = arith.constant dense<0.000000e+00> : vector<8x64xf32>
      %727 = tpu.matmul %724, %726, %cst_690 {dimension_numbers = #tpu.dot_dimension_numbers<[1], [0], [0], [1], [0, 0, 1, 1], [], []>} : vector<8x4xbf16>, vector<4x64xbf16>, vector<8x64xf32> -> vector<8x64xf32>
      %728 = arith.addf %720, %727 : vector<8x64xf32>
      %c3_i32_691 = arith.constant 3 : i32
      %729 = arith.addi %367, %c3_i32_691 : i32
      %c1_692 = arith.constant 1 : index
      %730 = arith.index_cast %729 : i32 to index
      %c1_693 = arith.constant 1 : index
      %c0_694 = arith.constant 0 : index
      %731 = vector.load %arg1[%c1_692, %730, %c1_693, %c0_694] : memref<4x11x11x4xbf16, #tpu.memory_space<vmem>>, vector<1x1x8x4xbf16>
      %732 = vector.shape_cast %731 : vector<1x1x8x4xbf16> to vector<8x4xbf16>
      %c45 = arith.constant 45 : index
      %c0_695 = arith.constant 0 : index
      %c0_696 = arith.constant 0 : index
      %733 = vector.load %arg2[%c45, %c0_695, %c0_696] : memref<49x4x64xbf16, #tpu.memory_space<vmem>>, vector<1x4x64xbf16>
      %734 = vector.shape_cast %733 : vector<1x4x64xbf16> to vector<4x64xbf16>
      %cst_697 = arith.constant dense<0.000000e+00> : vector<8x64xf32>
      %735 = tpu.matmul %732, %734, %cst_697 {dimension_numbers = #tpu.dot_dimension_numbers<[1], [0], [0], [1], [0, 0, 1, 1], [], []>} : vector<8x4xbf16>, vector<4x64xbf16>, vector<8x64xf32> -> vector<8x64xf32>
      %736 = arith.addf %728, %735 : vector<8x64xf32>
      %c3_i32_698 = arith.constant 3 : i32
      %737 = arith.addi %367, %c3_i32_698 : i32
      %c0_699 = arith.constant 0 : index
      %738 = arith.index_cast %737 : i32 to index
      %c2_700 = arith.constant 2 : index
      %c0_701 = arith.constant 0 : index
      %739 = vector.load %arg1[%c0_699, %738, %c2_700, %c0_701] : memref<4x11x11x4xbf16, #tpu.memory_space<vmem>>, vector<1x1x8x4xbf16>
      %740 = vector.shape_cast %739 : vector<1x1x8x4xbf16> to vector<8x4xbf16>
      %c46 = arith.constant 46 : index
      %c0_702 = arith.constant 0 : index
      %c0_703 = arith.constant 0 : index
      %741 = vector.load %arg2[%c46, %c0_702, %c0_703] : memref<49x4x64xbf16, #tpu.memory_space<vmem>>, vector<1x4x64xbf16>
      %742 = vector.shape_cast %741 : vector<1x4x64xbf16> to vector<4x64xbf16>
      %cst_704 = arith.constant dense<0.000000e+00> : vector<8x64xf32>
      %743 = tpu.matmul %740, %742, %cst_704 {dimension_numbers = #tpu.dot_dimension_numbers<[1], [0], [0], [1], [0, 0, 1, 1], [], []>} : vector<8x4xbf16>, vector<4x64xbf16>, vector<8x64xf32> -> vector<8x64xf32>
      %744 = arith.addf %736, %743 : vector<8x64xf32>
      %c3_i32_705 = arith.constant 3 : i32
      %745 = arith.addi %367, %c3_i32_705 : i32
      %c1_706 = arith.constant 1 : index
      %746 = arith.index_cast %745 : i32 to index
      %c2_707 = arith.constant 2 : index
      %c0_708 = arith.constant 0 : index
      %747 = vector.load %arg1[%c1_706, %746, %c2_707, %c0_708] : memref<4x11x11x4xbf16, #tpu.memory_space<vmem>>, vector<1x1x8x4xbf16>
      %748 = vector.shape_cast %747 : vector<1x1x8x4xbf16> to vector<8x4xbf16>
      %c47 = arith.constant 47 : index
      %c0_709 = arith.constant 0 : index
      %c0_710 = arith.constant 0 : index
      %749 = vector.load %arg2[%c47, %c0_709, %c0_710] : memref<49x4x64xbf16, #tpu.memory_space<vmem>>, vector<1x4x64xbf16>
      %750 = vector.shape_cast %749 : vector<1x4x64xbf16> to vector<4x64xbf16>
      %cst_711 = arith.constant dense<0.000000e+00> : vector<8x64xf32>
      %751 = tpu.matmul %748, %750, %cst_711 {dimension_numbers = #tpu.dot_dimension_numbers<[1], [0], [0], [1], [0, 0, 1, 1], [], []>} : vector<8x4xbf16>, vector<4x64xbf16>, vector<8x64xf32> -> vector<8x64xf32>
      %752 = arith.addf %744, %751 : vector<8x64xf32>
      %c3_i32_712 = arith.constant 3 : i32
      %753 = arith.addi %367, %c3_i32_712 : i32
      %c0_713 = arith.constant 0 : index
      %754 = arith.index_cast %753 : i32 to index
      %c3_714 = arith.constant 3 : index
      %c0_715 = arith.constant 0 : index
      %755 = vector.load %arg1[%c0_713, %754, %c3_714, %c0_715] : memref<4x11x11x4xbf16, #tpu.memory_space<vmem>>, vector<1x1x8x4xbf16>
      %756 = vector.shape_cast %755 : vector<1x1x8x4xbf16> to vector<8x4xbf16>
      %c48 = arith.constant 48 : index
      %c0_716 = arith.constant 0 : index
      %c0_717 = arith.constant 0 : index
      %757 = vector.load %arg2[%c48, %c0_716, %c0_717] : memref<49x4x64xbf16, #tpu.memory_space<vmem>>, vector<1x4x64xbf16>
      %758 = vector.shape_cast %757 : vector<1x4x64xbf16> to vector<4x64xbf16>
      %cst_718 = arith.constant dense<0.000000e+00> : vector<8x64xf32>
      %759 = tpu.matmul %756, %758, %cst_718 {dimension_numbers = #tpu.dot_dimension_numbers<[1], [0], [0], [1], [0, 0, 1, 1], [], []>} : vector<8x4xbf16>, vector<4x64xbf16>, vector<8x64xf32> -> vector<8x64xf32>
      %760 = arith.addf %752, %759 : vector<8x64xf32>
      %761 = vector.broadcast %6 : vector<1x64xf32> to vector<8x64xf32>
      %762 = arith.addf %760, %761 : vector<8x64xf32>
      %cst_719 = arith.constant 0.000000e+00 : f32
      %763 = vector.broadcast %cst_719 : f32 to vector<8x64xf32>
      %764 = arith.maximumf %762, %763 : vector<8x64xf32>
      %c1_i32_720 = arith.constant 1 : i32
      %765 = arith.addi %367, %c1_i32_720 : i32
      %766 = arith.index_cast %765 : i32 to index
      %c1_721 = arith.constant 1 : index
      %c0_722 = arith.constant 0 : index
      %767 = vector.load %arg8[%766, %c1_721, %c0_722] : memref<10x10x64xf32, #tpu.memory_space<vmem>>, vector<1x8x64xf32>
      %768 = vector.shape_cast %767 : vector<1x8x64xf32> to vector<8x64xf32>
      %769 = vector.shape_cast %764 : vector<8x64xf32> to vector<1x8x64xf32>
      tpu.vector_store %arg8[%766, %c1_721, %c0_722], %769 {strides = array<i32>} : memref<10x10x64xf32, #tpu.memory_space<vmem>>, vector<1x8x64xf32>,
    }
    %c8_i32_14 = arith.constant 8 : i32
    %c0_15 = arith.constant 0 : index
    %c0_16 = arith.constant 0 : index
    %c0_17 = arith.constant 0 : index
    %12 = vector.load %arg8[%c0_15, %c0_16, %c0_17] : memref<10x10x64xf32, #tpu.memory_space<vmem>>, vector<1x10x64xf32>
    %13 = vector.shape_cast %12 : vector<1x10x64xf32> to vector<10x64xf32>
    %c1_18 = arith.constant 1 : index
    %c0_19 = arith.constant 0 : index
    %c0_20 = arith.constant 0 : index
    %14 = vector.load %arg8[%c1_18, %c0_19, %c0_20] : memref<10x10x64xf32, #tpu.memory_space<vmem>>, vector<1x10x64xf32>
    %15 = vector.shape_cast %14 : vector<1x10x64xf32> to vector<10x64xf32>
    %16 = arith.maximumf %13, %15 : vector<10x64xf32>
    %c2 = arith.constant 2 : index
    %c0_21 = arith.constant 0 : index
    %c0_22 = arith.constant 0 : index
    %17 = vector.load %arg8[%c2, %c0_21, %c0_22] : memref<10x10x64xf32, #tpu.memory_space<vmem>>, vector<1x10x64xf32>
    %18 = vector.shape_cast %17 : vector<1x10x64xf32> to vector<10x64xf32>
    %19 = arith.maximumf %16, %18 : vector<10x64xf32>
    %c0_23 = arith.constant 0 : index
    %c0_24 = arith.constant 0 : index
    %20 = vector.load %arg9[%c0_23, %c0_24] : memref<10x64xf32, #tpu.memory_space<vmem>>, vector<10x64xf32>
    tpu.vector_store %arg9[%c0_23, %c0_24], %19 {strides = array<i32>} : memref<10x64xf32, #tpu.memory_space<vmem>>, vector<10x64xf32>,
    %c0_25 = arith.constant 0 : index
    %c0_26 = arith.constant 0 : index
    %21 = tpu.strided_load %arg9[%c0_25, %c0_26] {strides = array<i32: 2, 1>} : memref<10x64xf32, #tpu.memory_space<vmem>>, vector<4x64xf32>
    %c1_27 = arith.constant 1 : index
    %c0_28 = arith.constant 0 : index
    %22 = tpu.strided_load %arg9[%c1_27, %c0_28] {strides = array<i32: 2, 1>} : memref<10x64xf32, #tpu.memory_space<vmem>>, vector<4x64xf32>
    %23 = arith.maximumf %21, %22 : vector<4x64xf32>
    %c2_29 = arith.constant 2 : index
    %c0_30 = arith.constant 0 : index
    %24 = tpu.strided_load %arg9[%c2_29, %c0_30] {strides = array<i32: 2, 1>} : memref<10x64xf32, #tpu.memory_space<vmem>>, vector<4x64xf32>
    %25 = arith.maximumf %23, %24 : vector<4x64xf32>
    %c0_31 = arith.constant 0 : index
    %c0_32 = arith.constant 0 : index
    %26 = vector.load %arg10[%c0_31, %c0_32] : memref<16x64xf32, #tpu.memory_space<vmem>>, vector<4x64xf32>
    tpu.vector_store %arg10[%c0_31, %c0_32], %25 {strides = array<i32>} : memref<16x64xf32, #tpu.memory_space<vmem>>, vector<4x64xf32>,
    %c2_33 = arith.constant 2 : index
    %c0_34 = arith.constant 0 : index
    %c0_35 = arith.constant 0 : index
    %27 = vector.load %arg8[%c2_33, %c0_34, %c0_35] : memref<10x10x64xf32, #tpu.memory_space<vmem>>, vector<1x10x64xf32>
    %28 = vector.shape_cast %27 : vector<1x10x64xf32> to vector<10x64xf32>
    %c3 = arith.constant 3 : index
    %c0_36 = arith.constant 0 : index
    %c0_37 = arith.constant 0 : index
    %29 = vector.load %arg8[%c3, %c0_36, %c0_37] : memref<10x10x64xf32, #tpu.memory_space<vmem>>, vector<1x10x64xf32>
    %30 = vector.shape_cast %29 : vector<1x10x64xf32> to vector<10x64xf32>
    %31 = arith.maximumf %28, %30 : vector<10x64xf32>
    %c4 = arith.constant 4 : index
    %c0_38 = arith.constant 0 : index
    %c0_39 = arith.constant 0 : index
    %32 = vector.load %arg8[%c4, %c0_38, %c0_39] : memref<10x10x64xf32, #tpu.memory_space<vmem>>, vector<1x10x64xf32>
    %33 = vector.shape_cast %32 : vector<1x10x64xf32> to vector<10x64xf32>
    %34 = arith.maximumf %31, %33 : vector<10x64xf32>
    %c0_40 = arith.constant 0 : index
    %c0_41 = arith.constant 0 : index
    %35 = vector.load %arg9[%c0_40, %c0_41] : memref<10x64xf32, #tpu.memory_space<vmem>>, vector<10x64xf32>
    tpu.vector_store %arg9[%c0_40, %c0_41], %34 {strides = array<i32>} : memref<10x64xf32, #tpu.memory_space<vmem>>, vector<10x64xf32>,
    %c0_42 = arith.constant 0 : index
    %c0_43 = arith.constant 0 : index
    %36 = tpu.strided_load %arg9[%c0_42, %c0_43] {strides = array<i32: 2, 1>} : memref<10x64xf32, #tpu.memory_space<vmem>>, vector<4x64xf32>
    %c1_44 = arith.constant 1 : index
    %c0_45 = arith.constant 0 : index
    %37 = tpu.strided_load %arg9[%c1_44, %c0_45] {strides = array<i32: 2, 1>} : memref<10x64xf32, #tpu.memory_space<vmem>>, vector<4x64xf32>
    %38 = arith.maximumf %36, %37 : vector<4x64xf32>
    %c2_46 = arith.constant 2 : index
    %c0_47 = arith.constant 0 : index
    %39 = tpu.strided_load %arg9[%c2_46, %c0_47] {strides = array<i32: 2, 1>} : memref<10x64xf32, #tpu.memory_space<vmem>>, vector<4x64xf32>
    %40 = arith.maximumf %38, %39 : vector<4x64xf32>
    %c4_48 = arith.constant 4 : index
    %c0_49 = arith.constant 0 : index
    %41 = vector.load %arg10[%c4_48, %c0_49] : memref<16x64xf32, #tpu.memory_space<vmem>>, vector<4x64xf32>
    tpu.vector_store %arg10[%c4_48, %c0_49], %40 {strides = array<i32>} : memref<16x64xf32, #tpu.memory_space<vmem>>, vector<4x64xf32>,
    %c4_50 = arith.constant 4 : index
    %c0_51 = arith.constant 0 : index
    %c0_52 = arith.constant 0 : index
    %42 = vector.load %arg8[%c4_50, %c0_51, %c0_52] : memref<10x10x64xf32, #tpu.memory_space<vmem>>, vector<1x10x64xf32>
    %43 = vector.shape_cast %42 : vector<1x10x64xf32> to vector<10x64xf32>
    %c5 = arith.constant 5 : index
    %c0_53 = arith.constant 0 : index
    %c0_54 = arith.constant 0 : index
    %44 = vector.load %arg8[%c5, %c0_53, %c0_54] : memref<10x10x64xf32, #tpu.memory_space<vmem>>, vector<1x10x64xf32>
    %45 = vector.shape_cast %44 : vector<1x10x64xf32> to vector<10x64xf32>
    %46 = arith.maximumf %43, %45 : vector<10x64xf32>
    %c6 = arith.constant 6 : index
    %c0_55 = arith.constant 0 : index
    %c0_56 = arith.constant 0 : index
    %47 = vector.load %arg8[%c6, %c0_55, %c0_56] : memref<10x10x64xf32, #tpu.memory_space<vmem>>, vector<1x10x64xf32>
    %48 = vector.shape_cast %47 : vector<1x10x64xf32> to vector<10x64xf32>
    %49 = arith.maximumf %46, %48 : vector<10x64xf32>
    %c0_57 = arith.constant 0 : index
    %c0_58 = arith.constant 0 : index
    %50 = vector.load %arg9[%c0_57, %c0_58] : memref<10x64xf32, #tpu.memory_space<vmem>>, vector<10x64xf32>
    tpu.vector_store %arg9[%c0_57, %c0_58], %49 {strides = array<i32>} : memref<10x64xf32, #tpu.memory_space<vmem>>, vector<10x64xf32>,
    %c0_59 = arith.constant 0 : index
    %c0_60 = arith.constant 0 : index
    %51 = tpu.strided_load %arg9[%c0_59, %c0_60] {strides = array<i32: 2, 1>} : memref<10x64xf32, #tpu.memory_space<vmem>>, vector<4x64xf32>
    %c1_61 = arith.constant 1 : index
    %c0_62 = arith.constant 0 : index
    %52 = tpu.strided_load %arg9[%c1_61, %c0_62] {strides = array<i32: 2, 1>} : memref<10x64xf32, #tpu.memory_space<vmem>>, vector<4x64xf32>
    %53 = arith.maximumf %51, %52 : vector<4x64xf32>
    %c2_63 = arith.constant 2 : index
    %c0_64 = arith.constant 0 : index
    %54 = tpu.strided_load %arg9[%c2_63, %c0_64] {strides = array<i32: 2, 1>} : memref<10x64xf32, #tpu.memory_space<vmem>>, vector<4x64xf32>
    %55 = arith.maximumf %53, %54 : vector<4x64xf32>
    %c8 = arith.constant 8 : index
    %c0_65 = arith.constant 0 : index
    %56 = vector.load %arg10[%c8, %c0_65] : memref<16x64xf32, #tpu.memory_space<vmem>>, vector<4x64xf32>
    tpu.vector_store %arg10[%c8, %c0_65], %55 {strides = array<i32>} : memref<16x64xf32, #tpu.memory_space<vmem>>, vector<4x64xf32>,
    %c6_66 = arith.constant 6 : index
    %c0_67 = arith.constant 0 : index
    %c0_68 = arith.constant 0 : index
    %57 = vector.load %arg8[%c6_66, %c0_67, %c0_68] : memref<10x10x64xf32, #tpu.memory_space<vmem>>, vector<1x10x64xf32>
    %58 = vector.shape_cast %57 : vector<1x10x64xf32> to vector<10x64xf32>
    %c7 = arith.constant 7 : index
    %c0_69 = arith.constant 0 : index
    %c0_70 = arith.constant 0 : index
    %59 = vector.load %arg8[%c7, %c0_69, %c0_70] : memref<10x10x64xf32, #tpu.memory_space<vmem>>, vector<1x10x64xf32>
    %60 = vector.shape_cast %59 : vector<1x10x64xf32> to vector<10x64xf32>
    %61 = arith.maximumf %58, %60 : vector<10x64xf32>
    %c8_71 = arith.constant 8 : index
    %c0_72 = arith.constant 0 : index
    %c0_73 = arith.constant 0 : index
    %62 = vector.load %arg8[%c8_71, %c0_72, %c0_73] : memref<10x10x64xf32, #tpu.memory_space<vmem>>, vector<1x10x64xf32>
    %63 = vector.shape_cast %62 : vector<1x10x64xf32> to vector<10x64xf32>
    %64 = arith.maximumf %61, %63 : vector<10x64xf32>
    %c0_74 = arith.constant 0 : index
    %c0_75 = arith.constant 0 : index
    %65 = vector.load %arg9[%c0_74, %c0_75] : memref<10x64xf32, #tpu.memory_space<vmem>>, vector<10x64xf32>
    tpu.vector_store %arg9[%c0_74, %c0_75], %64 {strides = array<i32>} : memref<10x64xf32, #tpu.memory_space<vmem>>, vector<10x64xf32>,
    %c0_76 = arith.constant 0 : index
    %c0_77 = arith.constant 0 : index
    %66 = tpu.strided_load %arg9[%c0_76, %c0_77] {strides = array<i32: 2, 1>} : memref<10x64xf32, #tpu.memory_space<vmem>>, vector<4x64xf32>
    %c1_78 = arith.constant 1 : index
    %c0_79 = arith.constant 0 : index
    %67 = tpu.strided_load %arg9[%c1_78, %c0_79] {strides = array<i32: 2, 1>} : memref<10x64xf32, #tpu.memory_space<vmem>>, vector<4x64xf32>
    %68 = arith.maximumf %66, %67 : vector<4x64xf32>
    %c2_80 = arith.constant 2 : index
    %c0_81 = arith.constant 0 : index
    %69 = tpu.strided_load %arg9[%c2_80, %c0_81] {strides = array<i32: 2, 1>} : memref<10x64xf32, #tpu.memory_space<vmem>>, vector<4x64xf32>
    %70 = arith.maximumf %68, %69 : vector<4x64xf32>
    %c12 = arith.constant 12 : index
    %c0_82 = arith.constant 0 : index
    %71 = vector.load %arg10[%c12, %c0_82] : memref<16x64xf32, #tpu.memory_space<vmem>>, vector<4x64xf32>
    tpu.vector_store %arg10[%c12, %c0_82], %70 {strides = array<i32>} : memref<16x64xf32, #tpu.memory_space<vmem>>, vector<4x64xf32>,
    %c0_83 = arith.constant 0 : index
    %c0_84 = arith.constant 0 : index
    %72 = vector.load %arg10[%c0_83, %c0_84] : memref<16x64xf32, #tpu.memory_space<vmem>>, vector<16x64xf32>
    %c5_85 = arith.constant 5 : index
    %c0_86 = arith.constant 0 : index
    %73 = vector.load %arg11[%c5_85, %c0_86] : memref<26x64xf32, #tpu.memory_space<vmem>>, vector<16x64xf32>
    tpu.vector_store %arg11[%c5_85, %c0_86], %72 {strides = array<i32>} : memref<26x64xf32, #tpu.memory_space<vmem>>, vector<16x64xf32>,
    %c0_87 = arith.constant 0 : index
    %c0_88 = arith.constant 0 : index
    %74 = vector.load %arg11[%c0_87, %c0_88] : memref<26x64xf32, #tpu.memory_space<vmem>>, vector<16x64xf32>
    %75 = vector.broadcast %8 : vector<16x1xf32> to vector<16x64xf32>
    %76 = arith.mulf %74, %75 : vector<16x64xf32>
    %77 = arith.truncf %76 : vector<16x64xf32> to vector<16x64xbf16>
    %c0_89 = arith.constant 0 : index
    %c0_90 = arith.constant 0 : index
    %c0_91 = arith.constant 0 : index
    %c0_92 = arith.constant 0 : index
    %78 = vector.load %arg4[%c0_89, %c0_90, %c0_91, %c0_92] : memref<4x9x64x64xbf16, #tpu.memory_space<vmem>>, vector<1x1x64x64xbf16>
    %79 = vector.shape_cast %78 : vector<1x1x64x64xbf16> to vector<64x64xbf16>
    %cst_93 = arith.constant dense<0.000000e+00> : vector<16x64xf32>
    %80 = tpu.matmul %77, %79, %cst_93 {dimension_numbers = #tpu.dot_dimension_numbers<[1], [0], [0], [1], [0, 0, 1, 1], [], []>} : vector<16x64xbf16>, vector<64x64xbf16>, vector<16x64xf32> -> vector<16x64xf32>
    %c1_94 = arith.constant 1 : index
    %c0_95 = arith.constant 0 : index
    %81 = vector.load %arg11[%c1_94, %c0_95] : memref<26x64xf32, #tpu.memory_space<vmem>>, vector<16x64xf32>
    %82 = arith.truncf %81 : vector<16x64xf32> to vector<16x64xbf16>
    %c0_96 = arith.constant 0 : index
    %c1_97 = arith.constant 1 : index
    %c0_98 = arith.constant 0 : index
    %c0_99 = arith.constant 0 : index
    %83 = vector.load %arg4[%c0_96, %c1_97, %c0_98, %c0_99] : memref<4x9x64x64xbf16, #tpu.memory_space<vmem>>, vector<1x1x64x64xbf16>
    %84 = vector.shape_cast %83 : vector<1x1x64x64xbf16> to vector<64x64xbf16>
    %cst_100 = arith.constant dense<0.000000e+00> : vector<16x64xf32>
    %85 = tpu.matmul %82, %84, %cst_100 {dimension_numbers = #tpu.dot_dimension_numbers<[1], [0], [0], [1], [0, 0, 1, 1], [], []>} : vector<16x64xbf16>, vector<64x64xbf16>, vector<16x64xf32> -> vector<16x64xf32>
    %86 = arith.addf %80, %85 : vector<16x64xf32>
    %c2_101 = arith.constant 2 : index
    %c0_102 = arith.constant 0 : index
    %87 = vector.load %arg11[%c2_101, %c0_102] : memref<26x64xf32, #tpu.memory_space<vmem>>, vector<16x64xf32>
    %88 = vector.broadcast %10 : vector<16x1xf32> to vector<16x64xf32>
    %89 = arith.mulf %87, %88 : vector<16x64xf32>
    %90 = arith.truncf %89 : vector<16x64xf32> to vector<16x64xbf16>
    %c0_103 = arith.constant 0 : index
    %c2_104 = arith.constant 2 : index
    %c0_105 = arith.constant 0 : index
    %c0_106 = arith.constant 0 : index
    %91 = vector.load %arg4[%c0_103, %c2_104, %c0_105, %c0_106] : memref<4x9x64x64xbf16, #tpu.memory_space<vmem>>, vector<1x1x64x64xbf16>
    %92 = vector.shape_cast %91 : vector<1x1x64x64xbf16> to vector<64x64xbf16>
    %cst_107 = arith.constant dense<0.000000e+00> : vector<16x64xf32>
    %93 = tpu.matmul %90, %92, %cst_107 {dimension_numbers = #tpu.dot_dimension_numbers<[1], [0], [0], [1], [0, 0, 1, 1], [], []>} : vector<16x64xbf16>, vector<64x64xbf16>, vector<16x64xf32> -> vector<16x64xf32>
    %94 = arith.addf %86, %93 : vector<16x64xf32>
    %c4_108 = arith.constant 4 : index
    %c0_109 = arith.constant 0 : index
    %95 = vector.load %arg11[%c4_108, %c0_109] : memref<26x64xf32, #tpu.memory_space<vmem>>, vector<16x64xf32>
    %96 = vector.broadcast %8 : vector<16x1xf32> to vector<16x64xf32>
    %97 = arith.mulf %95, %96 : vector<16x64xf32>
    %98 = arith.truncf %97 : vector<16x64xf32> to vector<16x64xbf16>
    %c0_110 = arith.constant 0 : index
    %c3_111 = arith.constant 3 : index
    %c0_112 = arith.constant 0 : index
    %c0_113 = arith.constant 0 : index
    %99 = vector.load %arg4[%c0_110, %c3_111, %c0_112, %c0_113] : memref<4x9x64x64xbf16, #tpu.memory_space<vmem>>, vector<1x1x64x64xbf16>
    %100 = vector.shape_cast %99 : vector<1x1x64x64xbf16> to vector<64x64xbf16>
    %cst_114 = arith.constant dense<0.000000e+00> : vector<16x64xf32>
    %101 = tpu.matmul %98, %100, %cst_114 {dimension_numbers = #tpu.dot_dimension_numbers<[1], [0], [0], [1], [0, 0, 1, 1], [], []>} : vector<16x64xbf16>, vector<64x64xbf16>, vector<16x64xf32> -> vector<16x64xf32>
    %102 = arith.addf %94, %101 : vector<16x64xf32>
    %c5_115 = arith.constant 5 : index
    %c0_116 = arith.constant 0 : index
    %103 = vector.load %arg11[%c5_115, %c0_116] : memref<26x64xf32, #tpu.memory_space<vmem>>, vector<16x64xf32>
    %104 = arith.truncf %103 : vector<16x64xf32> to vector<16x64xbf16>
    %c0_117 = arith.constant 0 : index
    %c4_118 = arith.constant 4 : index
    %c0_119 = arith.constant 0 : index
    %c0_120 = arith.constant 0 : index
    %105 = vector.load %arg4[%c0_117, %c4_118, %c0_119, %c0_120] : memref<4x9x64x64xbf16, #tpu.memory_space<vmem>>, vector<1x1x64x64xbf16>
    %106 = vector.shape_cast %105 : vector<1x1x64x64xbf16> to vector<64x64xbf16>
    %cst_121 = arith.constant dense<0.000000e+00> : vector<16x64xf32>
    %107 = tpu.matmul %104, %106, %cst_121 {dimension_numbers = #tpu.dot_dimension_numbers<[1], [0], [0], [1], [0, 0, 1, 1], [], []>} : vector<16x64xbf16>, vector<64x64xbf16>, vector<16x64xf32> -> vector<16x64xf32>
    %108 = arith.addf %102, %107 : vector<16x64xf32>
    %c6_122 = arith.constant 6 : index
    %c0_123 = arith.constant 0 : index
    %109 = vector.load %arg11[%c6_122, %c0_123] : memref<26x64xf32, #tpu.memory_space<vmem>>, vector<16x64xf32>
    %110 = vector.broadcast %10 : vector<16x1xf32> to vector<16x64xf32>
    %111 = arith.mulf %109, %110 : vector<16x64xf32>
    %112 = arith.truncf %111 : vector<16x64xf32> to vector<16x64xbf16>
    %c0_124 = arith.constant 0 : index
    %c5_125 = arith.constant 5 : index
    %c0_126 = arith.constant 0 : index
    %c0_127 = arith.constant 0 : index
    %113 = vector.load %arg4[%c0_124, %c5_125, %c0_126, %c0_127] : memref<4x9x64x64xbf16, #tpu.memory_space<vmem>>, vector<1x1x64x64xbf16>
    %114 = vector.shape_cast %113 : vector<1x1x64x64xbf16> to vector<64x64xbf16>
    %cst_128 = arith.constant dense<0.000000e+00> : vector<16x64xf32>
    %115 = tpu.matmul %112, %114, %cst_128 {dimension_numbers = #tpu.dot_dimension_numbers<[1], [0], [0], [1], [0, 0, 1, 1], [], []>} : vector<16x64xbf16>, vector<64x64xbf16>, vector<16x64xf32> -> vector<16x64xf32>
    %116 = arith.addf %108, %115 : vector<16x64xf32>
    %c8_129 = arith.constant 8 : index
    %c0_130 = arith.constant 0 : index
    %117 = vector.load %arg11[%c8_129, %c0_130] : memref<26x64xf32, #tpu.memory_space<vmem>>, vector<16x64xf32>
    %118 = vector.broadcast %8 : vector<16x1xf32> to vector<16x64xf32>
    %119 = arith.mulf %117, %118 : vector<16x64xf32>
    %120 = arith.truncf %119 : vector<16x64xf32> to vector<16x64xbf16>
    %c0_131 = arith.constant 0 : index
    %c6_132 = arith.constant 6 : index
    %c0_133 = arith.constant 0 : index
    %c0_134 = arith.constant 0 : index
    %121 = vector.load %arg4[%c0_131, %c6_132, %c0_133, %c0_134] : memref<4x9x64x64xbf16, #tpu.memory_space<vmem>>, vector<1x1x64x64xbf16>
    %122 = vector.shape_cast %121 : vector<1x1x64x64xbf16> to vector<64x64xbf16>
    %cst_135 = arith.constant dense<0.000000e+00> : vector<16x64xf32>
    %123 = tpu.matmul %120, %122, %cst_135 {dimension_numbers = #tpu.dot_dimension_numbers<[1], [0], [0], [1], [0, 0, 1, 1], [], []>} : vector<16x64xbf16>, vector<64x64xbf16>, vector<16x64xf32> -> vector<16x64xf32>
    %124 = arith.addf %116, %123 : vector<16x64xf32>
    %c9 = arith.constant 9 : index
    %c0_136 = arith.constant 0 : index
    %125 = vector.load %arg11[%c9, %c0_136] : memref<26x64xf32, #tpu.memory_space<vmem>>, vector<16x64xf32>
    %126 = arith.truncf %125 : vector<16x64xf32> to vector<16x64xbf16>
    %c0_137 = arith.constant 0 : index
    %c7_138 = arith.constant 7 : index
    %c0_139 = arith.constant 0 : index
    %c0_140 = arith.constant 0 : index
    %127 = vector.load %arg4[%c0_137, %c7_138, %c0_139, %c0_140] : memref<4x9x64x64xbf16, #tpu.memory_space<vmem>>, vector<1x1x64x64xbf16>
    %128 = vector.shape_cast %127 : vector<1x1x64x64xbf16> to vector<64x64xbf16>
    %cst_141 = arith.constant dense<0.000000e+00> : vector<16x64xf32>
    %129 = tpu.matmul %126, %128, %cst_141 {dimension_numbers = #tpu.dot_dimension_numbers<[1], [0], [0], [1], [0, 0, 1, 1], [], []>} : vector<16x64xbf16>, vector<64x64xbf16>, vector<16x64xf32> -> vector<16x64xf32>
    %130 = arith.addf %124, %129 : vector<16x64xf32>
    %c10 = arith.constant 10 : index
    %c0_142 = arith.constant 0 : index
    %131 = vector.load %arg11[%c10, %c0_142] : memref<26x64xf32, #tpu.memory_space<vmem>>, vector<16x64xf32>
    %132 = vector.broadcast %10 : vector<16x1xf32> to vector<16x64xf32>
    %133 = arith.mulf %131, %132 : vector<16x64xf32>
    %134 = arith.truncf %133 : vector<16x64xf32> to vector<16x64xbf16>
    %c0_143 = arith.constant 0 : index
    %c8_144 = arith.constant 8 : index
    %c0_145 = arith.constant 0 : index
    %c0_146 = arith.constant 0 : index
    %135 = vector.load %arg4[%c0_143, %c8_144, %c0_145, %c0_146] : memref<4x9x64x64xbf16, #tpu.memory_space<vmem>>, vector<1x1x64x64xbf16>
    %136 = vector.shape_cast %135 : vector<1x1x64x64xbf16> to vector<64x64xbf16>
    %cst_147 = arith.constant dense<0.000000e+00> : vector<16x64xf32>
    %137 = tpu.matmul %134, %136, %cst_147 {dimension_numbers = #tpu.dot_dimension_numbers<[1], [0], [0], [1], [0, 0, 1, 1], [], []>} : vector<16x64xbf16>, vector<64x64xbf16>, vector<16x64xf32> -> vector<16x64xf32>
    %138 = arith.addf %130, %137 : vector<16x64xf32>
    %c0_148 = arith.constant 0 : index
    %c0_149 = arith.constant 0 : index
    %c0_150 = arith.constant 0 : index
    %139 = vector.load %arg5[%c0_148, %c0_149, %c0_150] : memref<4x1x64xf32, #tpu.memory_space<vmem>>, vector<1x1x64xf32>
    %140 = vector.shape_cast %139 : vector<1x1x64xf32> to vector<1x64xf32>
    %141 = vector.broadcast %140 : vector<1x64xf32> to vector<16x64xf32>
    %142 = arith.addf %138, %141 : vector<16x64xf32>
    %cst_151 = arith.constant 0.000000e+00 : f32
    %143 = vector.broadcast %cst_151 : f32 to vector<16x64xf32>
    %144 = arith.maximumf %142, %143 : vector<16x64xf32>
    %c5_152 = arith.constant 5 : index
    %c0_153 = arith.constant 0 : index
    %145 = vector.load %arg11[%c5_152, %c0_153] : memref<26x64xf32, #tpu.memory_space<vmem>>, vector<16x64xf32>
    tpu.vector_store %arg11[%c5_152, %c0_153], %144 {strides = array<i32>} : memref<26x64xf32, #tpu.memory_space<vmem>>, vector<16x64xf32>,
    %c0_154 = arith.constant 0 : index
    %c0_155 = arith.constant 0 : index
    %146 = vector.load %arg11[%c0_154, %c0_155] : memref<26x64xf32, #tpu.memory_space<vmem>>, vector<16x64xf32>
    %147 = vector.broadcast %8 : vector<16x1xf32> to vector<16x64xf32>
    %148 = arith.mulf %146, %147 : vector<16x64xf32>
    %149 = arith.truncf %148 : vector<16x64xf32> to vector<16x64xbf16>
    %c1_156 = arith.constant 1 : index
    %c0_157 = arith.constant 0 : index
    %c0_158 = arith.constant 0 : index
    %c0_159 = arith.constant 0 : index
    %150 = vector.load %arg4[%c1_156, %c0_157, %c0_158, %c0_159] : memref<4x9x64x64xbf16, #tpu.memory_space<vmem>>, vector<1x1x64x64xbf16>
    %151 = vector.shape_cast %150 : vector<1x1x64x64xbf16> to vector<64x64xbf16>
    %cst_160 = arith.constant dense<0.000000e+00> : vector<16x64xf32>
    %152 = tpu.matmul %149, %151, %cst_160 {dimension_numbers = #tpu.dot_dimension_numbers<[1], [0], [0], [1], [0, 0, 1, 1], [], []>} : vector<16x64xbf16>, vector<64x64xbf16>, vector<16x64xf32> -> vector<16x64xf32>
    %c1_161 = arith.constant 1 : index
    %c0_162 = arith.constant 0 : index
    %153 = vector.load %arg11[%c1_161, %c0_162] : memref<26x64xf32, #tpu.memory_space<vmem>>, vector<16x64xf32>
    %154 = arith.truncf %153 : vector<16x64xf32> to vector<16x64xbf16>
    %c1_163 = arith.constant 1 : index
    %c1_164 = arith.constant 1 : index
    %c0_165 = arith.constant 0 : index
    %c0_166 = arith.constant 0 : index
    %155 = vector.load %arg4[%c1_163, %c1_164, %c0_165, %c0_166] : memref<4x9x64x64xbf16, #tpu.memory_space<vmem>>, vector<1x1x64x64xbf16>
    %156 = vector.shape_cast %155 : vector<1x1x64x64xbf16> to vector<64x64xbf16>
    %cst_167 = arith.constant dense<0.000000e+00> : vector<16x64xf32>
    %157 = tpu.matmul %154, %156, %cst_167 {dimension_numbers = #tpu.dot_dimension_numbers<[1], [0], [0], [1], [0, 0, 1, 1], [], []>} : vector<16x64xbf16>, vector<64x64xbf16>, vector<16x64xf32> -> vector<16x64xf32>
    %158 = arith.addf %152, %157 : vector<16x64xf32>
    %c2_168 = arith.constant 2 : index
    %c0_169 = arith.constant 0 : index
    %159 = vector.load %arg11[%c2_168, %c0_169] : memref<26x64xf32, #tpu.memory_space<vmem>>, vector<16x64xf32>
    %160 = vector.broadcast %10 : vector<16x1xf32> to vector<16x64xf32>
    %161 = arith.mulf %159, %160 : vector<16x64xf32>
    %162 = arith.truncf %161 : vector<16x64xf32> to vector<16x64xbf16>
    %c1_170 = arith.constant 1 : index
    %c2_171 = arith.constant 2 : index
    %c0_172 = arith.constant 0 : index
    %c0_173 = arith.constant 0 : index
    %163 = vector.load %arg4[%c1_170, %c2_171, %c0_172, %c0_173] : memref<4x9x64x64xbf16, #tpu.memory_space<vmem>>, vector<1x1x64x64xbf16>
    %164 = vector.shape_cast %163 : vector<1x1x64x64xbf16> to vector<64x64xbf16>
    %cst_174 = arith.constant dense<0.000000e+00> : vector<16x64xf32>
    %165 = tpu.matmul %162, %164, %cst_174 {dimension_numbers = #tpu.dot_dimension_numbers<[1], [0], [0], [1], [0, 0, 1, 1], [], []>} : vector<16x64xbf16>, vector<64x64xbf16>, vector<16x64xf32> -> vector<16x64xf32>
    %166 = arith.addf %158, %165 : vector<16x64xf32>
    %c4_175 = arith.constant 4 : index
    %c0_176 = arith.constant 0 : index
    %167 = vector.load %arg11[%c4_175, %c0_176] : memref<26x64xf32, #tpu.memory_space<vmem>>, vector<16x64xf32>
    %168 = vector.broadcast %8 : vector<16x1xf32> to vector<16x64xf32>
    %169 = arith.mulf %167, %168 : vector<16x64xf32>
    %170 = arith.truncf %169 : vector<16x64xf32> to vector<16x64xbf16>
    %c1_177 = arith.constant 1 : index
    %c3_178 = arith.constant 3 : index
    %c0_179 = arith.constant 0 : index
    %c0_180 = arith.constant 0 : index
    %171 = vector.load %arg4[%c1_177, %c3_178, %c0_179, %c0_180] : memref<4x9x64x64xbf16, #tpu.memory_space<vmem>>, vector<1x1x64x64xbf16>
    %172 = vector.shape_cast %171 : vector<1x1x64x64xbf16> to vector<64x64xbf16>
    %cst_181 = arith.constant dense<0.000000e+00> : vector<16x64xf32>
    %173 = tpu.matmul %170, %172, %cst_181 {dimension_numbers = #tpu.dot_dimension_numbers<[1], [0], [0], [1], [0, 0, 1, 1], [], []>} : vector<16x64xbf16>, vector<64x64xbf16>, vector<16x64xf32> -> vector<16x64xf32>
    %174 = arith.addf %166, %173 : vector<16x64xf32>
    %c5_182 = arith.constant 5 : index
    %c0_183 = arith.constant 0 : index
    %175 = vector.load %arg11[%c5_182, %c0_183] : memref<26x64xf32, #tpu.memory_space<vmem>>, vector<16x64xf32>
    %176 = arith.truncf %175 : vector<16x64xf32> to vector<16x64xbf16>
    %c1_184 = arith.constant 1 : index
    %c4_185 = arith.constant 4 : index
    %c0_186 = arith.constant 0 : index
    %c0_187 = arith.constant 0 : index
    %177 = vector.load %arg4[%c1_184, %c4_185, %c0_186, %c0_187] : memref<4x9x64x64xbf16, #tpu.memory_space<vmem>>, vector<1x1x64x64xbf16>
    %178 = vector.shape_cast %177 : vector<1x1x64x64xbf16> to vector<64x64xbf16>
    %cst_188 = arith.constant dense<0.000000e+00> : vector<16x64xf32>
    %179 = tpu.matmul %176, %178, %cst_188 {dimension_numbers = #tpu.dot_dimension_numbers<[1], [0], [0], [1], [0, 0, 1, 1], [], []>} : vector<16x64xbf16>, vector<64x64xbf16>, vector<16x64xf32> -> vector<16x64xf32>
    %180 = arith.addf %174, %179 : vector<16x64xf32>
    %c6_189 = arith.constant 6 : index
    %c0_190 = arith.constant 0 : index
    %181 = vector.load %arg11[%c6_189, %c0_190] : memref<26x64xf32, #tpu.memory_space<vmem>>, vector<16x64xf32>
    %182 = vector.broadcast %10 : vector<16x1xf32> to vector<16x64xf32>
    %183 = arith.mulf %181, %182 : vector<16x64xf32>
    %184 = arith.truncf %183 : vector<16x64xf32> to vector<16x64xbf16>
    %c1_191 = arith.constant 1 : index
    %c5_192 = arith.constant 5 : index
    %c0_193 = arith.constant 0 : index
    %c0_194 = arith.constant 0 : index
    %185 = vector.load %arg4[%c1_191, %c5_192, %c0_193, %c0_194] : memref<4x9x64x64xbf16, #tpu.memory_space<vmem>>, vector<1x1x64x64xbf16>
    %186 = vector.shape_cast %185 : vector<1x1x64x64xbf16> to vector<64x64xbf16>
    %cst_195 = arith.constant dense<0.000000e+00> : vector<16x64xf32>
    %187 = tpu.matmul %184, %186, %cst_195 {dimension_numbers = #tpu.dot_dimension_numbers<[1], [0], [0], [1], [0, 0, 1, 1], [], []>} : vector<16x64xbf16>, vector<64x64xbf16>, vector<16x64xf32> -> vector<16x64xf32>
    %188 = arith.addf %180, %187 : vector<16x64xf32>
    %c8_196 = arith.constant 8 : index
    %c0_197 = arith.constant 0 : index
    %189 = vector.load %arg11[%c8_196, %c0_197] : memref<26x64xf32, #tpu.memory_space<vmem>>, vector<16x64xf32>
    %190 = vector.broadcast %8 : vector<16x1xf32> to vector<16x64xf32>
    %191 = arith.mulf %189, %190 : vector<16x64xf32>
    %192 = arith.truncf %191 : vector<16x64xf32> to vector<16x64xbf16>
    %c1_198 = arith.constant 1 : index
    %c6_199 = arith.constant 6 : index
    %c0_200 = arith.constant 0 : index
    %c0_201 = arith.constant 0 : index
    %193 = vector.load %arg4[%c1_198, %c6_199, %c0_200, %c0_201] : memref<4x9x64x64xbf16, #tpu.memory_space<vmem>>, vector<1x1x64x64xbf16>
    %194 = vector.shape_cast %193 : vector<1x1x64x64xbf16> to vector<64x64xbf16>
    %cst_202 = arith.constant dense<0.000000e+00> : vector<16x64xf32>
    %195 = tpu.matmul %192, %194, %cst_202 {dimension_numbers = #tpu.dot_dimension_numbers<[1], [0], [0], [1], [0, 0, 1, 1], [], []>} : vector<16x64xbf16>, vector<64x64xbf16>, vector<16x64xf32> -> vector<16x64xf32>
    %196 = arith.addf %188, %195 : vector<16x64xf32>
    %c9_203 = arith.constant 9 : index
    %c0_204 = arith.constant 0 : index
    %197 = vector.load %arg11[%c9_203, %c0_204] : memref<26x64xf32, #tpu.memory_space<vmem>>, vector<16x64xf32>
    %198 = arith.truncf %197 : vector<16x64xf32> to vector<16x64xbf16>
    %c1_205 = arith.constant 1 : index
    %c7_206 = arith.constant 7 : index
    %c0_207 = arith.constant 0 : index
    %c0_208 = arith.constant 0 : index
    %199 = vector.load %arg4[%c1_205, %c7_206, %c0_207, %c0_208] : memref<4x9x64x64xbf16, #tpu.memory_space<vmem>>, vector<1x1x64x64xbf16>
    %200 = vector.shape_cast %199 : vector<1x1x64x64xbf16> to vector<64x64xbf16>
    %cst_209 = arith.constant dense<0.000000e+00> : vector<16x64xf32>
    %201 = tpu.matmul %198, %200, %cst_209 {dimension_numbers = #tpu.dot_dimension_numbers<[1], [0], [0], [1], [0, 0, 1, 1], [], []>} : vector<16x64xbf16>, vector<64x64xbf16>, vector<16x64xf32> -> vector<16x64xf32>
    %202 = arith.addf %196, %201 : vector<16x64xf32>
    %c10_210 = arith.constant 10 : index
    %c0_211 = arith.constant 0 : index
    %203 = vector.load %arg11[%c10_210, %c0_211] : memref<26x64xf32, #tpu.memory_space<vmem>>, vector<16x64xf32>
    %204 = vector.broadcast %10 : vector<16x1xf32> to vector<16x64xf32>
    %205 = arith.mulf %203, %204 : vector<16x64xf32>
    %206 = arith.truncf %205 : vector<16x64xf32> to vector<16x64xbf16>
    %c1_212 = arith.constant 1 : index
    %c8_213 = arith.constant 8 : index
    %c0_214 = arith.constant 0 : index
    %c0_215 = arith.constant 0 : index
    %207 = vector.load %arg4[%c1_212, %c8_213, %c0_214, %c0_215] : memref<4x9x64x64xbf16, #tpu.memory_space<vmem>>, vector<1x1x64x64xbf16>
    %208 = vector.shape_cast %207 : vector<1x1x64x64xbf16> to vector<64x64xbf16>
    %cst_216 = arith.constant dense<0.000000e+00> : vector<16x64xf32>
    %209 = tpu.matmul %206, %208, %cst_216 {dimension_numbers = #tpu.dot_dimension_numbers<[1], [0], [0], [1], [0, 0, 1, 1], [], []>} : vector<16x64xbf16>, vector<64x64xbf16>, vector<16x64xf32> -> vector<16x64xf32>
    %210 = arith.addf %202, %209 : vector<16x64xf32>
    %c1_217 = arith.constant 1 : index
    %c0_218 = arith.constant 0 : index
    %c0_219 = arith.constant 0 : index
    %211 = vector.load %arg5[%c1_217, %c0_218, %c0_219] : memref<4x1x64xf32, #tpu.memory_space<vmem>>, vector<1x1x64xf32>
    %212 = vector.shape_cast %211 : vector<1x1x64xf32> to vector<1x64xf32>
    %213 = vector.broadcast %212 : vector<1x64xf32> to vector<16x64xf32>
    %214 = arith.addf %210, %213 : vector<16x64xf32>
    %215 = arith.addf %214, %72 : vector<16x64xf32>
    %cst_220 = arith.constant 0.000000e+00 : f32
    %216 = vector.broadcast %cst_220 : f32 to vector<16x64xf32>
    %217 = arith.maximumf %215, %216 : vector<16x64xf32>
    %c5_221 = arith.constant 5 : index
    %c0_222 = arith.constant 0 : index
    %218 = vector.load %arg11[%c5_221, %c0_222] : memref<26x64xf32, #tpu.memory_space<vmem>>, vector<16x64xf32>
    tpu.vector_store %arg11[%c5_221, %c0_222], %217 {strides = array<i32>} : memref<26x64xf32, #tpu.memory_space<vmem>>, vector<16x64xf32>,
    %c0_223 = arith.constant 0 : index
    %c0_224 = arith.constant 0 : index
    %219 = vector.load %arg11[%c0_223, %c0_224] : memref<26x64xf32, #tpu.memory_space<vmem>>, vector<16x64xf32>
    %220 = vector.broadcast %8 : vector<16x1xf32> to vector<16x64xf32>
    %221 = arith.mulf %219, %220 : vector<16x64xf32>
    %222 = arith.truncf %221 : vector<16x64xf32> to vector<16x64xbf16>
    %c2_225 = arith.constant 2 : index
    %c0_226 = arith.constant 0 : index
    %c0_227 = arith.constant 0 : index
    %c0_228 = arith.constant 0 : index
    %223 = vector.load %arg4[%c2_225, %c0_226, %c0_227, %c0_228] : memref<4x9x64x64xbf16, #tpu.memory_space<vmem>>, vector<1x1x64x64xbf16>
    %224 = vector.shape_cast %223 : vector<1x1x64x64xbf16> to vector<64x64xbf16>
    %cst_229 = arith.constant dense<0.000000e+00> : vector<16x64xf32>
    %225 = tpu.matmul %222, %224, %cst_229 {dimension_numbers = #tpu.dot_dimension_numbers<[1], [0], [0], [1], [0, 0, 1, 1], [], []>} : vector<16x64xbf16>, vector<64x64xbf16>, vector<16x64xf32> -> vector<16x64xf32>
    %c1_230 = arith.constant 1 : index
    %c0_231 = arith.constant 0 : index
    %226 = vector.load %arg11[%c1_230, %c0_231] : memref<26x64xf32, #tpu.memory_space<vmem>>, vector<16x64xf32>
    %227 = arith.truncf %226 : vector<16x64xf32> to vector<16x64xbf16>
    %c2_232 = arith.constant 2 : index
    %c1_233 = arith.constant 1 : index
    %c0_234 = arith.constant 0 : index
    %c0_235 = arith.constant 0 : index
    %228 = vector.load %arg4[%c2_232, %c1_233, %c0_234, %c0_235] : memref<4x9x64x64xbf16, #tpu.memory_space<vmem>>, vector<1x1x64x64xbf16>
    %229 = vector.shape_cast %228 : vector<1x1x64x64xbf16> to vector<64x64xbf16>
    %cst_236 = arith.constant dense<0.000000e+00> : vector<16x64xf32>
    %230 = tpu.matmul %227, %229, %cst_236 {dimension_numbers = #tpu.dot_dimension_numbers<[1], [0], [0], [1], [0, 0, 1, 1], [], []>} : vector<16x64xbf16>, vector<64x64xbf16>, vector<16x64xf32> -> vector<16x64xf32>
    %231 = arith.addf %225, %230 : vector<16x64xf32>
    %c2_237 = arith.constant 2 : index
    %c0_238 = arith.constant 0 : index
    %232 = vector.load %arg11[%c2_237, %c0_238] : memref<26x64xf32, #tpu.memory_space<vmem>>, vector<16x64xf32>
    %233 = vector.broadcast %10 : vector<16x1xf32> to vector<16x64xf32>
    %234 = arith.mulf %232, %233 : vector<16x64xf32>
    %235 = arith.truncf %234 : vector<16x64xf32> to vector<16x64xbf16>
    %c2_239 = arith.constant 2 : index
    %c2_240 = arith.constant 2 : index
    %c0_241 = arith.constant 0 : index
    %c0_242 = arith.constant 0 : index
    %236 = vector.load %arg4[%c2_239, %c2_240, %c0_241, %c0_242] : memref<4x9x64x64xbf16, #tpu.memory_space<vmem>>, vector<1x1x64x64xbf16>
    %237 = vector.shape_cast %236 : vector<1x1x64x64xbf16> to vector<64x64xbf16>
    %cst_243 = arith.constant dense<0.000000e+00> : vector<16x64xf32>
    %238 = tpu.matmul %235, %237, %cst_243 {dimension_numbers = #tpu.dot_dimension_numbers<[1], [0], [0], [1], [0, 0, 1, 1], [], []>} : vector<16x64xbf16>, vector<64x64xbf16>, vector<16x64xf32> -> vector<16x64xf32>
    %239 = arith.addf %231, %238 : vector<16x64xf32>
    %c4_244 = arith.constant 4 : index
    %c0_245 = arith.constant 0 : index
    %240 = vector.load %arg11[%c4_244, %c0_245] : memref<26x64xf32, #tpu.memory_space<vmem>>, vector<16x64xf32>
    %241 = vector.broadcast %8 : vector<16x1xf32> to vector<16x64xf32>
    %242 = arith.mulf %240, %241 : vector<16x64xf32>
    %243 = arith.truncf %242 : vector<16x64xf32> to vector<16x64xbf16>
    %c2_246 = arith.constant 2 : index
    %c3_247 = arith.constant 3 : index
    %c0_248 = arith.constant 0 : index
    %c0_249 = arith.constant 0 : index
    %244 = vector.load %arg4[%c2_246, %c3_247, %c0_248, %c0_249] : memref<4x9x64x64xbf16, #tpu.memory_space<vmem>>, vector<1x1x64x64xbf16>
    %245 = vector.shape_cast %244 : vector<1x1x64x64xbf16> to vector<64x64xbf16>
    %cst_250 = arith.constant dense<0.000000e+00> : vector<16x64xf32>
    %246 = tpu.matmul %243, %245, %cst_250 {dimension_numbers = #tpu.dot_dimension_numbers<[1], [0], [0], [1], [0, 0, 1, 1], [], []>} : vector<16x64xbf16>, vector<64x64xbf16>, vector<16x64xf32> -> vector<16x64xf32>
    %247 = arith.addf %239, %246 : vector<16x64xf32>
    %c5_251 = arith.constant 5 : index
    %c0_252 = arith.constant 0 : index
    %248 = vector.load %arg11[%c5_251, %c0_252] : memref<26x64xf32, #tpu.memory_space<vmem>>, vector<16x64xf32>
    %249 = arith.truncf %248 : vector<16x64xf32> to vector<16x64xbf16>
    %c2_253 = arith.constant 2 : index
    %c4_254 = arith.constant 4 : index
    %c0_255 = arith.constant 0 : index
    %c0_256 = arith.constant 0 : index
    %250 = vector.load %arg4[%c2_253, %c4_254, %c0_255, %c0_256] : memref<4x9x64x64xbf16, #tpu.memory_space<vmem>>, vector<1x1x64x64xbf16>
    %251 = vector.shape_cast %250 : vector<1x1x64x64xbf16> to vector<64x64xbf16>
    %cst_257 = arith.constant dense<0.000000e+00> : vector<16x64xf32>
    %252 = tpu.matmul %249, %251, %cst_257 {dimension_numbers = #tpu.dot_dimension_numbers<[1], [0], [0], [1], [0, 0, 1, 1], [], []>} : vector<16x64xbf16>, vector<64x64xbf16>, vector<16x64xf32> -> vector<16x64xf32>
    %253 = arith.addf %247, %252 : vector<16x64xf32>
    %c6_258 = arith.constant 6 : index
    %c0_259 = arith.constant 0 : index
    %254 = vector.load %arg11[%c6_258, %c0_259] : memref<26x64xf32, #tpu.memory_space<vmem>>, vector<16x64xf32>
    %255 = vector.broadcast %10 : vector<16x1xf32> to vector<16x64xf32>
    %256 = arith.mulf %254, %255 : vector<16x64xf32>
    %257 = arith.truncf %256 : vector<16x64xf32> to vector<16x64xbf16>
    %c2_260 = arith.constant 2 : index
    %c5_261 = arith.constant 5 : index
    %c0_262 = arith.constant 0 : index
    %c0_263 = arith.constant 0 : index
    %258 = vector.load %arg4[%c2_260, %c5_261, %c0_262, %c0_263] : memref<4x9x64x64xbf16, #tpu.memory_space<vmem>>, vector<1x1x64x64xbf16>
    %259 = vector.shape_cast %258 : vector<1x1x64x64xbf16> to vector<64x64xbf16>
    %cst_264 = arith.constant dense<0.000000e+00> : vector<16x64xf32>
    %260 = tpu.matmul %257, %259, %cst_264 {dimension_numbers = #tpu.dot_dimension_numbers<[1], [0], [0], [1], [0, 0, 1, 1], [], []>} : vector<16x64xbf16>, vector<64x64xbf16>, vector<16x64xf32> -> vector<16x64xf32>
    %261 = arith.addf %253, %260 : vector<16x64xf32>
    %c8_265 = arith.constant 8 : index
    %c0_266 = arith.constant 0 : index
    %262 = vector.load %arg11[%c8_265, %c0_266] : memref<26x64xf32, #tpu.memory_space<vmem>>, vector<16x64xf32>
    %263 = vector.broadcast %8 : vector<16x1xf32> to vector<16x64xf32>
    %264 = arith.mulf %262, %263 : vector<16x64xf32>
    %265 = arith.truncf %264 : vector<16x64xf32> to vector<16x64xbf16>
    %c2_267 = arith.constant 2 : index
    %c6_268 = arith.constant 6 : index
    %c0_269 = arith.constant 0 : index
    %c0_270 = arith.constant 0 : index
    %266 = vector.load %arg4[%c2_267, %c6_268, %c0_269, %c0_270] : memref<4x9x64x64xbf16, #tpu.memory_space<vmem>>, vector<1x1x64x64xbf16>
    %267 = vector.shape_cast %266 : vector<1x1x64x64xbf16> to vector<64x64xbf16>
    %cst_271 = arith.constant dense<0.000000e+00> : vector<16x64xf32>
    %268 = tpu.matmul %265, %267, %cst_271 {dimension_numbers = #tpu.dot_dimension_numbers<[1], [0], [0], [1], [0, 0, 1, 1], [], []>} : vector<16x64xbf16>, vector<64x64xbf16>, vector<16x64xf32> -> vector<16x64xf32>
    %269 = arith.addf %261, %268 : vector<16x64xf32>
    %c9_272 = arith.constant 9 : index
    %c0_273 = arith.constant 0 : index
    %270 = vector.load %arg11[%c9_272, %c0_273] : memref<26x64xf32, #tpu.memory_space<vmem>>, vector<16x64xf32>
    %271 = arith.truncf %270 : vector<16x64xf32> to vector<16x64xbf16>
    %c2_274 = arith.constant 2 : index
    %c7_275 = arith.constant 7 : index
    %c0_276 = arith.constant 0 : index
    %c0_277 = arith.constant 0 : index
    %272 = vector.load %arg4[%c2_274, %c7_275, %c0_276, %c0_277] : memref<4x9x64x64xbf16, #tpu.memory_space<vmem>>, vector<1x1x64x64xbf16>
    %273 = vector.shape_cast %272 : vector<1x1x64x64xbf16> to vector<64x64xbf16>
    %cst_278 = arith.constant dense<0.000000e+00> : vector<16x64xf32>
    %274 = tpu.matmul %271, %273, %cst_278 {dimension_numbers = #tpu.dot_dimension_numbers<[1], [0], [0], [1], [0, 0, 1, 1], [], []>} : vector<16x64xbf16>, vector<64x64xbf16>, vector<16x64xf32> -> vector<16x64xf32>
    %275 = arith.addf %269, %274 : vector<16x64xf32>
    %c10_279 = arith.constant 10 : index
    %c0_280 = arith.constant 0 : index
    %276 = vector.load %arg11[%c10_279, %c0_280] : memref<26x64xf32, #tpu.memory_space<vmem>>, vector<16x64xf32>
    %277 = vector.broadcast %10 : vector<16x1xf32> to vector<16x64xf32>
    %278 = arith.mulf %276, %277 : vector<16x64xf32>
    %279 = arith.truncf %278 : vector<16x64xf32> to vector<16x64xbf16>
    %c2_281 = arith.constant 2 : index
    %c8_282 = arith.constant 8 : index
    %c0_283 = arith.constant 0 : index
    %c0_284 = arith.constant 0 : index
    %280 = vector.load %arg4[%c2_281, %c8_282, %c0_283, %c0_284] : memref<4x9x64x64xbf16, #tpu.memory_space<vmem>>, vector<1x1x64x64xbf16>
    %281 = vector.shape_cast %280 : vector<1x1x64x64xbf16> to vector<64x64xbf16>
    %cst_285 = arith.constant dense<0.000000e+00> : vector<16x64xf32>
    %282 = tpu.matmul %279, %281, %cst_285 {dimension_numbers = #tpu.dot_dimension_numbers<[1], [0], [0], [1], [0, 0, 1, 1], [], []>} : vector<16x64xbf16>, vector<64x64xbf16>, vector<16x64xf32> -> vector<16x64xf32>
    %283 = arith.addf %275, %282 : vector<16x64xf32>
    %c2_286 = arith.constant 2 : index
    %c0_287 = arith.constant 0 : index
    %c0_288 = arith.constant 0 : index
    %284 = vector.load %arg5[%c2_286, %c0_287, %c0_288] : memref<4x1x64xf32, #tpu.memory_space<vmem>>, vector<1x1x64xf32>
    %285 = vector.shape_cast %284 : vector<1x1x64xf32> to vector<1x64xf32>
    %286 = vector.broadcast %285 : vector<1x64xf32> to vector<16x64xf32>
    %287 = arith.addf %283, %286 : vector<16x64xf32>
    %cst_289 = arith.constant 0.000000e+00 : f32
    %288 = vector.broadcast %cst_289 : f32 to vector<16x64xf32>
    %289 = arith.maximumf %287, %288 : vector<16x64xf32>
    %c5_290 = arith.constant 5 : index
    %c0_291 = arith.constant 0 : index
    %290 = vector.load %arg11[%c5_290, %c0_291] : memref<26x64xf32, #tpu.memory_space<vmem>>, vector<16x64xf32>
    tpu.vector_store %arg11[%c5_290, %c0_291], %289 {strides = array<i32>} : memref<26x64xf32, #tpu.memory_space<vmem>>, vector<16x64xf32>,
    %c0_292 = arith.constant 0 : index
    %c0_293 = arith.constant 0 : index
    %291 = vector.load %arg11[%c0_292, %c0_293] : memref<26x64xf32, #tpu.memory_space<vmem>>, vector<16x64xf32>
    %292 = vector.broadcast %8 : vector<16x1xf32> to vector<16x64xf32>
    %293 = arith.mulf %291, %292 : vector<16x64xf32>
    %294 = arith.truncf %293 : vector<16x64xf32> to vector<16x64xbf16>
    %c3_294 = arith.constant 3 : index
    %c0_295 = arith.constant 0 : index
    %c0_296 = arith.constant 0 : index
    %c0_297 = arith.constant 0 : index
    %295 = vector.load %arg4[%c3_294, %c0_295, %c0_296, %c0_297] : memref<4x9x64x64xbf16, #tpu.memory_space<vmem>>, vector<1x1x64x64xbf16>
    %296 = vector.shape_cast %295 : vector<1x1x64x64xbf16> to vector<64x64xbf16>
    %cst_298 = arith.constant dense<0.000000e+00> : vector<16x64xf32>
    %297 = tpu.matmul %294, %296, %cst_298 {dimension_numbers = #tpu.dot_dimension_numbers<[1], [0], [0], [1], [0, 0, 1, 1], [], []>} : vector<16x64xbf16>, vector<64x64xbf16>, vector<16x64xf32> -> vector<16x64xf32>
    %c1_299 = arith.constant 1 : index
    %c0_300 = arith.constant 0 : index
    %298 = vector.load %arg11[%c1_299, %c0_300] : memref<26x64xf32, #tpu.memory_space<vmem>>, vector<16x64xf32>
    %299 = arith.truncf %298 : vector<16x64xf32> to vector<16x64xbf16>
    %c3_301 = arith.constant 3 : index
    %c1_302 = arith.constant 1 : index
    %c0_303 = arith.constant 0 : index
    %c0_304 = arith.constant 0 : index
    %300 = vector.load %arg4[%c3_301, %c1_302, %c0_303, %c0_304] : memref<4x9x64x64xbf16, #tpu.memory_space<vmem>>, vector<1x1x64x64xbf16>
    %301 = vector.shape_cast %300 : vector<1x1x64x64xbf16> to vector<64x64xbf16>
    %cst_305 = arith.constant dense<0.000000e+00> : vector<16x64xf32>
    %302 = tpu.matmul %299, %301, %cst_305 {dimension_numbers = #tpu.dot_dimension_numbers<[1], [0], [0], [1], [0, 0, 1, 1], [], []>} : vector<16x64xbf16>, vector<64x64xbf16>, vector<16x64xf32> -> vector<16x64xf32>
    %303 = arith.addf %297, %302 : vector<16x64xf32>
    %c2_306 = arith.constant 2 : index
    %c0_307 = arith.constant 0 : index
    %304 = vector.load %arg11[%c2_306, %c0_307] : memref<26x64xf32, #tpu.memory_space<vmem>>, vector<16x64xf32>
    %305 = vector.broadcast %10 : vector<16x1xf32> to vector<16x64xf32>
    %306 = arith.mulf %304, %305 : vector<16x64xf32>
    %307 = arith.truncf %306 : vector<16x64xf32> to vector<16x64xbf16>
    %c3_308 = arith.constant 3 : index
    %c2_309 = arith.constant 2 : index
    %c0_310 = arith.constant 0 : index
    %c0_311 = arith.constant 0 : index
    %308 = vector.load %arg4[%c3_308, %c2_309, %c0_310, %c0_311] : memref<4x9x64x64xbf16, #tpu.memory_space<vmem>>, vector<1x1x64x64xbf16>
    %309 = vector.shape_cast %308 : vector<1x1x64x64xbf16> to vector<64x64xbf16>
    %cst_312 = arith.constant dense<0.000000e+00> : vector<16x64xf32>
    %310 = tpu.matmul %307, %309, %cst_312 {dimension_numbers = #tpu.dot_dimension_numbers<[1], [0], [0], [1], [0, 0, 1, 1], [], []>} : vector<16x64xbf16>, vector<64x64xbf16>, vector<16x64xf32> -> vector<16x64xf32>
    %311 = arith.addf %303, %310 : vector<16x64xf32>
    %c4_313 = arith.constant 4 : index
    %c0_314 = arith.constant 0 : index
    %312 = vector.load %arg11[%c4_313, %c0_314] : memref<26x64xf32, #tpu.memory_space<vmem>>, vector<16x64xf32>
    %313 = vector.broadcast %8 : vector<16x1xf32> to vector<16x64xf32>
    %314 = arith.mulf %312, %313 : vector<16x64xf32>
    %315 = arith.truncf %314 : vector<16x64xf32> to vector<16x64xbf16>
    %c3_315 = arith.constant 3 : index
    %c3_316 = arith.constant 3 : index
    %c0_317 = arith.constant 0 : index
    %c0_318 = arith.constant 0 : index
    %316 = vector.load %arg4[%c3_315, %c3_316, %c0_317, %c0_318] : memref<4x9x64x64xbf16, #tpu.memory_space<vmem>>, vector<1x1x64x64xbf16>
    %317 = vector.shape_cast %316 : vector<1x1x64x64xbf16> to vector<64x64xbf16>
    %cst_319 = arith.constant dense<0.000000e+00> : vector<16x64xf32>
    %318 = tpu.matmul %315, %317, %cst_319 {dimension_numbers = #tpu.dot_dimension_numbers<[1], [0], [0], [1], [0, 0, 1, 1], [], []>} : vector<16x64xbf16>, vector<64x64xbf16>, vector<16x64xf32> -> vector<16x64xf32>
    %319 = arith.addf %311, %318 : vector<16x64xf32>
    %c5_320 = arith.constant 5 : index
    %c0_321 = arith.constant 0 : index
    %320 = vector.load %arg11[%c5_320, %c0_321] : memref<26x64xf32, #tpu.memory_space<vmem>>, vector<16x64xf32>
    %321 = arith.truncf %320 : vector<16x64xf32> to vector<16x64xbf16>
    %c3_322 = arith.constant 3 : index
    %c4_323 = arith.constant 4 : index
    %c0_324 = arith.constant 0 : index
    %c0_325 = arith.constant 0 : index
    %322 = vector.load %arg4[%c3_322, %c4_323, %c0_324, %c0_325] : memref<4x9x64x64xbf16, #tpu.memory_space<vmem>>, vector<1x1x64x64xbf16>
    %323 = vector.shape_cast %322 : vector<1x1x64x64xbf16> to vector<64x64xbf16>
    %cst_326 = arith.constant dense<0.000000e+00> : vector<16x64xf32>
    %324 = tpu.matmul %321, %323, %cst_326 {dimension_numbers = #tpu.dot_dimension_numbers<[1], [0], [0], [1], [0, 0, 1, 1], [], []>} : vector<16x64xbf16>, vector<64x64xbf16>, vector<16x64xf32> -> vector<16x64xf32>
    %325 = arith.addf %319, %324 : vector<16x64xf32>
    %c6_327 = arith.constant 6 : index
    %c0_328 = arith.constant 0 : index
    %326 = vector.load %arg11[%c6_327, %c0_328] : memref<26x64xf32, #tpu.memory_space<vmem>>, vector<16x64xf32>
    %327 = vector.broadcast %10 : vector<16x1xf32> to vector<16x64xf32>
    %328 = arith.mulf %326, %327 : vector<16x64xf32>
    %329 = arith.truncf %328 : vector<16x64xf32> to vector<16x64xbf16>
    %c3_329 = arith.constant 3 : index
    %c5_330 = arith.constant 5 : index
    %c0_331 = arith.constant 0 : index
    %c0_332 = arith.constant 0 : index
    %330 = vector.load %arg4[%c3_329, %c5_330, %c0_331, %c0_332] : memref<4x9x64x64xbf16, #tpu.memory_space<vmem>>, vector<1x1x64x64xbf16>
    %331 = vector.shape_cast %330 : vector<1x1x64x64xbf16> to vector<64x64xbf16>
    %cst_333 = arith.constant dense<0.000000e+00> : vector<16x64xf32>
    %332 = tpu.matmul %329, %331, %cst_333 {dimension_numbers = #tpu.dot_dimension_numbers<[1], [0], [0], [1], [0, 0, 1, 1], [], []>} : vector<16x64xbf16>, vector<64x64xbf16>, vector<16x64xf32> -> vector<16x64xf32>
    %333 = arith.addf %325, %332 : vector<16x64xf32>
    %c8_334 = arith.constant 8 : index
    %c0_335 = arith.constant 0 : index
    %334 = vector.load %arg11[%c8_334, %c0_335] : memref<26x64xf32, #tpu.memory_space<vmem>>, vector<16x64xf32>
    %335 = vector.broadcast %8 : vector<16x1xf32> to vector<16x64xf32>
    %336 = arith.mulf %334, %335 : vector<16x64xf32>
    %337 = arith.truncf %336 : vector<16x64xf32> to vector<16x64xbf16>
    %c3_336 = arith.constant 3 : index
    %c6_337 = arith.constant 6 : index
    %c0_338 = arith.constant 0 : index
    %c0_339 = arith.constant 0 : index
    %338 = vector.load %arg4[%c3_336, %c6_337, %c0_338, %c0_339] : memref<4x9x64x64xbf16, #tpu.memory_space<vmem>>, vector<1x1x64x64xbf16>
    %339 = vector.shape_cast %338 : vector<1x1x64x64xbf16> to vector<64x64xbf16>
    %cst_340 = arith.constant dense<0.000000e+00> : vector<16x64xf32>
    %340 = tpu.matmul %337, %339, %cst_340 {dimension_numbers = #tpu.dot_dimension_numbers<[1], [0], [0], [1], [0, 0, 1, 1], [], []>} : vector<16x64xbf16>, vector<64x64xbf16>, vector<16x64xf32> -> vector<16x64xf32>
    %341 = arith.addf %333, %340 : vector<16x64xf32>
    %c9_341 = arith.constant 9 : index
    %c0_342 = arith.constant 0 : index
    %342 = vector.load %arg11[%c9_341, %c0_342] : memref<26x64xf32, #tpu.memory_space<vmem>>, vector<16x64xf32>
    %343 = arith.truncf %342 : vector<16x64xf32> to vector<16x64xbf16>
    %c3_343 = arith.constant 3 : index
    %c7_344 = arith.constant 7 : index
    %c0_345 = arith.constant 0 : index
    %c0_346 = arith.constant 0 : index
    %344 = vector.load %arg4[%c3_343, %c7_344, %c0_345, %c0_346] : memref<4x9x64x64xbf16, #tpu.memory_space<vmem>>, vector<1x1x64x64xbf16>
    %345 = vector.shape_cast %344 : vector<1x1x64x64xbf16> to vector<64x64xbf16>
    %cst_347 = arith.constant dense<0.000000e+00> : vector<16x64xf32>
    %346 = tpu.matmul %343, %345, %cst_347 {dimension_numbers = #tpu.dot_dimension_numbers<[1], [0], [0], [1], [0, 0, 1, 1], [], []>} : vector<16x64xbf16>, vector<64x64xbf16>, vector<16x64xf32> -> vector<16x64xf32>
    %347 = arith.addf %341, %346 : vector<16x64xf32>
    %c10_348 = arith.constant 10 : index
    %c0_349 = arith.constant 0 : index
    %348 = vector.load %arg11[%c10_348, %c0_349] : memref<26x64xf32, #tpu.memory_space<vmem>>, vector<16x64xf32>
    %349 = vector.broadcast %10 : vector<16x1xf32> to vector<16x64xf32>
    %350 = arith.mulf %348, %349 : vector<16x64xf32>
    %351 = arith.truncf %350 : vector<16x64xf32> to vector<16x64xbf16>
    %c3_350 = arith.constant 3 : index
    %c8_351 = arith.constant 8 : index
    %c0_352 = arith.constant 0 : index
    %c0_353 = arith.constant 0 : index
    %352 = vector.load %arg4[%c3_350, %c8_351, %c0_352, %c0_353] : memref<4x9x64x64xbf16, #tpu.memory_space<vmem>>, vector<1x1x64x64xbf16>
    %353 = vector.shape_cast %352 : vector<1x1x64x64xbf16> to vector<64x64xbf16>
    %cst_354 = arith.constant dense<0.000000e+00> : vector<16x64xf32>
    %354 = tpu.matmul %351, %353, %cst_354 {dimension_numbers = #tpu.dot_dimension_numbers<[1], [0], [0], [1], [0, 0, 1, 1], [], []>} : vector<16x64xbf16>, vector<64x64xbf16>, vector<16x64xf32> -> vector<16x64xf32>
    %355 = arith.addf %347, %354 : vector<16x64xf32>
    %c3_355 = arith.constant 3 : index
    %c0_356 = arith.constant 0 : index
    %c0_357 = arith.constant 0 : index
    %356 = vector.load %arg5[%c3_355, %c0_356, %c0_357] : memref<4x1x64xf32, #tpu.memory_space<vmem>>, vector<1x1x64xf32>
    %357 = vector.shape_cast %356 : vector<1x1x64xf32> to vector<1x64xf32>
    %358 = vector.broadcast %357 : vector<1x64xf32> to vector<16x64xf32>
    %359 = arith.addf %355, %358 : vector<16x64xf32>
    %360 = arith.addf %359, %217 : vector<16x64xf32>
    %cst_358 = arith.constant 0.000000e+00 : f32
    %361 = vector.broadcast %cst_358 : f32 to vector<16x64xf32>
    %362 = arith.maximumf %360, %361 : vector<16x64xf32>
    %c0_359 = arith.constant 0 : index
    %c0_360 = arith.constant 0 : index
    %c0_361 = arith.constant 0 : index
    %363 = vector.load %arg7[%c0_359, %c0_360, %c0_361] : memref<1x16x64xf32, #tpu.memory_space<vmem>>, vector<1x16x64xf32>
    %364 = vector.shape_cast %363 : vector<1x16x64xf32> to vector<16x64xf32>
    %365 = vector.shape_cast %362 : vector<16x64xf32> to vector<1x16x64xf32>
    tpu.vector_store %arg7[%c0_359, %c0_360, %c0_361], %365 {strides = array<i32>} : memref<1x16x64xf32, #tpu.memory_space<vmem>>, vector<1x16x64xf32>,
    return
  }
  func.func @transform_0(%arg0: i32) -> (i32, i32, i32, i32) {
    %c0_i32 = arith.constant 0 : i32
    %c0_i32_0 = arith.constant 0 : i32
    %c0_i32_1 = arith.constant 0 : i32
    %c0_i32_2 = arith.constant 0 : i32
    return %arg0, %c0_i32, %c0_i32_0, %c0_i32_1 : i32, i32, i32, i32
  }
  func.func @transform_1(%arg0: i32) -> (i32, i32, i32) {
    %c0_i32 = arith.constant 0 : i32
    %c0_i32_0 = arith.constant 0 : i32
    %c0_i32_1 = arith.constant 0 : i32
    %c0_i32_2 = arith.constant 0 : i32
    return %c0_i32, %c0_i32_0, %c0_i32_1 : i32, i32, i32
  }
  func.func @transform_2(%arg0: i32) -> (i32, i32) {
    %c0_i32 = arith.constant 0 : i32
    %c0_i32_0 = arith.constant 0 : i32
    %c0_i32_1 = arith.constant 0 : i32
    return %c0_i32, %c0_i32_0 : i32, i32
  }
  func.func @transform_3(%arg0: i32) -> (i32, i32, i32, i32) {
    %c0_i32 = arith.constant 0 : i32
    %c0_i32_0 = arith.constant 0 : i32
    %c0_i32_1 = arith.constant 0 : i32
    %c0_i32_2 = arith.constant 0 : i32
    %c0_i32_3 = arith.constant 0 : i32
    return %c0_i32, %c0_i32_0, %c0_i32_1, %c0_i32_2 : i32, i32, i32, i32
  }
  func.func @transform_4(%arg0: i32) -> (i32, i32, i32) {
    %c0_i32 = arith.constant 0 : i32
    %c0_i32_0 = arith.constant 0 : i32
    %c0_i32_1 = arith.constant 0 : i32
    %c0_i32_2 = arith.constant 0 : i32
    return %c0_i32, %c0_i32_0, %c0_i32_1 : i32, i32, i32
  }
  func.func @transform_5(%arg0: i32) -> (i32, i32, i32) {
    %c0_i32 = arith.constant 0 : i32
    %c0_i32_0 = arith.constant 0 : i32
    %c0_i32_1 = arith.constant 0 : i32
    %c0_i32_2 = arith.constant 0 : i32
    return %c0_i32, %c0_i32_0, %c0_i32_1 : i32, i32, i32
  }
  func.func @transform_6(%arg0: i32) -> (i32, i32, i32) {
    %c0_i32 = arith.constant 0 : i32
    %c0_i32_0 = arith.constant 0 : i32
    %c0_i32_1 = arith.constant 0 : i32
    return %arg0, %c0_i32, %c0_i32_0 : i32, i32, i32
  }
}

</mosaic_0001>

<bundles_post_ra>
// kernel: resnet18_client_forward.1
= control target key start
LH: loop header
LB: loop body
LE: loop exit
PB: predicated region body
PF: predicated region fallthrough
CT: control target
= control target key end

     0   :  { %11 = vsyncpa [#allocation7], 0  ;;  %s6563_s0 = inlined_call_operand.vmem [shape: bf16[8,11,11,4], index: 0, kind: input, shape index: {}]   ;;  %s6564_s1 = inlined_call_operand.vmem [shape: bf16[49,4,64], index: 1, kind: input, shape index: {}]   ;;  %s6565_s2 = inlined_call_operand.vmem [shape: f32[1,64], index: 2, kind: input, shape index: {}]   ;;  %s6566_s3 = inlined_call_operand.vmem [shape: bf16[4,9,64,64], index: 3, kind: input, shape index: {}]   ;;  %s6567_s4 = inlined_call_operand.vmem [shape: f32[4,1,64], index: 4, kind: input, shape index: {}]   ;;  %s6568_s5 = inlined_call_operand.vmem [shape: f32[2,16,1], index: 5, kind: input, shape index: {}]   ;;  %s6569_s6 = inlined_call_operand.hbm [shape: f32[2,16,64], index: 6, kind: output, shape index: {}]  }
   0x1   :  { %13 = vsyncpa [#allocation7 + $0x1], 0  ;;  %s5505_s21 = smov 0   ;;  %s5507_s22 = smov 0  }
   0x2   :  { %s5509_s23 = smov 0   ;;  %s5511_s24 = smov 0  }
   0x3 LB: > { %s5526_s25 = sadd.s32 4294967295, %s5460_s24   ;;  %s4089_s26 = sadd.s32 4294967294, %s5460_s24   ;;  %s5460_s24 = sphi %s5511_s24, %s6575_s24   ;;  %s5456_s23 = sphi %s5509_s23, %s6574_s23   ;;  %s5452_s22 = sphi %s5507_s22, %s6573_s22   ;;  %s5448_s21 = sphi %s5505_s21, %s6572_s21  }
   0x4   : > { %s5530_s27 = sadd.s32 1, %s5460_s24   ;;  %s157_s28 = sadd.s32 1, %s5456_s23 }
   0x5   : > { %s154_s29 = ssub.s32 %s5460_s24, %s5530_s27  ;;  %p167_p0 = scmp.ne.s32.totalorder %s5456_s23, %s5452_s22 }
   0x6   : > { %p155_p1 = scmp.eq.s32.totalorder %s154_s29, 0  ;;  %p168_p2 = scmp.eq.s32.totalorder %s5526_s25, 1 }
   0x7   : > { %p173_p3 = scmp.ne.s32.totalorder %s5452_s22, %s5448_s21  ;;  %p174_p4 = scmp.eq.s32.totalorder %s4089_s26, 1 }
   0x8   : > { %s5541_s30 = scalar_select %p155_p1, %s5456_s23, %s157_s28  }
   0x9   : > { %p5543_p5 = por %p168_p2, %p167_p0  ;;  %p5547_p6 = por %p174_p4, %p173_p3 }
   0xa   : > { %p4092_p7 = scmp.ge.s32.totalorder %s5460_s24, 1  ;;  %p217_p8 = scmp.lt.s32.totalorder %s5460_s24, 3 }
   0xc   : > { %p218_p9 = pnand %p4092_p7, %p217_p8 }
   0xd   : > { %s245_s9 = sand.u32 (!%p218_p9), 1, %s5452_s22   ;;  %s4094_s10 = sshll.u32 (!%p218_p9), %s5526_s25, 2 }
   0xe   : > { %221 = sbr.rel (%p218_p9) target bundleno = 1181 (0x49d), region = 44  ;;  %s5562_s13 = sshll.u32 (!%p218_p9), %s245_s9, 4 }
   0xf   : > { %p249_p10 = scmp.lt.s32.totalorder (!%p218_p9), %s4094_s10, 7  ;;  %s5610_s14 = smov (!%p218_p9), 0  }
  0x13   : > { %vm256_vm0 = vcmask 523264   ;;  %v5558_v0 = vld [vmem:[%s6568_s5] sm:$0xff]  ;;  %v5466_v1 = vmov 0.0   ;;  %v5573_v3 = vld [vmem:[%s6568_s5 + $0x8] sm:$0xff]  ;;  %v5579_v4 = vld [vmem:[%s6568_s5 + $0x10] sm:$0xff]  ;;  %s6577_s10 = smov (!%p249_p10, %s4094_s10), 7 }
  0x14   : > { %257 = vst.msk [vmem:[#allocation2] sm:$0xff] %vm256_vm0, %v5466_v1  ;;  %v5568_v2 = vld [vmem:[%s6565_s2] sm:$0x1]  ;;  %v5584_v5 = vld [vmem:[%s6568_s5 + $0x18] sm:$0xff]  ;;  %s5336_s28 = smul.u32 88, %s6577_s10  ;;  %vm258_vm1 = vcmask 517120  }
  0x15   : > { %260 = vst.msk [vmem:[#allocation2 + $0x10] sm:$0xff] %vm256_vm0, %v5466_v1  ;;  %vm278_vm2 = vcmask 520192   ;;  %s5608_s10 = scalar_lea.vmem [#allocation6], %s5562_s13 }
  0x16   : > { %262 = vst.msk [vmem:[#allocation2 + $0x20] sm:$0xff] %vm256_vm0, %v5466_v1  ;;  %s5593_s12 = scalar_lea.vmem %s6563_s0, %s5336_s28 }
  0x17   : > { %264 = vst.msk [vmem:[#allocation2 + $0x30] sm:$0xff] %vm256_vm0, %v5466_v1 }
  0x18   : > { %266 = vst.msk [vmem:[#allocation2 + $0x40] sm:$0xff] %vm256_vm0, %v5466_v1 }
  0x19   : > { %268 = vst.msk [vmem:[#allocation2 + $0x50] sm:$0xff] %vm256_vm0, %v5466_v1 }
  0x1a   : > { %270 = vst.msk [vmem:[#allocation2 + $0x60] sm:$0xff] %vm256_vm0, %v5466_v1 }
  0x1b   : > { %272 = vst.msk [vmem:[#allocation2 + $0x70] sm:$0xff] %vm256_vm0, %v5466_v1 }
  0x1c   : > { %274 = vst.msk [vmem:[#allocation2 + $0x80] sm:$0xff] %vm256_vm0, %v5466_v1 }
  0x1d   : > { %259 = vst.msk [vmem:[#allocation2 + $0x8] sm:$0x3] %vm258_vm1, %v5466_v1 }
  0x1e   : > { %261 = vst.msk [vmem:[#allocation2 + $0x18] sm:$0x3] %vm258_vm1, %v5466_v1 }
  0x1f   : > { %263 = vst.msk [vmem:[#allocation2 + $0x28] sm:$0x3] %vm258_vm1, %v5466_v1 }
  0x20   : > { %265 = vst.msk [vmem:[#allocation2 + $0x38] sm:$0x3] %vm258_vm1, %v5466_v1 }
  0x21   : > { %267 = vst.msk [vmem:[#allocation2 + $0x48] sm:$0x3] %vm258_vm1, %v5466_v1 }
  0x22   : > { %269 = vst.msk [vmem:[#allocation2 + $0x58] sm:$0x3] %vm258_vm1, %v5466_v1 }
  0x23   : > { %271 = vst.msk [vmem:[#allocation2 + $0x68] sm:$0x3] %vm258_vm1, %v5466_v1 }
  0x24   : > { %273 = vst.msk [vmem:[#allocation2 + $0x78] sm:$0x3] %vm258_vm1, %v5466_v1 }
  0x25   : > { %275 = vst.msk [vmem:[#allocation2 + $0x88] sm:$0x3] %vm258_vm1, %v5466_v1 }
  0x26   : > { %279 = vst.msk [vmem:[#allocation5] sm:$0x1f] %vm278_vm2, %v5466_v1 }
  0x27   : > { %280 = vst.msk [vmem:[#allocation5 + $0x15] sm:$0x1f] %vm278_vm2, %v5466_v1 }
  0x28 LB: >> { %v4103_v6 = vld [vmem:[%s6564_s1 + $0x2] sm:$0x3]  ;;  %vm308_vm3 = vcmask 1041408   ;;  %v297_v7 = vld [vmem:[%s6564_s1] sm:$0x3]  ;;  %s5180_s28 = sshll.u32 %s5464_s14, 3  ;;  %s5464_s14 = sphi %s5610_s14, %s292_s14  }
  0x29   : >> { %v310_v8 = vsel %vm308_vm3, %v4103_v6, 0  ;;  %v329_v9 = vsel %vm308_vm3, %v297_v7, 0  ;;  %v4112_v10 = vld [vmem:[%s6564_s1 + $0x8] sm:$0x3]  ;;  %v4106_v11 = vld [vmem:[%s6564_s1 + $0x4] sm:$0x3]  ;;  %s5636_s15 = scalar_lea.vmem %s5593_s12, %s5180_s28 }
  0x2a   : >> { %319 = vmatpush.bf16.msra.mxu0 %v310_v8  ;;  %vm304_vm4 = vcmask 31744   ;;  %338 = vmatpush.bf16.msra.mxu1 %v329_v9  ;;  %v427_v12 = vsel %vm308_vm3, %v4112_v10, 0  ;;  %v364_v13 = vsel %vm308_vm3, %v4106_v11, 0  ;;  %v4110_v14 = vld [vmem:[%s6564_s1 + $0x6] sm:$0x3] }
  0x2b   : >> { %373 = vmatpush.bf16.msra.mxu2 %v364_v13  ;;  %v400_v15 = vsel %vm308_vm3, %v4110_v14, 0  ;;  %v4117_v16 = vld [vmem:[%s6564_s1 + $0xc] sm:$0x3]  ;;  %v4122_v17 = vld [vmem:[%s6564_s1 + $0xe] sm:$0x3] }
  0x2c   : >> { %v4102_v18 = vld [vmem:[%s5636_s15 + $0x58] sm:$0xf]  ;;  %v296_v19 = vld [vmem:[%s5636_s15] sm:$0xf]  ;;  %409 = vmatpush.bf16.msra.mxu3 %v400_v15  ;;  %v345_v21 = vld [vmem:[%s5636_s15 + $0x4] sm:$0x1] }
  0x2d   : >> { %v344_v20 = vld [vmem:[%s5636_s15] sm:$0xf]  ;;  %4104 = vmatmul.msk.bf16.vlgmr.msra.gmra.mxu0 %vm304_vm4, %v4102_v18  ;;  %4105 = vmatmul.msk.bf16.vlgmr.msra.gmra.mxu1 %vm304_vm4, %v296_v19  ;;  %v4108_v23 = vld [vmem:[%s5636_s15 + $0x58] sm:$0xf]  ;;  %v4109_v24 = vld [vmem:[%s5636_s15 + $0x5c] sm:$0x1]  ;;  %v351_v25 = vunpack.c.l.b16 %v345_v21 }
  0x2e   : >> { %436 = vmatpush.bf16.msrb.mxu0 %v427_v12  ;;  %v350_v22 = vunpack.c.l.b16 %v344_v20  ;;  %v386_v26 = vunpack.c.l.b16 %v4108_v23  ;;  %v387_v27 = vunpack.c.l.b16 %v4109_v24  ;;  %v488_v28 = vsel %vm308_vm3, %v4117_v16, 0  ;;  %v4115_v29 = vld [vmem:[%s6564_s1 + $0xa] sm:$0x3]  ;;  %v416_v30 = vld [vmem:[%s5636_s15] sm:$0xe] }
  0x2f   : >> { %497 = vmatpush.bf16.msrb.mxu2 %v488_v28  ;;  %v514_v31 = vsel %vm308_vm3, %v4122_v17, 0  ;;  %v454_v32 = vsel %vm308_vm3, %v4115_v29, 0  ;;  %v4127_v33 = vld [vmem:[%s6564_s1 + $0x10] sm:$0x3]  ;;  %v4114_v34 = vld [vmem:[%s5636_s15 + $0x58] sm:$0xe]  ;;  %v420_v38 = vunpack.c.l.b16 %v416_v30 }
  0x30   : >> { %v352_v35 = vpack.c.b16 %v351_v25, %v350_v22  ;;  %v388_v36 = vpack.c.b16 %v387_v27, %v386_v26  ;;  %523 = vmatpush.bf16.msrb.mxu3 %v514_v31  ;;  %463 = vmatpush.bf16.msrb.mxu1 %v454_v32  ;;  %v540_v37 = vsel %vm308_vm3, %v4127_v33, 0  ;;  %v447_v39 = vunpack.c.l.b16 %v4114_v34  ;;  %v470_v40 = vld [vmem:[%s5636_s15 + $0x4] sm:$0x3]  ;;  %v4131_v41 = vld [vmem:[%s6564_s1 + $0x12] sm:$0x3] }
  0x31   : >> { %v4135_v46 = vld [vmem:[%s6564_s1 + $0x14] sm:$0x3]  ;;  %v4138_v47 = vld [vmem:[%s6564_s1 + $0x16] sm:$0x3]  ;;  %v474_v50 = vunpack.c.l.b16 %v470_v40  ;;  %v576_v51 = vsel %vm308_vm3, %v4131_v41, 0  ;;  %v421_v52 = vpack.c.b16 %v351_v25, %v420_v38 }
  0x32   : >> { %549 = vmatpush.bf16.msra.mxu0 %v540_v37  ;;  %v354_v42 = vshrl.u32 %v352_v35, 16  ;;  %v356_v43 = vshll.u32 %v352_v35, 16  ;;  %v390_v44 = vshrl.u32 %v388_v36, 16  ;;  %v392_v45 = vshll.u32 %v388_v36, 16  ;;  %v4129_v58 = vld [vmem:[%s5636_s15 + $0xb0] sm:$0xf] }
  0x33   : >> { %v448_v53 = vpack.c.b16 %v387_v27, %v447_v39  ;;  %v612_v56 = vsel %vm308_vm3, %v4135_v46, 0  ;;  %v639_v57 = vsel %vm308_vm3, %v4138_v47, 0  ;;  %v4130_v59 = vld [vmem:[%s5636_s15 + $0xb4] sm:$0x1]  ;;  %v475_v60 = vpack.c.b16 %v474_v50, %v420_v38  ;;  %v4141_v61 = vld [vmem:[%s6564_s1 + $0x18] sm:$0x3] }
  0x34   : >> { %v358_v48 = vrot.slane %v356_v43, 1  ;;  %v394_v49 = vrot.slane %v392_v45, 1  ;;  %585 = vmatpush.bf16.msra.mxu1 %v576_v51  ;;  %v4144_v62 = vld [vmem:[%s6564_s1 + $0x1a] sm:$0x3]  ;;  %v422_v63 = vrot.slane %v421_v52, 1  ;;  %v562_v6 = vunpack.c.l.b16 %v4129_v58 }
  0x35   : >> { %v449_v1 = vrot.slane %v448_v53, 1  ;;  %v563_v7 = vunpack.c.l.b16 %v4130_v59  ;;  %v666_v8 = vsel %vm308_vm3, %v4141_v61, 0  ;;  %v700_v9 = vsel %vm308_vm3, %v4144_v62, 0  ;;  %v4133_v16 = vld [vmem:[%s5636_s15 + $0x108] sm:$0xf] }
  0x36   : >> { %v359_v54 = vor.u32 %v358_v48, %v354_v42  ;;  %v395_v55 = vor.u32 %v394_v49, %v390_v44  ;;  %v477_v10 = vshrl.u32 %v475_v60, 16  ;;  %v480_v11 = vshll.u32 %v475_v60, 16  ;;  %v4134_v17 = vld [vmem:[%s5636_s15 + $0x10c] sm:$0x1]  ;;  %v4148_v18 = vld [vmem:[%s6564_s1 + $0x1c] sm:$0x3] }
  0x37   : >> { %v564_v12 = vpack.c.b16 %v563_v7, %v562_v6  ;;  %v4153_v19 = vld [vmem:[%s6564_s1 + $0x1e] sm:$0x3]  ;;  %v598_v21 = vunpack.c.l.b16 %v4133_v16  ;;  %v599_v22 = vunpack.c.l.b16 %v4134_v17  ;;  %v4121_v23 = vld [vmem:[%s5636_s15 + $0xb0] sm:$0xf]  ;;  %v4143_v26 = vld [vmem:[%s5636_s15 + $0xb4] sm:$0x3] }
  0x38   : >> { %4107 = vmatmul.msk.bf16.vlgmr.msra.gmra.mxu2 %vm304_vm4, %v359_v54  ;;  %4111 = vmatmul.msk.bf16.vlgmr.msra.gmra.mxu3 %vm304_vm4, %v395_v55  ;;  %v479_v13 = vrot.slane %v477_v10, 1  ;;  %v482_v14 = vrot.slane %v480_v11, 2  ;;  %v727_v27 = vsel %vm308_vm3, %v4148_v18, 0  ;;  %v753_v28 = vsel %vm308_vm3, %v4153_v19, 0  ;;  %v4137_v29 = vld [vmem:[%s5636_s15 + $0xb0] sm:$0xe] }
  0x39   : >> { %621 = vmatpush.bf16.msra.mxu2 %v612_v56  ;;  %648 = vmatpush.bf16.msra.mxu3 %v639_v57  ;;  %v568_v15 = vshll.u32 %v564_v12, 16  ;;  %v566_v24 = vshrl.u32 %v564_v12, 16  ;;  %v600_v30 = vpack.c.b16 %v599_v22, %v598_v21  ;;  %v4157_v31 = vld [vmem:[%s6564_s1 + $0x20] sm:$0x3]  ;;  %v686_v32 = vunpack.c.l.b16 %v4143_v26  ;;  %v4161_v33 = vld [vmem:[%s6564_s1 + $0x22] sm:$0x3] }
  0x3a   : >> { %v483_v20 = vor.u32 %v482_v14, %v479_v13  ;;  %v4126_v35 = vld [vmem:[%s5636_s15 + $0x108] sm:$0xf]  ;;  %v632_v36 = vunpack.c.l.b16 %v4137_v29  ;;  %v789_v37 = vsel %vm308_vm3, %v4157_v31, 0  ;;  %v825_v38 = vsel %vm308_vm3, %v4161_v33, 0  ;;  %v4164_v49 = vld [vmem:[%s6564_s1 + $0x24] sm:$0x3] }
  0x3b   : >> { %v570_v25 = vrot.slane %v568_v15, 1  ;;  %v604_v39 = vshll.u32 %v600_v30, 16  ;;  %v4140_v40 = vld [vmem:[%s5636_s15 + $0x108] sm:$0xe]  ;;  %v602_v44 = vshrl.u32 %v600_v30, 16  ;;  %v852_v57 = vsel %vm308_vm3, %v4164_v49, 0 }
  0x3c   : >> { %v687_v41 = vpack.c.b16 %v686_v32, %v632_v36  ;;  %v633_v42 = vpack.c.b16 %v563_v7, %v632_v36  ;;  %v659_v43 = vunpack.c.l.b16 %v4140_v40  ;;  %v4167_v50 = vld [vmem:[%s6564_s1 + $0x26] sm:$0x3]  ;;  %v4155_v55 = vld [vmem:[%s5636_s15 + $0x8] sm:$0xf]  ;;  %v4156_v56 = vld [vmem:[%s5636_s15 + $0xc] sm:$0x1] }
  0x3d   : >> { %4113 = vmatmul.msk.bf16.vlgmr.msrb.gmra.mxu0 %vm304_vm4, %v422_v63  ;;  %4116 = vmatmul.msk.bf16.vlgmr.msrb.gmra.mxu1 %vm304_vm4, %v449_v1  ;;  %v571_v34 = vor.u32 %v570_v25, %v566_v24  ;;  %v606_v45 = vrot.slane %v604_v39, 1  ;;  %v879_v58 = vsel %vm308_vm3, %v4167_v50, 0  ;;  %v4159_v59 = vld [vmem:[%s5636_s15 + $0x60] sm:$0xf]  ;;  %v4160_v60 = vld [vmem:[%s5636_s15 + $0x64] sm:$0x1]  ;;  %v775_v6 = vunpack.c.l.b16 %v4155_v55 }
  0x3e   : >> { %675 = vmatpush.bf16.msrb.mxu0 %v666_v8  ;;  %709 = vmatpush.bf16.msrb.mxu1 %v700_v9  ;;  %v689_v46 = vshrl.u32 %v687_v41, 16  ;;  %v692_v47 = vshll.u32 %v687_v41, 16  ;;  %v660_v48 = vpack.c.b16 %v599_v22, %v659_v43  ;;  %v634_v52 = vrot.slane %v633_v42, 1  ;;  %v4170_v63 = vld [vmem:[%s6564_s1 + $0x28] sm:$0x3] }
  0x3f   : >> { %v607_v51 = vor.u32 %v606_v45, %v602_v44  ;;  %v4175_v1 = vld [vmem:[%s6564_s1 + $0x2a] sm:$0x3]  ;;  %v776_v7 = vunpack.c.l.b16 %v4156_v56  ;;  %v811_v8 = vunpack.c.l.b16 %v4159_v59  ;;  %v812_v9 = vunpack.c.l.b16 %v4160_v60  ;;  %v4180_v16 = vld [vmem:[%s6564_s1 + $0x2c] sm:$0x3]  ;;  %v4184_v17 = vld [vmem:[%s6564_s1 + $0x2e] sm:$0x3] }
  0x40   : >> { %v691_v53 = vrot.slane %v689_v46, 1  ;;  %v694_v54 = vrot.slane %v692_v47, 2  ;;  %v661_v61 = vrot.slane %v660_v48, 1  ;;  %v913_v10 = vsel %vm308_vm3, %v4170_v63, 0  ;;  %v4147_v18 = vld [vmem:[%s5636_s15 + $0x8] sm:$0xf] }
  0x41   : >> { %v939_v11 = vsel %vm308_vm3, %v4175_v1, 0  ;;  %v777_v12 = vpack.c.b16 %v776_v7, %v775_v6  ;;  %v813_v13 = vpack.c.b16 %v812_v9, %v811_v8  ;;  %v4152_v19 = vld [vmem:[%s5636_s15 + $0x60] sm:$0xf]  ;;  %v965_v24 = vsel %vm308_vm3, %v4180_v16, 0  ;;  %v4169_v26 = vld [vmem:[%s5636_s15 + $0xc] sm:$0x3] }
  0x42   : >> { %v695_v62 = vor.u32 %v694_v54, %v691_v53  ;;  %v1001_v25 = vsel %vm308_vm3, %v4184_v17, 0  ;;  %v4191_v29 = vld [vmem:[%s6564_s1 + $0x32] sm:$0x3]  ;;  %v4166_v32 = vld [vmem:[%s5636_s15 + $0x60] sm:$0xe]  ;;  %v899_v33 = vunpack.c.l.b16 %v4169_v26 }
  0x43   : >> { %v781_v14 = vshll.u32 %v777_v12, 16  ;;  %v817_v15 = vshll.u32 %v813_v13, 16  ;;  %v815_v22 = vshrl.u32 %v813_v13, 16  ;;  %v1064_v36 = vsel %vm308_vm3, %v4191_v29, 0  ;;  %v4182_v43 = vld [vmem:[%s5636_s15 + $0xb8] sm:$0xf] }
  0x44   : >> { %v4183_v44 = vld [vmem:[%s5636_s15 + $0xbc] sm:$0x1]  ;;  %v4194_v45 = vld [vmem:[%s6564_s1 + $0x34] sm:$0x3]  ;;  %v4197_v46 = vld [vmem:[%s6564_s1 + $0x36] sm:$0x3]  ;;  %v987_v49 = vunpack.c.l.b16 %v4182_v43 }
  0x45   : >> { %v783_v21 = vrot.slane %v781_v14, 1  ;;  %v988_v50 = vunpack.c.l.b16 %v4183_v44  ;;  %v1091_v53 = vsel %vm308_vm3, %v4194_v45, 0  ;;  %v1125_v54 = vsel %vm308_vm3, %v4197_v46, 0  ;;  %v4186_v55 = vld [vmem:[%s5636_s15 + $0x110] sm:$0xf] }
  0x46   : >> { %v4187_v56 = vld [vmem:[%s5636_s15 + $0x114] sm:$0x1]  ;;  %v4206_v59 = vld [vmem:[%s6564_s1 + $0x3a] sm:$0x3]  ;;  %v4210_v16 = vld [vmem:[%s6564_s1 + $0x3c] sm:$0x3] }
  0x47   : >> { %v4174_v63 = vld [vmem:[%s5636_s15 + $0xb8] sm:$0xf]  ;;  %v1178_v6 = vsel %vm308_vm3, %v4206_v59, 0  ;;  %v4214_v17 = vld [vmem:[%s6564_s1 + $0x3e] sm:$0x3] }
  0x48   : >> { %4118 = vmatmul.msk.bf16.vlgmr.msrb.gmra.mxu2 %vm304_vm4, %v483_v20  ;;  %4123 = vmatmul.msk.bf16.vlgmr.msrb.gmra.mxu3 %vm304_vm4, %v4121_v23  ;;  %v779_v20 = vshrl.u32 %v777_v12, 16  ;;  %v819_v23 = vrot.slane %v817_v15, 1  ;;  %v4196_v12 = vld [vmem:[%s5636_s15 + $0xbc] sm:$0x3]  ;;  %v4223_v45 = vld [vmem:[%s6564_s1 + $0x44] sm:$0x3] }
  0x49   : >> { %736 = vmatpush.bf16.msrb.mxu2 %v727_v27  ;;  %762 = vmatpush.bf16.msrb.mxu3 %v753_v28  ;;  %v4163_v27 = vld [vmem:[%s5636_s15 + $0x8] sm:$0xe]  ;;  %v4188_v28 = vld [vmem:[%s6564_s1 + $0x30] sm:$0x3]  ;;  %v1111_v15 = vunpack.c.l.b16 %v4196_v12  ;;  %v4228_v46 = vld [vmem:[%s6564_s1 + $0x46] sm:$0x3] }
  0x4a   : >> { %v784_v30 = vor.u32 %v783_v21, %v779_v20  ;;  %v820_v31 = vor.u32 %v819_v23, %v815_v22  ;;  %v1214_v23 = vsel %vm308_vm3, %v4210_v16, 0 }
  0x4d   : >> { %4128 = vmatmul.msk.bf16.vlgmr.msra.gmra.mxu0 %vm304_vm4, %v4126_v35  ;;  %4132 = vmatmul.msk.bf16.vlgmr.msra.gmra.mxu1 %vm304_vm4, %v571_v34  ;;  %v845_v34 = vunpack.c.l.b16 %v4163_v27  ;;  %v1037_v35 = vsel %vm308_vm3, %v4188_v28, 0  ;;  %v4217_v27 = vld [vmem:[%s6564_s1 + $0x40] sm:$0x3] }
  0x4e   : >> { %798 = vmatpush.bf16.msra.mxu0 %v789_v37  ;;  %834 = vmatpush.bf16.msra.mxu1 %v825_v38  ;;  %v872_v37 = vunpack.c.l.b16 %v4166_v32 }
  0x4f   : >> { %v900_v38 = vpack.c.b16 %v899_v33, %v845_v34  ;;  %v846_v39 = vpack.c.b16 %v776_v7, %v845_v34  ;;  %v1277_v34 = vsel %vm308_vm3, %v4217_v27, 0 }
  0x50   : >> { %v873_v40 = vpack.c.b16 %v812_v9, %v872_v37  ;;  %v4190_v9 = vld [vmem:[%s5636_s15 + $0xb8] sm:$0xe] }
  0x51   : >> { %v902_v41 = vshrl.u32 %v900_v38, 16  ;;  %v905_v42 = vshll.u32 %v900_v38, 16  ;;  %v847_v47 = vrot.slane %v846_v39, 1  ;;  %v1057_v14 = vunpack.c.l.b16 %v4190_v9  ;;  %v4208_v39 = vld [vmem:[%s5636_s15 + $0x10] sm:$0xf] }
  0x52   : >> { %v874_v48 = vrot.slane %v873_v40, 1  ;;  %v4209_v40 = vld [vmem:[%s5636_s15 + $0x14] sm:$0x1] }
  0x53   : >> { %v1058_v22 = vpack.c.b16 %v988_v50, %v1057_v14  ;;  %v1112_v26 = vpack.c.b16 %v1111_v15, %v1057_v14  ;;  %v4222_v9 = vld [vmem:[%s5636_s15 + $0x14] sm:$0x3]  ;;  %v4241_v14 = vld [vmem:[%s6564_s1 + $0x4c] sm:$0x3]  ;;  %v4244_v15 = vld [vmem:[%s6564_s1 + $0x4e] sm:$0x3] }
  0x55   : >> { %v1059_v29 = vrot.slane %v1058_v22, 1  ;;  %v1114_v32 = vshrl.u32 %v1112_v26, 16  ;;  %v1117_v33 = vshll.u32 %v1112_v26, 16  ;;  %v4235_v22 = vld [vmem:[%s5636_s15 + $0xc0] sm:$0xf] }
  0x57   : >> { %v1116_v37 = vrot.slane %v1114_v32, 1  ;;  %v1119_v38 = vrot.slane %v1117_v33, 2 }
  0x58   : >> { %4136 = vmatmul.msk.bf16.vlgmr.msra.gmra.mxu2 %vm304_vm4, %v607_v51  ;;  %4139 = vmatmul.msk.bf16.vlgmr.msra.gmra.mxu3 %vm304_vm4, %v634_v52  ;;  %v904_v51 = vrot.slane %v902_v41, 1  ;;  %v907_v52 = vrot.slane %v905_v42, 2  ;;  %v4212_v41 = vld [vmem:[%s5636_s15 + $0x68] sm:$0xf]  ;;  %v4213_v42 = vld [vmem:[%s5636_s15 + $0x6c] sm:$0x1] }
  0x59   : >> { %861 = vmatpush.bf16.msra.mxu2 %v852_v57  ;;  %888 = vmatpush.bf16.msra.mxu3 %v879_v58  ;;  %v989_v57 = vpack.c.b16 %v988_v50, %v987_v49  ;;  %v4201_v58 = vld [vmem:[%s6564_s1 + $0x38] sm:$0x3]  ;;  %v1120_v44 = vor.u32 %v1119_v38, %v1116_v37  ;;  %v1236_v49 = vunpack.c.l.b16 %v4212_v41  ;;  %v1237_v50 = vunpack.c.l.b16 %v4213_v42  ;;  %v4250_v38 = vld [vmem:[%s6564_s1 + $0x52] sm:$0x3]  ;;  %v4240_v41 = vld [vmem:[%s5636_s15 + $0x11c] sm:$0x1] }
  0x5a   : >> { %v908_v60 = vor.u32 %v907_v52, %v904_v51  ;;  %v1152_v1 = vsel %vm308_vm3, %v4201_v58, 0  ;;  %v1338_v51 = vsel %vm308_vm3, %v4223_v45, 0  ;;  %v1364_v52 = vsel %vm308_vm3, %v4228_v46, 0 }
  0x5b   : >> { %v993_v7 = vshll.u32 %v989_v57, 16  ;;  %v1550_v42 = vsel %vm308_vm3, %v4250_v38, 0 }
  0x5d   : >> { %4142 = vmatmul.msk.bf16.vlgmr.msrb.gmra.mxu0 %vm304_vm4, %v661_v61  ;;  %4145 = vmatmul.msk.bf16.vlgmr.msrb.gmra.mxu1 %vm304_vm4, %v695_v62  ;;  %v1023_v61 = vunpack.c.l.b16 %v4186_v55  ;;  %v1024_v62 = vunpack.c.l.b16 %v4187_v56  ;;  %v4233_v55 = vld [vmem:[%s6564_s1 + $0x48] sm:$0x3]  ;;  %v4200_v56 = vld [vmem:[%s5636_s15 + $0x10] sm:$0xf] }
  0x5e   : >> { %922 = vmatpush.bf16.msrb.mxu0 %v913_v10  ;;  %948 = vmatpush.bf16.msrb.mxu1 %v939_v11  ;;  %v991_v10 = vshrl.u32 %v989_v57, 16  ;;  %v995_v11 = vrot.slane %v993_v7, 1  ;;  %v4205_v57 = vld [vmem:[%s5636_s15 + $0x68] sm:$0xf]  ;;  %v1390_v58 = vsel %vm308_vm3, %v4233_v55, 0 }
  0x5f   : >> { %v1025_v8 = vpack.c.b16 %v1024_v62, %v1023_v61  ;;  %v4216_v61 = vld [vmem:[%s5636_s15 + $0x10] sm:$0xe] }
  0x61   : >> { %v1029_v13 = vshll.u32 %v1025_v8, 16  ;;  %v1027_v20 = vshrl.u32 %v1025_v8, 16 }
  0x63   : >> { %v1031_v21 = vrot.slane %v1029_v13, 1  ;;  %v1324_v13 = vunpack.c.l.b16 %v4222_v9 }
  0x65   : >> { %v1032_v28 = vor.u32 %v1031_v21, %v1027_v20  ;;  %v1462_v20 = vsel %vm308_vm3, %v4241_v14, 0  ;;  %v1489_v21 = vsel %vm308_vm3, %v4244_v15, 0 }
  0x68   : >> { %4149 = vmatmul.msk.bf16.vlgmr.msrb.gmra.mxu2 %vm304_vm4, %v4147_v18  ;;  %4154 = vmatmul.msk.bf16.vlgmr.msrb.gmra.mxu3 %vm304_vm4, %v4152_v19  ;;  %v996_v18 = vor.u32 %v995_v11, %v991_v10  ;;  %v4179_v19 = vld [vmem:[%s5636_s15 + $0x110] sm:$0xf]  ;;  %v1270_v11 = vunpack.c.l.b16 %v4216_v61 }
  0x69   : >> { %974 = vmatpush.bf16.msrb.mxu2 %v965_v24  ;;  %1010 = vmatpush.bf16.msrb.mxu3 %v1001_v25  ;;  %v1250_v24 = vsel %vm308_vm3, %v4214_v17, 0  ;;  %v4193_v25 = vld [vmem:[%s5636_s15 + $0x110] sm:$0xe] }
  0x6d   : >> { %4158 = vmatmul.msk.bf16.vlgmr.msra.gmra.mxu0 %vm304_vm4, %v784_v30  ;;  %4162 = vmatmul.msk.bf16.vlgmr.msra.gmra.mxu1 %vm304_vm4, %v820_v31  ;;  %v1084_v30 = vunpack.c.l.b16 %v4193_v25  ;;  %v4220_v31 = vld [vmem:[%s6564_s1 + $0x42] sm:$0x3]  ;;  %v4247_v25 = vld [vmem:[%s6564_s1 + $0x50] sm:$0x3] }
  0x6e   : >> { %1046 = vmatpush.bf16.msra.mxu0 %v1037_v35  ;;  %1073 = vmatpush.bf16.msra.mxu1 %v1064_v36  ;;  %v1304_v35 = vsel %vm308_vm3, %v4220_v31, 0 }
  0x6f   : >> { %v1085_v36 = vpack.c.b16 %v1024_v62, %v1084_v30  ;;  %v4219_v62 = vld [vmem:[%s5636_s15 + $0x68] sm:$0xe] }
  0x70   : >> { %v1297_v12 = vunpack.c.l.b16 %v4219_v62 }
  0x71   : >> { %v1086_v43 = vrot.slane %v1085_v36, 1 }
  0x78   : >> { %4165 = vmatmul.msk.bf16.vlgmr.msra.gmra.mxu2 %vm304_vm4, %v847_v47  ;;  %4168 = vmatmul.msk.bf16.vlgmr.msra.gmra.mxu3 %vm304_vm4, %v874_v48  ;;  %v1200_v47 = vunpack.c.l.b16 %v4208_v39  ;;  %v1201_v48 = vunpack.c.l.b16 %v4209_v40  ;;  %v4239_v40 = vld [vmem:[%s5636_s15 + $0x118] sm:$0xf] }
  0x79   : >> { %1100 = vmatpush.bf16.msra.mxu2 %v1091_v53  ;;  %1134 = vmatpush.bf16.msra.mxu3 %v1125_v54  ;;  %v1238_v54 = vpack.c.b16 %v1237_v50, %v1236_v49  ;;  %v1448_v46 = vunpack.c.l.b16 %v4239_v40  ;;  %v4259_v49 = vld [vmem:[%s6564_s1 + $0x56] sm:$0x3]  ;;  %v4265_v40 = vld [vmem:[%s5636_s15 + $0x70] sm:$0xf] }
  0x7a   : >> { %v1202_v53 = vpack.c.b16 %v1201_v48, %v1200_v47  ;;  %v1449_v47 = vunpack.c.l.b16 %v4240_v41  ;;  %v4266_v41 = vld [vmem:[%s5636_s15 + $0x74] sm:$0x1] }
  0x7b   : >> { %v1240_v7 = vshrl.u32 %v1238_v54, 16 }
  0x7c   : >> { %v1206_v59 = vshll.u32 %v1202_v53, 16 }
  0x7d   : >> { %4171 = vmatmul.msk.bf16.vlgmr.msrb.gmra.mxu0 %vm304_vm4, %v908_v60  ;;  %4176 = vmatmul.msk.bf16.vlgmr.msrb.gmra.mxu1 %vm304_vm4, %v4174_v63  ;;  %v1242_v60 = vshll.u32 %v1238_v54, 16  ;;  %v1204_v63 = vshrl.u32 %v1202_v53, 16  ;;  %v4249_v54 = vld [vmem:[%s5636_s15 + $0xc4] sm:$0x3] }
  0x7e   : >> { %1161 = vmatpush.bf16.msrb.mxu0 %v1152_v1  ;;  %1187 = vmatpush.bf16.msrb.mxu1 %v1178_v6  ;;  %v4237_v1 = vld [vmem:[%s6564_s1 + $0x4a] sm:$0x3]  ;;  %v1208_v6 = vrot.slane %v1206_v59, 1  ;;  %v4263_v59 = vld [vmem:[%s6564_s1 + $0x58] sm:$0x3] }
  0x7f   : >> { %v1244_v8 = vrot.slane %v1242_v60, 1  ;;  %v1426_v10 = vsel %vm308_vm3, %v4237_v1, 0  ;;  %v1536_v60 = vunpack.c.l.b16 %v4249_v54 }
  0x80   : >> { %v1209_v16 = vor.u32 %v1208_v6, %v1204_v63  ;;  %v4232_v63 = vld [vmem:[%s5636_s15 + $0x118] sm:$0xf] }
  0x81   : >> { %v1245_v17 = vor.u32 %v1244_v8, %v1240_v7 }
  0x88   : >> { %4181 = vmatmul.msk.bf16.vlgmr.msrb.gmra.mxu2 %vm304_vm4, %v4179_v19  ;;  %4185 = vmatmul.msk.bf16.vlgmr.msrb.gmra.mxu3 %vm304_vm4, %v996_v18  ;;  %v1271_v18 = vpack.c.b16 %v1201_v48, %v1270_v11  ;;  %v1298_v19 = vpack.c.b16 %v1237_v50, %v1297_v12  ;;  %v4254_v48 = vld [vmem:[%s6564_s1 + $0x54] sm:$0x3]  ;;  %v4246_v12 = vld [vmem:[%s5636_s15 + $0x118] sm:$0xe] }
  0x89   : >> { %1223 = vmatpush.bf16.msrb.mxu2 %v1214_v23  ;;  %1259 = vmatpush.bf16.msrb.mxu3 %v1250_v24  ;;  %v5856_v23 = vld [vmem:[%s5636_s15 + $0xc4] sm:$0x1]  ;;  %v1325_v24 = vpack.c.b16 %v1324_v13, %v1270_v11  ;;  %v1577_v55 = vsel %vm308_vm3, %v4254_v48, 0  ;;  %v1662_v48 = vunpack.c.l.b16 %v4266_v41 }
  0x8a   : >> { %v1272_v26 = vrot.slane %v1271_v18, 1  ;;  %v1299_v27 = vrot.slane %v1298_v19, 1  ;;  %v1509_v18 = vunpack.c.l.b16 %v4246_v12  ;;  %v4267_v19 = vld [vmem:[%s6564_s1 + $0x5a] sm:$0x3] }
  0x8b   : >> { %v1327_v33 = vshrl.u32 %v1325_v24, 16 }
  0x8d   : >> { %4189 = vmatmul.msk.bf16.vlgmr.msra.gmra.mxu0 %vm304_vm4, %v1032_v28  ;;  %4192 = vmatmul.msk.bf16.vlgmr.msra.gmra.mxu1 %vm304_vm4, %v1059_v29  ;;  %v1412_v28 = vunpack.c.l.b16 %v4235_v22  ;;  %v1413_v29 = vunpack.c.l.b16 %v5856_v23  ;;  %v1329_v37 = vrot.slane %v1327_v33, 1  ;;  %v1675_v23 = vsel %vm308_vm3, %v4267_v19, 0 }
  0x8e   : >> { %1286 = vmatpush.bf16.msra.mxu0 %v1277_v34  ;;  %1313 = vmatpush.bf16.msra.mxu1 %v1304_v35  ;;  %v1516_v34 = vsel %vm308_vm3, %v4247_v25, 0  ;;  %v1330_v35 = vshll.u32 %v1325_v24, 16  ;;  %v1510_v33 = vpack.c.b16 %v1449_v47, %v1509_v18  ;;  %v4272_v18 = vld [vmem:[%s5636_s15 + $0x70] sm:$0xe] }
  0x8f   : >> { %v1414_v36 = vpack.c.b16 %v1413_v29, %v1412_v28 }
  0x90   : >> { %v1332_v39 = vrot.slane %v1330_v35, 2 }
  0x92   : >> { %v1333_v50 = vor.u32 %v1332_v39, %v1329_v37  ;;  %v5906_v37 = vld [vmem:[%s5636_s15 + $0x1c] sm:$0x1] }
  0x98   : >> { %4195 = vmatmul.msk.bf16.vlgmr.msra.gmra.mxu2 %vm304_vm4, %v1086_v43  ;;  %4198 = vmatmul.msk.bf16.vlgmr.msra.gmra.mxu3 %vm304_vm4, %v1120_v44  ;;  %v1418_v43 = vshll.u32 %v1414_v36, 16 }
  0x99   : >> { %1347 = vmatpush.bf16.msra.mxu2 %v1338_v51  ;;  %1373 = vmatpush.bf16.msra.mxu3 %v1364_v52  ;;  %v4227_v51 = vld [vmem:[%s5636_s15 + $0xc0] sm:$0xf]  ;;  %v1416_v52 = vshrl.u32 %v1414_v36, 16  ;;  %v4261_v36 = vld [vmem:[%s5636_s15 + $0x18] sm:$0xf] }
  0x9a   : >> { %v1420_v53 = vrot.slane %v1418_v43, 1 }
  0x9c   : >> { %v1421_v61 = vor.u32 %v1420_v53, %v1416_v52 }
  0x9d   : >> { %4202 = vmatmul.msk.bf16.vlgmr.msrb.gmra.mxu0 %vm304_vm4, %v4200_v56  ;;  %4207 = vmatmul.msk.bf16.vlgmr.msrb.gmra.mxu1 %vm304_vm4, %v4205_v57  ;;  %v1603_v56 = vsel %vm308_vm3, %v4259_v49, 0  ;;  %v1450_v57 = vpack.c.b16 %v1449_v47, %v1448_v46  ;;  %v1626_v46 = vunpack.c.l.b16 %v5906_v37  ;;  %v1661_v47 = vunpack.c.l.b16 %v4265_v40 }
  0x9e   : >> { %1399 = vmatpush.bf16.msrb.mxu0 %v1390_v58  ;;  %1435 = vmatpush.bf16.msrb.mxu1 %v1426_v10  ;;  %v4243_v58 = vld [vmem:[%s5636_s15 + $0xc0] sm:$0xe]  ;;  %v1639_v10 = vsel %vm308_vm3, %v4263_v59, 0 }
  0x9f   : >> { %v1482_v6 = vunpack.c.l.b16 %v4243_v58  ;;  %v1454_v9 = vshll.u32 %v1450_v57, 16  ;;  %v1452_v15 = vshrl.u32 %v1450_v57, 16 }
  0xa1   : >> { %v1537_v13 = vpack.c.b16 %v1536_v60, %v1482_v6 }
  0xa3   : >> { %v1542_v22 = vshll.u32 %v1537_v13, 16 }
  0xa5   : >> { %v1544_v35 = vrot.slane %v1542_v22, 2 }
  0xa8   : >> { %4211 = vmatmul.msk.bf16.vlgmr.msrb.gmra.mxu2 %vm304_vm4, %v1209_v16  ;;  %4215 = vmatmul.msk.bf16.vlgmr.msrb.gmra.mxu3 %vm304_vm4, %v1245_v17  ;;  %v1456_v16 = vrot.slane %v1454_v9, 1  ;;  %v1483_v17 = vpack.c.b16 %v1413_v29, %v1482_v6 }
  0xa9   : >> { %1471 = vmatpush.bf16.msrb.mxu2 %v1462_v20  ;;  %1498 = vmatpush.bf16.msrb.mxu3 %v1489_v21  ;;  %v1539_v21 = vshrl.u32 %v1537_v13, 16  ;;  %v4275_v13 = vld [vmem:[%s5636_s15 + $0x1c] sm:$0x3] }
  0xaa   : >> { %v321_v30 = vpop.f32.mrf.mxu0  ;;  %v340_v31 = vpop.f32.mrf.mxu1  ;;  %v1457_v29 = vor.u32 %v1456_v16, %v1452_v15 }
  0xab   : >> { %v341_v32 = vadd.f32 %v340_v31, %v321_v30  ;;  %v4270_v30 = vld [vmem:[%s6564_s1 + $0x5c] sm:$0x3]  ;;  %v4273_v31 = vld [vmem:[%s6564_s1 + $0x5e] sm:$0x3] }
  0xac   : >> { %v1702_v38 = vsel %vm308_vm3, %v4270_v30, 0  ;;  %v1729_v39 = vsel %vm308_vm3, %v4273_v31, 0 }
  0xad   : >> { %4218 = vmatmul.msk.bf16.vlgmr.msra.gmra.mxu0 %vm304_vm4, %v1272_v26  ;;  %4221 = vmatmul.msk.bf16.vlgmr.msra.gmra.mxu1 %vm304_vm4, %v1299_v27 }
  0xae   : >> { %1525 = vmatpush.bf16.msra.mxu0 %v1516_v34  ;;  %1559 = vmatpush.bf16.msra.mxu1 %v1550_v42  ;;  %v1541_v34 = vrot.slane %v1539_v21, 1  ;;  %v1511_v42 = vrot.slane %v1510_v33, 1 }
  0xb0   : >> { %v1545_v43 = vor.u32 %v1544_v35, %v1541_v34 }
  0xb2   : >> { %v323_v44 = vpop.f32.mrf.mxu0  ;;  %v342_v45 = vpop.f32.mrf.mxu1 }
  0xb3   : >> { %v4276_v44 = vld [vmem:[%s6564_s1 + $0x60] sm:$0x3]  ;;  %v1625_v45 = vunpack.c.l.b16 %v4261_v36 }
  0xb4   : >> { %v1763_v53 = vsel %vm308_vm3, %v4276_v44, 0 }
  0xb8   : >> { %4224 = vmatmul.msk.bf16.vlgmr.msra.gmra.mxu2 %vm304_vm4, %v1333_v50  ;;  %4229 = vmatmul.msk.bf16.vlgmr.msra.gmra.mxu3 %vm304_vm4, %v4227_v51 }
  0xb9   : >> { %1586 = vmatpush.bf16.msra.mxu2 %v1577_v55  ;;  %1612 = vmatpush.bf16.msra.mxu3 %v1603_v56  ;;  %v1627_v55 = vpack.c.b16 %v1626_v46, %v1625_v45  ;;  %v1663_v56 = vpack.c.b16 %v1662_v48, %v1661_v47 }
  0xba   : >> { %v438_v62 = vpop.f32.mrf.mxu0  ;;  %v465_v1 = vpop.f32.mrf.mxu1 }
  0xbb   : >> { %v375_v7 = vpop.f32.mrf.mxu2  ;;  %v411_v8 = vpop.f32.mrf.mxu3  ;;  %v1631_v59 = vshll.u32 %v1627_v55, 16  ;;  %v1667_v60 = vshll.u32 %v1663_v56, 16  ;;  %v1629_v9 = vshrl.u32 %v1627_v55, 16 }
  0xbc   : >> { %v379_v11 = vadd.f32 %v375_v7, %v341_v32  ;;  %v1484_v32 = vrot.slane %v1483_v17, 1  ;;  %v4253_v7 = vld [vmem:[%s5636_s15 + $0x18] sm:$0xf]  ;;  %v1749_v17 = vunpack.c.l.b16 %v4275_v13 }
  0xbd   : >> { %4234 = vmatmul.msk.bf16.vlgmr.msrb.gmra.mxu0 %vm304_vm4, %v4232_v63  ;;  %4238 = vmatmul.msk.bf16.vlgmr.msrb.gmra.mxu1 %vm304_vm4, %v1421_v61  ;;  %v1669_v12 = vrot.slane %v1667_v60, 1 }
  0xbe   : >> { %v415_v14 = vadd.f32 %v411_v8, %v379_v11  ;;  %1648 = vmatpush.bf16.msrb.mxu0 %v1639_v10  ;;  %1684 = vmatpush.bf16.msrb.mxu1 %v1675_v23  ;;  %v4258_v8 = vld [vmem:[%s5636_s15 + $0x70] sm:$0xf]  ;;  %v1633_v10 = vrot.slane %v1631_v59, 1  ;;  %v1665_v11 = vshrl.u32 %v1663_v56, 16 }
  0xc0   : >> { %v442_v20 = vadd.f32 %v438_v62, %v415_v14  ;;  %v4269_v14 = vld [vmem:[%s5636_s15 + $0x18] sm:$0xe]  ;;  %v1634_v15 = vor.u32 %v1633_v10, %v1629_v9  ;;  %v1670_v16 = vor.u32 %v1669_v12, %v1665_v11  ;;  %s4278_s15 = sshll.u32 %s5464_s14, 4  ;;  %s292_s14 = sadd.s32 1, %s5464_s14  }
  0xc1   : >> { %v1695_v23 = vunpack.c.l.b16 %v4269_v14  ;;  %s4053_s29 = scalar_lea.vmem [#allocation2], %s4278_s15  ;;  %p289_p11 = scmp.ge.s32.totalorder %s292_s14, 8  }
  0xc2   : >> { %v469_v24 = vadd.f32 %v465_v1, %v442_v20  ;;  %v440_v25 = vpop.f32.mrf.mxu0  ;;  %v467_v26 = vpop.f32.mrf.mxu1  ;;  %vm1808_vm5 = vcmask (%p289_p11), 519168   ;;  %s5335_s28 = sshll.u32 (%p289_p11), %s5526_s25, 4  ;;  %s3965_s16 = sshll.u32 (%p289_p11), %s5608_s10, 4  ;;  %s3966_s16 = int_to_ptr.vmem [resolvable:$true] %s3965_s16 }
  0xc3   : >> { %v377_v27 = vpop.f32.mrf.mxu2  ;;  %v413_v28 = vpop.f32.mrf.mxu3  ;;  %v1722_v25 = vunpack.c.l.b16 %v4272_v18  ;;  %v1750_v26 = vpack.c.b16 %v1749_v17, %v1695_v23  ;;  %s3964_s11 = scalar_lea.hbm (%p289_p11), %s6569_s6, %s5335_s28  ;;  %s3953_s25 = scalar_lea.sflag (%p289_p11), [#allocation7], %s245_s9 }
  0xc4   : > { %s3967_s17 = sshll.u32 (%p289_p11), %s3964_s11, 4  ;;  %s5414_s19 = scalar_lea.hbm (%p289_p11), %s6569_s6, 32  ;;  %s3968_s17 = int_to_ptr.hbm [resolvable:$true] %s3967_s17 }
  0xc5   : >> { %v1723_v30 = vpack.c.b16 %v1662_v48, %v1722_v25  ;;  %v1752_v31 = vshrl.u32 %v1750_v26, 16  ;;  %s5408_s14 = sshra.s32 (%p289_p11), %s3968_s17, 4  ;;  %s5409_s14 = int_to_ptr.hbm [resolvable:$true] %s5408_s14 }
  0xc6   : > { %s5410_s12 = scalar_lea.hbm (%p289_p11), %s5409_s14, 16  ;;  %p5415_p1 = scmp.lt.s32.totalorder (%p289_p11), %s5409_s14, %s6569_s6 }
  0xc7   : >> { %v1754_v40 = vrot.slane %v1752_v31, 1  ;;  %p5411_p12 = scmp.ne.s32.totalorder (%p289_p11), %s5409_s14, %s5410_s12  ;;  %p5416_p2 = scmp.lt.s32.totalorder (%p289_p11), %s5414_s19, %s5410_s12 }
  0xc8   : >> { %4242 = vmatmul.msk.bf16.vlgmr.msrb.gmra.mxu2 %vm304_vm4, %v1457_v29  ;;  %4245 = vmatmul.msk.bf16.vlgmr.msrb.gmra.mxu3 %vm304_vm4, %v1484_v32  ;;  %v1696_v29 = vpack.c.b16 %v1626_v46, %v1695_v23  ;;  %v1755_v32 = vshll.u32 %v1750_v26, 16 }
  0xc9   : >> { %1711 = vmatpush.bf16.msrb.mxu2 %v1702_v38  ;;  %1738 = vmatpush.bf16.msrb.mxu3 %v1729_v39  ;;  %v1724_v39 = vrot.slane %v1723_v30, 1  ;;  %p5412_p13 = pnand (%p289_p11), %p5411_p12, %p5543_p5  ;;  %p5417_p3 = por (%p289_p11), %p5416_p2, %p5415_p1 }
  0xca   : >> { %v551_v49 = vpop.f32.mrf.mxu0  ;;  %v587_v50 = vpop.f32.mrf.mxu1  ;;  %v1697_v38 = vrot.slane %v1696_v29, 1  ;;  %v1757_v41 = vrot.slane %v1755_v32, 2 }
  0xcb   : >> { %v499_v51 = vpop.f32.mrf.mxu2  ;;  %v525_v52 = vpop.f32.mrf.mxu3  ;;  %p5413_p0 = pneg (%p289_p11), %p5412_p13 }
  0xcc   : >> { %v503_v54 = vadd.f32 %v499_v51, %v469_v24 }
  0xcd   : >> { %4248 = vmatmul.msk.bf16.vlgmr.msra.gmra.mxu0 %vm304_vm4, %v1511_v42  ;;  %4251 = vmatmul.msk.bf16.vlgmr.msra.gmra.mxu1 %vm304_vm4, %v1545_v43  ;;  %v1758_v42 = vor.u32 %v1757_v41, %v1754_v40  ;;  %p5418_p4 = pnand (%p289_p11), %p5417_p3, %p5413_p0 }
  0xce   : >> { %v529_v57 = vadd.f32 %v525_v52, %v503_v54  ;;  %1772 = vmatpush.bf16.msra.mxu0 %v1763_v53 }
  0xd0   : >> { %v555_v58 = vadd.f32 %v551_v49, %v529_v57 }
  0xd2   : >> { %v591_v61 = vadd.f32 %v587_v50, %v555_v58  ;;  %v553_v62 = vpop.f32.mrf.mxu0  ;;  %v589_v63 = vpop.f32.mrf.mxu1 }
  0xd3   : >> { %v501_v1 = vpop.f32.mrf.mxu2  ;;  %v527_v6 = vpop.f32.mrf.mxu3 }
  0xd8   : >> { %4255 = vmatmul.msk.bf16.vlgmr.msra.gmra.mxu2 %vm304_vm4, %v4253_v7  ;;  %4260 = vmatmul.msk.bf16.vlgmr.msra.gmra.mxu3 %vm304_vm4, %v4258_v8 }
  0xda   : >> { %v677_v19 = vpop.f32.mrf.mxu0  ;;  %v711_v20 = vpop.f32.mrf.mxu1 }
  0xdb   : >> { %v623_v21 = vpop.f32.mrf.mxu2  ;;  %v650_v22 = vpop.f32.mrf.mxu3 }
  0xdc   : >> { %v627_v24 = vadd.f32 %v623_v21, %v591_v61 }
  0xdd   : >> { %4264 = vmatmul.msk.bf16.vlgmr.msrb.gmra.mxu0 %vm304_vm4, %v1634_v15  ;;  %4268 = vmatmul.msk.bf16.vlgmr.msrb.gmra.mxu1 %vm304_vm4, %v1670_v16 }
  0xde   : >> { %v654_v27 = vadd.f32 %v650_v22, %v627_v24 }
  0xe0   : >> { %v681_v28 = vadd.f32 %v677_v19, %v654_v27 }
  0xe2   : >> { %v715_v33 = vadd.f32 %v711_v20, %v681_v28  ;;  %v679_v34 = vpop.f32.mrf.mxu0  ;;  %v713_v35 = vpop.f32.mrf.mxu1 }
  0xe3   : >> { %v625_v36 = vpop.f32.mrf.mxu2  ;;  %v652_v37 = vpop.f32.mrf.mxu3 }
  0xe8   : >> { %4271 = vmatmul.msk.bf16.vlgmr.msrb.gmra.mxu2 %vm304_vm4, %v1697_v38  ;;  %4274 = vmatmul.msk.bf16.vlgmr.msrb.gmra.mxu3 %vm304_vm4, %v1724_v39 }
  0xea   : >> { %v800_v43 = vpop.f32.mrf.mxu0  ;;  %v836_v44 = vpop.f32.mrf.mxu1 }
  0xeb   : >> { %v738_v45 = vpop.f32.mrf.mxu2  ;;  %v764_v46 = vpop.f32.mrf.mxu3 }
  0xec   : >> { %v742_v47 = vadd.f32 %v738_v45, %v715_v33 }
  0xed   : >> { %4277 = vmatmul.msk.bf16.vlgmr.msra.gmra.mxu0 %vm304_vm4, %v1758_v42 }
  0xee   : >> { %v768_v48 = vadd.f32 %v764_v46, %v742_v47 }
  0xf0   : >> { %v804_v49 = vadd.f32 %v800_v43, %v768_v48 }
  0xf2   : >> { %v840_v50 = vadd.f32 %v836_v44, %v804_v49  ;;  %v802_v51 = vpop.f32.mrf.mxu0  ;;  %v838_v52 = vpop.f32.mrf.mxu1 }
  0xf3   : >> { %v740_v53 = vpop.f32.mrf.mxu2  ;;  %v766_v54 = vpop.f32.mrf.mxu3 }
  0xfa   : >> { %v924_v55 = vpop.f32.mrf.mxu0  ;;  %v950_v56 = vpop.f32.mrf.mxu1 }
  0xfb   : >> { %v863_v57 = vpop.f32.mrf.mxu2  ;;  %v890_v58 = vpop.f32.mrf.mxu3 }
  0xfc   : >> { %v867_v63 = vadd.f32 %v863_v57, %v840_v50 }
  0xfe   : >> { %v894_v9 = vadd.f32 %v890_v58, %v867_v63 }
 0x100   : >> { %v928_v10 = vadd.f32 %v924_v55, %v894_v9 }
 0x102   : >> { %v926_v59 = vpop.f32.mrf.mxu0  ;;  %v952_v60 = vpop.f32.mrf.mxu1  ;;  %v954_v15 = vadd.f32 %v950_v56, %v928_v10 }
 0x103   : >> { %v865_v61 = vpop.f32.mrf.mxu2  ;;  %v892_v62 = vpop.f32.mrf.mxu3 }
 0x10a   : >> { %v1048_v1 = vpop.f32.mrf.mxu0  ;;  %v1075_v6 = vpop.f32.mrf.mxu1 }
 0x10b   : >> { %v976_v7 = vpop.f32.mrf.mxu2  ;;  %v1012_v8 = vpop.f32.mrf.mxu3 }
 0x10c   : >> { %v980_v16 = vadd.f32 %v976_v7, %v954_v15 }
 0x10e   : >> { %v1016_v21 = vadd.f32 %v1012_v8, %v980_v16 }
 0x110   : >> { %v1052_v22 = vadd.f32 %v1048_v1, %v1016_v21 }
 0x112   : >> { %v1050_v11 = vpop.f32.mrf.mxu0  ;;  %v1077_v12 = vpop.f32.mrf.mxu1  ;;  %v1079_v27 = vadd.f32 %v1075_v6, %v1052_v22 }
 0x113   : >> { %v978_v13 = vpop.f32.mrf.mxu2  ;;  %v1014_v14 = vpop.f32.mrf.mxu3 }
 0x11a   : >> { %v1163_v17 = vpop.f32.mrf.mxu0  ;;  %v1189_v18 = vpop.f32.mrf.mxu1 }
 0x11b   : >> { %v1102_v19 = vpop.f32.mrf.mxu2  ;;  %v1136_v20 = vpop.f32.mrf.mxu3 }
 0x11c   : >> { %v1106_v28 = vadd.f32 %v1102_v19, %v1079_v27 }
 0x11e   : >> { %v1140_v29 = vadd.f32 %v1136_v20, %v1106_v28 }
 0x120   : >> { %v1167_v34 = vadd.f32 %v1163_v17, %v1140_v29 }
 0x122   : >> { %v1165_v23 = vpop.f32.mrf.mxu0  ;;  %v1191_v24 = vpop.f32.mrf.mxu1  ;;  %v1193_v35 = vadd.f32 %v1189_v18, %v1167_v34  ;;  %v5467_v34 = vmov (%p289_p11), 0  }
 0x123   : >> { %v1104_v25 = vpop.f32.mrf.mxu2  ;;  %v1138_v26 = vpop.f32.mrf.mxu3  ;;  %5389 = vset.pattern.permute.xlu1 (%p289_p11), %v5467_v34  ;;  %5388 = vset.pattern.permute.xlu0 (%p289_p11), %v5467_v34  ;;  %v5207_v34 = vld [vmem:[%s6566_s3 + $0x80] sm:$0xff] (%p289_p11) }
 0x124   : >> { %v1780_v26 = vperm.slane %v5568_v2, 0  ;;  %1878 = vperm.xlu1 (%p289_p11), %5389, %v5558_v0   ;;  %1995 = vperm.xlu0 (%p289_p11), %5388, %v5579_v4   ;;  %v5197_v2 = vld [vmem:[%s6566_s3 + $0x30] sm:$0xff] (%p289_p11)  ;;  %v5196_v0 = vld [vmem:[%s6566_s3 + $0x28] sm:$0xff] (%p289_p11) }
 0x12a   : >> { %v1288_v30 = vpop.f32.mrf.mxu0  ;;  %v1315_v31 = vpop.f32.mrf.mxu1 }
 0x12b   : >> { %v1225_v32 = vpop.f32.mrf.mxu2  ;;  %v1261_v33 = vpop.f32.mrf.mxu3 }
 0x12c   : >> { %v1229_v40 = vadd.f32 %v1225_v32, %v1193_v35  ;;  %1883 = vperm.xlu1 (%p289_p11), %5389, %v5573_v3   ;;  %2000 = vperm.xlu0 (%p289_p11), %5388, %v5584_v5  }
 0x12e   : >> { %v1265_v41 = vadd.f32 %v1261_v33, %v1229_v40  ;;  %v5198_v33 = vld [vmem:[%s6566_s3 + $0x38] sm:$0xff] (%p289_p11) }
 0x12f   : > { %1940 = vmatpush.bf16.msra.mxu0 (%p289_p11), %v5198_v33 }
 0x130   : >> { %v1292_v46 = vadd.f32 %v1288_v30, %v1265_v41 }
 0x132   : >> { %v1290_v36 = vpop.f32.mrf.mxu0  ;;  %v1317_v37 = vpop.f32.mrf.mxu1  ;;  %v1319_v47 = vadd.f32 %v1315_v31, %v1292_v46 }
 0x133   : >> { %v1227_v38 = vpop.f32.mrf.mxu2  ;;  %v1263_v39 = vpop.f32.mrf.mxu3  ;;  %1941 = vmatpush.bf16.msra.mxu0 (%p289_p11), %v5197_v2 }
 0x137   : > { %1942 = vmatpush.bf16.msra.mxu0 (%p289_p11), %v5196_v0  ;;  %v5205_v0 = vld [vmem:[%s6566_s3 + $0x70] sm:$0xff] (%p289_p11) }
 0x13a   : >> { %v1401_v42 = vpop.f32.mrf.mxu0  ;;  %v1437_v43 = vpop.f32.mrf.mxu1 }
 0x13b   : >> { %v1349_v44 = vpop.f32.mrf.mxu2  ;;  %v1375_v45 = vpop.f32.mrf.mxu3 }
 0x13c   : >> { %v1353_v48 = vadd.f32 %v1349_v44, %v1319_v47 }
 0x13e   : >> { %v1379_v53 = vadd.f32 %v1375_v45, %v1353_v48 }
 0x140   : >> { %v1405_v54 = vadd.f32 %v1401_v42, %v1379_v53 }
 0x142   : >> { %v1403_v49 = vpop.f32.mrf.mxu0  ;;  %v1439_v50 = vpop.f32.mrf.mxu1  ;;  %v1441_v59 = vadd.f32 %v1437_v43, %v1405_v54 }
 0x143   : >> { %v1351_v51 = vpop.f32.mrf.mxu2  ;;  %v1377_v52 = vpop.f32.mrf.mxu3 }
 0x144   : > { %v5195_v51 = vld [vmem:[%s6566_s3 + $0x20] sm:$0xff] (%p289_p11) }
 0x145   : > { %1943 = vmatpush.bf16.msra.mxu0 (%p289_p11), %v5195_v51  ;;  %v5224_v51 = vld [vmem:[%s6566_s3 + $0x108] sm:$0xff] (%p289_p11) }
 0x14a   : >> { %v1527_v55 = vpop.f32.mrf.mxu0  ;;  %v1561_v56 = vpop.f32.mrf.mxu1 }
 0x14b   : >> { %v1473_v57 = vpop.f32.mrf.mxu2  ;;  %v1500_v58 = vpop.f32.mrf.mxu3 }
 0x14c   : >> { %v1477_v60 = vadd.f32 %v1473_v57, %v1441_v59 }
 0x14e   : >> { %v1504_v6 = vadd.f32 %v1500_v58, %v1477_v60 }
 0x150   : >> { %v1531_v7 = vadd.f32 %v1527_v55, %v1504_v6 }
 0x152   : >> { %v1529_v61 = vpop.f32.mrf.mxu0  ;;  %v1563_v62 = vpop.f32.mrf.mxu1  ;;  %v1565_v12 = vadd.f32 %v1561_v56, %v1531_v7 }
 0x153   : >> { %v1475_v63 = vpop.f32.mrf.mxu2  ;;  %v1502_v1 = vpop.f32.mrf.mxu3 }
 0x15a   : >> { %v1650_v8 = vpop.f32.mrf.mxu0  ;;  %v1686_v9 = vpop.f32.mrf.mxu1 }
 0x15b   : >> { %v1588_v10 = vpop.f32.mrf.mxu2  ;;  %v1614_v11 = vpop.f32.mrf.mxu3 }
 0x15c   : >> { %v1592_v13 = vadd.f32 %v1588_v10, %v1565_v12 }
 0x15e   : >> { %v1618_v14 = vadd.f32 %v1614_v11, %v1592_v13 }
 0x160   : >> { %v1654_v19 = vadd.f32 %v1650_v8, %v1618_v14 }
 0x162   : >> { %v1652_v15 = vpop.f32.mrf.mxu0  ;;  %v1688_v16 = vpop.f32.mrf.mxu1  ;;  %v1690_v20 = vadd.f32 %v1686_v9, %v1654_v19 }
 0x163   : >> { %v1590_v17 = vpop.f32.mrf.mxu2  ;;  %v1616_v18 = vpop.f32.mrf.mxu3 }
 0x16a   : >> { %v1774_v21 = vpop.f32.mrf.mxu0 }
 0x16b   : >> { %v1713_v22 = vpop.f32.mrf.mxu2  ;;  %v1740_v23 = vpop.f32.mrf.mxu3 }
 0x16c   : >> { %v1717_v24 = vadd.f32 %v1713_v22, %v1690_v20 }
 0x16e   : >> { %v1744_v25 = vadd.f32 %v1740_v23, %v1717_v24 }
 0x170   : >> { %v1778_v27 = vadd.f32 %v1774_v21, %v1744_v25  ;;  %v5210_v25 = vld [vmem:[%s6566_s3 + $0x98] sm:$0xff] (%p289_p11) }
 0x171   : > { %2158 = vmatpush.bf16.msrb.mxu0 (%p289_p11), %v5210_v25 }
 0x172   : >> { %v1782_v28 = vadd.f32 %v1780_v26, %v1778_v27  ;;  %v1776_v29 = vpop.f32.mrf.mxu0  ;;  %291 = sbr.rel (!%p289_p11) target bundleno = 40 (0x28), region = 198 }
 0x173   : >> { %v1715_v30 = vpop.f32.mrf.mxu2  ;;  %v1742_v31 = vpop.f32.mrf.mxu3  ;;  %v5208_v29 = vld [vmem:[%s6566_s3 + $0x88] sm:$0xff] (%p289_p11) }
 0x174   : >> { %v1783_v32 = vmax.f32 %v1782_v28, 0.0  ;;  %v5209_v28 = vld [vmem:[%s6566_s3 + $0x90] sm:$0xff] (%p289_p11) }
 0x175   : > { %2159 = vmatpush.bf16.msrb.mxu0 (%p289_p11), %v5209_v28 }
 0x176   : >> { %4279 = vst.msk [vmem:[%s4053_s29 + $0x11] sm:$0xff] %vm256_vm0, %v1783_v32 }
 0x179   : > { %2160 = vmatpush.bf16.msrb.mxu0 %v5208_v29 }
 0x17d   : > { %v1787_v35 = vld [vmem:[#allocation2] sm:$0xff]  ;;  %v1788_v36 = vld [vmem:[#allocation2 + $0x8] sm:$0x3]  ;;  %v1790_v37 = vld [vmem:[#allocation2 + $0x10] sm:$0xff]  ;;  %2161 = vmatpush.bf16.msrb.mxu0 %v5207_v34 }
 0x17e   : > { %v1791_v38 = vld [vmem:[#allocation2 + $0x18] sm:$0x3]  ;;  %v1795_v39 = vld [vmem:[#allocation2 + $0x20] sm:$0xff]  ;;  %v1792_v40 = vmax.f32 %v1787_v35, %v1790_v37  ;;  %v1796_v42 = vld [vmem:[#allocation2 + $0x28] sm:$0x3] }
 0x17f   : > { %v1793_v41 = vmax.f32 %v1788_v36, %v1791_v38  ;;  %v1813_v45 = vld [vmem:[#allocation2 + $0x30] sm:$0xff]  ;;  %v1811_v46 = vld [vmem:[#allocation2 + $0x28] sm:$0x3]  ;;  %v1814_v47 = vld [vmem:[#allocation2 + $0x38] sm:$0x3] }
 0x180   : > { %v1797_v43 = vmax.f32 %v1792_v40, %v1795_v39  ;;  %v1815_v4 = vmax.f32 %v1795_v39, %v1813_v45  ;;  %v1818_v48 = vld [vmem:[#allocation2 + $0x40] sm:$0xff]  ;;  %v1816_v49 = vmax.f32 %v1811_v46, %v1814_v47  ;;  %v1819_v50 = vld [vmem:[#allocation2 + $0x48] sm:$0x3]  ;;  %v1833_v55 = vld [vmem:[#allocation2 + $0x50] sm:$0xff] }
 0x181   : > { %v1798_v44 = vmax.f32 %v1793_v41, %v1796_v42  ;;  %v1831_v54 = vld [vmem:[#allocation2 + $0x48] sm:$0x3]  ;;  %v1834_v60 = vld [vmem:[#allocation2 + $0x58] sm:$0x3]  ;;  %v1835_v5 = vmax.f32 %v1818_v48, %v1833_v55  ;;  %v1838_v62 = vld [vmem:[#allocation2 + $0x60] sm:$0xff] }
 0x182   : > { %1799 = vst.msk [vmem:[#allocation3] sm:$0xff] %vm256_vm0, %v1797_v43  ;;  %v1820_v52 = vmax.f32 %v1815_v4, %v1818_v48  ;;  %v1821_v53 = vmax.f32 %v1816_v49, %v1819_v50  ;;  %v1836_v61 = vmax.f32 %v1831_v54, %v1834_v60  ;;  %v1839_v63 = vld [vmem:[#allocation2 + $0x68] sm:$0x3]  ;;  %v1853_v8 = vld [vmem:[#allocation2 + $0x70] sm:$0xff]  ;;  %v1854_v13 = vld [vmem:[#allocation2 + $0x78] sm:$0x3] }
 0x183   : > { %1800 = vst.msk [vmem:[#allocation3 + $0x8] sm:$0x3] %vm258_vm1, %v1798_v44  ;;  %v1840_v1 = vmax.f32 %v1835_v5, %v1838_v62  ;;  %v1851_v7 = vld [vmem:[#allocation2 + $0x68] sm:$0x3]  ;;  %v1855_v15 = vmax.f32 %v1838_v62, %v1853_v8  ;;  %v1858_v17 = vld [vmem:[#allocation2 + $0x80] sm:$0xff]  ;;  %v5194_v36 = vld [vmem:[%s6566_s3 + $0x18] sm:$0xff] }
 0x184   : > { %v1841_v6 = vmax.f32 %v1836_v61, %v1839_v63  ;;  %v1856_v16 = vmax.f32 %v1851_v7, %v1854_v13  ;;  %v1859_v18 = vld [vmem:[#allocation2 + $0x88] sm:$0x3]  ;;  %v5202_v37 = vld [vmem:[%s6566_s3 + $0x58] sm:$0xff]  ;;  %1981 = vmatpush.bf16.msra.mxu1 %v5194_v36  ;;  %v5193_v46 = vld [vmem:[%s6566_s3 + $0x10] sm:$0xff] }
 0x185   : > { %v1860_v19 = vmax.f32 %v1855_v15, %v1858_v17  ;;  %v5206_v38 = vld [vmem:[%s6566_s3 + $0x78] sm:$0xff]  ;;  %2046 = vmatpush.bf16.msra.mxu2 %v5202_v37  ;;  %v5201_v47 = vld [vmem:[%s6566_s3 + $0x50] sm:$0xff]  ;;  %v5192_v48 = vld [vmem:[%s6566_s3 + $0x8] sm:$0xff] }
 0x186   : > { %v1861_v20 = vmax.f32 %v1856_v16, %v1859_v18  ;;  %2103 = vmatpush.bf16.msra.mxu3 %v5206_v38  ;;  %v5226_v41 = vld [vmem:[%s6566_s3 + $0x118] sm:$0xff]  ;;  %v5225_v4 = vld [vmem:[%s6566_s3 + $0x110] sm:$0xff]  ;;  %v5200_v49 = vld [vmem:[%s6566_s3 + $0x48] sm:$0xff] }
 0x187   : > { %v5204_v50 = vld [vmem:[%s6566_s3 + $0x68] sm:$0xff]  ;;  %v5203_v54 = vld [vmem:[%s6566_s3 + $0x60] sm:$0xff]  ;;  %v5213_v60 = vld [vmem:[%s6566_s3 + $0xb0] sm:$0xff] }
 0x188   : > { %1982 = vmatpush.bf16.msra.mxu1 %v5193_v46  ;;  %v5223_v55 = vld [vmem:[%s6566_s3 + $0x100] sm:$0xff]  ;;  %v5216_v5 = vld [vmem:[%s6566_s3 + $0xc8] sm:$0xff]  ;;  %v5234_v46 = vld [vmem:[%s6566_s3 + $0x158] sm:$0xff] }
 0x189   : > { %v1801_v56 = vld [vmem:[#allocation3] ss:$2 sm:$0xf]  ;;  %v1803_v57 = vld [vmem:[#allocation3 + $0x1] ss:$2 sm:$0xf]  ;;  %2047 = vmatpush.bf16.msra.mxu2 %v5201_v47 }
 0x18a   : > { %v1804_v58 = vmax.f32 %v1801_v56, %v1803_v57  ;;  %v1806_v59 = vld [vmem:[#allocation3 + $0x2] ss:$2 sm:$0xf]  ;;  %2104 = vmatpush.bf16.msra.mxu3 %v5205_v0  ;;  %v5218_v56 = vld [vmem:[%s6566_s3 + $0xd8] sm:$0xff] }
 0x18b   : > { %1822 = vst.msk [vmem:[#allocation3] sm:$0xff] %vm256_vm0, %v1820_v52  ;;  %v5191_v52 = vld [vmem:[%s6566_s3] sm:$0xff]  ;;  %v5214_v57 = vld [vmem:[%s6566_s3 + $0xb8] sm:$0xff]  ;;  %v5212_v61 = vld [vmem:[%s6566_s3 + $0xa8] sm:$0xff] }
 0x18c   : > { %v1807_v3 = vmax.f32 %v1804_v58, %v1806_v59  ;;  %1823 = vst.msk [vmem:[#allocation3 + $0x8] sm:$0x3] %vm258_vm1, %v1821_v53  ;;  %1983 = vmatpush.bf16.msra.mxu1 %v5192_v48  ;;  %v5199_v53 = vld [vmem:[%s6566_s3 + $0x40] sm:$0xff]  ;;  %v5222_v58 = vld [vmem:[%s6566_s3 + $0xf8] sm:$0xff]  ;;  %v5217_v59 = vld [vmem:[%s6566_s3 + $0xd0] sm:$0xff] }
 0x18d   : > { %2048 = vmatpush.bf16.msra.mxu2 %v5200_v49  ;;  %v5220_v62 = vld [vmem:[%s6566_s3 + $0xe8] sm:$0xff]  ;;  %v5215_v63 = vld [vmem:[%s6566_s3 + $0xc0] sm:$0xff]  ;;  %v5238_v0 = vld [vmem:[%s6566_s3 + $0x178] sm:$0xff] }
 0x18e   : > { %1809 = vst.msk [vmem:[#allocation4] sm:$0xf] %vm1808_vm5, %v1807_v3  ;;  %2105 = vmatpush.bf16.msra.mxu3 %v5204_v50  ;;  %v5221_v3 = vld [vmem:[%s6566_s3 + $0xf0] sm:$0xff] }
 0x18f   : > { %v5233_v50 = vld [vmem:[%s6566_s3 + $0x150] sm:$0xff] }
 0x190   : > { %1984 = vmatpush.bf16.msra.mxu1 %v5191_v52 }
 0x191   : > { %2049 = vmatpush.bf16.msra.mxu2 %v5199_v53  ;;  %v5229_v53 = vld [vmem:[%s6566_s3 + $0x130] sm:$0xff] }
 0x192   : > { %v1824_v9 = vld [vmem:[#allocation3] ss:$2 sm:$0xf]  ;;  %v1825_v10 = vld [vmem:[#allocation3 + $0x1] ss:$2 sm:$0xf]  ;;  %2106 = vmatpush.bf16.msra.mxu3 %v5203_v54 }
 0x193   : > { %v1826_v11 = vmax.f32 %v1824_v9, %v1825_v10  ;;  %v1827_v12 = vld [vmem:[#allocation3 + $0x2] ss:$2 sm:$0xf]  ;;  %v5237_v54 = vld [vmem:[%s6566_s3 + $0x170] sm:$0xff] }
 0x194   : > { %1842 = vst.msk [vmem:[#allocation3] sm:$0xff] %vm256_vm0, %v1840_v1  ;;  %2215 = vmatpush.bf16.msrb.mxu1 %v5214_v57  ;;  %v5211_v1 = vld [vmem:[%s6566_s3 + $0xa0] sm:$0xff] }
 0x195   : > { %v1828_v14 = vmax.f32 %v1826_v11, %v1827_v12  ;;  %1843 = vst.msk [vmem:[#allocation3 + $0x8] sm:$0x3] %vm258_vm1, %v1841_v6  ;;  %2272 = vmatpush.bf16.msrb.mxu2 %v5218_v56  ;;  %v5219_v6 = vld [vmem:[%s6566_s3 + $0xe0] sm:$0xff]  ;;  %v5232_v56 = vld [vmem:[%s6566_s3 + $0x148] sm:$0xff] }
 0x196   : > { %2327 = vmatpush.bf16.msrb.mxu3 %v5222_v58  ;;  %v6076_v7 = vpop.permute.xlu1 %1878  ;;  %v6078_v8 = vpop.permute.xlu0 %1995  ;;  %v5228_v58 = vld [vmem:[%s6566_s3 + $0x128] sm:$0xff] }
 0x197   : > { %1829 = vst.msk [vmem:[#allocation4 + $0x4] sm:$0xf] %vm1808_vm5, %v1828_v14 }
 0x198   : > { %2216 = vmatpush.bf16.msrb.mxu1 %v5213_v60  ;;  %v5240_v60 = vld [vmem:[%s6566_s3 + $0x188] sm:$0xff] }
 0x199   : > { %2273 = vmatpush.bf16.msrb.mxu2 %v5217_v59  ;;  %v5236_v59 = vld [vmem:[%s6566_s3 + $0x168] sm:$0xff] }
 0x19a   : > { %2328 = vmatpush.bf16.msrb.mxu3 %v5221_v3  ;;  %v5231_v3 = vld [vmem:[%s6566_s3 + $0x140] sm:$0xff] }
 0x19b   : > { %v1844_v21 = vld [vmem:[#allocation3] ss:$2 sm:$0xf]  ;;  %v1845_v22 = vld [vmem:[#allocation3 + $0x1] ss:$2 sm:$0xf] }
 0x19c   : > { %v1846_v23 = vmax.f32 %v1844_v21, %v1845_v22  ;;  %v1847_v24 = vld [vmem:[#allocation3 + $0x2] ss:$2 sm:$0xf]  ;;  %2217 = vmatpush.bf16.msrb.mxu1 %v5212_v61 }
 0x19d   : > { %1862 = vst.msk [vmem:[#allocation3] sm:$0xff] %vm256_vm0, %v1860_v19  ;;  %2274 = vmatpush.bf16.msrb.mxu2 %v5216_v5 }
 0x19e   : > { %v1848_v26 = vmax.f32 %v1846_v23, %v1847_v24  ;;  %1863 = vst.msk [vmem:[#allocation3 + $0x8] sm:$0x3] %vm258_vm1, %v1861_v20  ;;  %v5968_v27 = vld [vmem:[#allocation4] sm:$0xff]  ;;  %2329 = vmatpush.bf16.msrb.mxu3 %v5220_v62  ;;  %v6080_v15 = vpop.permute.xlu1 %1883  ;;  %v6082_v16 = vpop.permute.xlu0 %2000 }
 0x19f   : > { %1872 = vst.msk [vmem:[#allocation5 + $0x5] sm:$0xff] %vm256_vm0, %v5968_v27 }
 0x1a0   : > { %1849 = vst.msk [vmem:[#allocation4 + $0x8] sm:$0xf] %vm1808_vm5, %v1848_v26  ;;  %2218 = vmatpush.bf16.msrb.mxu1 %v5211_v1  ;;  %v5227_v1 = vld [vmem:[%s6566_s3 + $0x120] sm:$0xff] }
 0x1a1   : > { %2275 = vmatpush.bf16.msrb.mxu2 %v5215_v63 }
 0x1a2   : > { %2330 = vmatpush.bf16.msrb.mxu3 %v5219_v6  ;;  %v5235_v6 = vld [vmem:[%s6566_s3 + $0x160] sm:$0xff] }
 0x1a4   : > { %v1864_v30 = vld [vmem:[#allocation3] ss:$2 sm:$0xf]  ;;  %v1865_v31 = vld [vmem:[#allocation3 + $0x1] ss:$2 sm:$0xf] }
 0x1a5   : > { %v1866_v32 = vmax.f32 %v1864_v30, %v1865_v31  ;;  %v1867_v33 = vld [vmem:[#allocation3 + $0x2] ss:$2 sm:$0xf] }
 0x1a6   : > { %v1897_v2 = vld [vmem:[#allocation5 + $0x1] sm:$0xff] }
 0x1a7   : > { %v1868_v35 = vmax.f32 %v1866_v32, %v1867_v33  ;;  %v2115_v43 = vld [vmem:[#allocation5 + $0x5] sm:$0xff] }
 0x1a8   : > { %v1874_v9 = vld [vmem:[#allocation5] sm:$0xff] }
 0x1a9   : > { %1869 = vst.msk [vmem:[#allocation4 + $0xc] sm:$0xf] %vm1808_vm5, %v1868_v35  ;;  %v1991_v10 = vld [vmem:[#allocation5 + $0x2] sm:$0xff]  ;;  %v1886_v18 = vmul.f32 %v6076_v7, %v1874_v9 }
 0x1aa   : > { %v2058_v12 = vld [vmem:[#allocation5 + $0x4] sm:$0xff]  ;;  %v2003_v19 = vmul.f32 %v6078_v8, %v1991_v10 }
 0x1ab   : > { %v2060_v20 = vmul.f32 %v2058_v12, %v6076_v7  ;;  %v5239_v10 = vld [vmem:[%s6566_s3 + $0x180] sm:$0xff] }
 0x1b0   : > { %v5992_v39 = vld [vmem:[#allocation4 + $0x8] sm:$0xff] }
 0x1b1   : > { %1873 = vst.msk [vmem:[#allocation5 + $0xd] sm:$0xff] %vm256_vm0, %v5992_v39 }
 0x1b8   : > { %v5996_v40 = vld [vmem:[#allocation5 + $0x9] sm:$0xff]  ;;  %v2340_v14 = vld [vmem:[#allocation5 + $0x12] sm:$0xff] }
 0x1b9   : > { %v1899_v42 = vpack.c.bf16 %v5996_v40, %v1897_v2  ;;  %v2116_v44 = vld [vmem:[#allocation5 + $0xd] sm:$0xff]  ;;  %v2342_v25 = vmul.f32 %v2340_v14, %v6082_v16  ;;  %v5246_v14 = vld [vmem:[%s6566_s3 + $0x1b8] sm:$0xff] }
 0x1ba   : > { %v2117_v45 = vpack.c.bf16 %v2116_v44, %v2115_v43  ;;  %v1992_v11 = vld [vmem:[#allocation5 + $0xa] sm:$0xff] }
 0x1bb   : > { %4304 = vmatmul.msk.bf16.vlgmr.msra.gmra.mxu0 %vm256_vm0, %v1899_v42  ;;  %v2059_v13 = vld [vmem:[#allocation5 + $0xc] sm:$0xff]  ;;  %v2341_v21 = vmul.f32 %v6078_v8, %v1992_v11  ;;  %v2004_v23 = vmul.f32 %v6082_v16, %v1992_v11 }
 0x1bc   : > { %2384 = vmatpush.bf16.msra.mxu0 %v5226_v41  ;;  %v1875_v17 = vld [vmem:[#allocation5 + $0x8] sm:$0xff]  ;;  %v2061_v24 = vmul.f32 %v2059_v13, %v6080_v15  ;;  %v2228_v32 = vld [vmem:[#allocation5 + $0x10] sm:$0xff] }
 0x1bd   : > { %v1887_v22 = vmul.f32 %v6080_v15, %v1875_v17  ;;  %v2005_v28 = vpack.c.bf16 %v2004_v23, %v2003_v19  ;;  %v2343_v30 = vpack.c.bf16 %v2342_v25, %v2341_v21  ;;  %v2171_v31 = vld [vmem:[#allocation5 + $0xe] sm:$0xff]  ;;  %v2170_v33 = vld [vmem:[#allocation5 + $0x6] sm:$0xff]  ;;  %v2230_v35 = vmul.f32 %v2228_v32, %v6080_v15  ;;  %v5254_v19 = vld [vmem:[%s6566_s3 + $0x1f8] sm:$0xff] }
 0x1be   : > { %v2062_v29 = vpack.c.bf16 %v2061_v24, %v2060_v20  ;;  %v2173_v34 = vmul.f32 %v2171_v31, %v6082_v16  ;;  %v2285_v36 = vld [vmem:[#allocation5 + $0x11] sm:$0xff]  ;;  %v2172_v37 = vmul.f32 %v2170_v33, %v6078_v8  ;;  %v2229_v38 = vmul.f32 %v6076_v7, %v1875_v17  ;;  %v5390_v32 = vld [vmem:[%s6567_s4] ss:$0 sm:$0xff]  ;;  %v5244_v33 = vld [vmem:[%s6566_s3 + $0x1a8] sm:$0xff] }
 0x1bf   : > { %v1888_v26 = vpack.c.bf16 %v1887_v22, %v1886_v18  ;;  %4346 = vmatmul.msk.bf16.vlgmr.msra.gmra.mxu2 %vm256_vm0, %v2005_v28  ;;  %v2286_v2 = vpack.c.bf16 %v2285_v36, %v5996_v40  ;;  %v5230_v40 = vld [vmem:[%s6566_s3 + $0x138] sm:$0xff]  ;;  %v5245_v22 = vld [vmem:[%s6566_s3 + $0x1b0] sm:$0xff] }
 0x1c0   : > { %2385 = vmatpush.bf16.msra.mxu0 %v5225_v4  ;;  %4371 = vmatmul.msk.bf16.vlgmr.msra.gmra.mxu3 %vm256_vm0, %v2062_v29  ;;  %v2174_v41 = vpack.c.bf16 %v2173_v34, %v2172_v37  ;;  %v2231_v42 = vpack.c.bf16 %v2230_v35, %v2229_v38  ;;  %v5242_v4 = vld [vmem:[%s6566_s3 + $0x198] sm:$0xff]  ;;  %v5253_v28 = vld [vmem:[%s6566_s3 + $0x1f0] sm:$0xff]  ;;  %v5248_v37 = vld [vmem:[%s6566_s3 + $0x1c8] sm:$0xff] }
 0x1c1   : > { %4321 = vmatmul.msk.bf16.vlgmr.msra.gmra.mxu1 %vm256_vm0, %v1888_v26  ;;  %2504 = vmatpush.bf16.msra.mxu2 %v5230_v40  ;;  %v5250_v18 = vld [vmem:[%s6566_s3 + $0x1d8] sm:$0xff]  ;;  %v5249_v26 = vld [vmem:[%s6566_s3 + $0x1d0] sm:$0xff]  ;;  %v5252_v38 = vld [vmem:[%s6566_s3 + $0x1e8] sm:$0xff] }
 0x1c2   : > { %2463 = vmatpush.bf16.msra.mxu1 %v5234_v46  ;;  %2559 = vmatpush.bf16.msra.mxu3 %v5238_v0  ;;  %v5258_v20 = vld [vmem:[%s6566_s3 + $0x218] sm:$0xff]  ;;  %v5251_v40 = vld [vmem:[%s6566_s3 + $0x1e0] sm:$0xff] }
 0x1c4   : > { %2386 = vmatpush.bf16.msra.mxu0 %v5224_v51 }
 0x1c5   : > { %2505 = vmatpush.bf16.msra.mxu2 %v5229_v53 }
 0x1c6   : > { %2464 = vmatpush.bf16.msra.mxu1 %v5233_v50  ;;  %2560 = vmatpush.bf16.msra.mxu3 %v5237_v54 }
 0x1c8   : > { %2387 = vmatpush.bf16.msra.mxu0 %v5223_v55  ;;  %v5241_v55 = vld [vmem:[%s6566_s3 + $0x190] sm:$0xff] }
 0x1c9   : > { %2506 = vmatpush.bf16.msra.mxu2 %v5228_v58 }
 0x1ca   : > { %2465 = vmatpush.bf16.msra.mxu1 %v5232_v56  ;;  %2561 = vmatpush.bf16.msra.mxu3 %v5236_v59 }
 0x1cb   : > { %4396 = vmatmul.msk.bf16.vlgmr.msrb.gmra.mxu0 %vm256_vm0, %v2117_v45 }
 0x1cc   : > { %2616 = vmatpush.bf16.msrb.mxu0 %v5242_v4  ;;  %v5255_v4 = vld [vmem:[%s6566_s3 + $0x200] sm:$0xff] }
 0x1cd   : > { %2507 = vmatpush.bf16.msra.mxu2 %v5227_v1 }
 0x1ce   : > { %2466 = vmatpush.bf16.msra.mxu1 %v5231_v3  ;;  %2562 = vmatpush.bf16.msra.mxu3 %v5235_v6 }
 0x1cf   : > { %4446 = vmatmul.msk.bf16.vlgmr.msrb.gmra.mxu2 %vm256_vm0, %v2231_v42 }
 0x1d0   : > { %4471 = vmatmul.msk.bf16.vlgmr.msrb.gmra.mxu3 %vm256_vm0, %v2286_v2  ;;  %2617 = vmatpush.bf16.msrb.mxu0 %v5241_v55  ;;  %v5256_v2 = vld [vmem:[%s6566_s3 + $0x208] sm:$0xff] }
 0x1d1   : > { %4421 = vmatmul.msk.bf16.vlgmr.msrb.gmra.mxu1 %vm256_vm0, %v2174_v41  ;;  %2728 = vmatpush.bf16.msrb.mxu2 %v5250_v18 }
 0x1d2   : > { %2671 = vmatpush.bf16.msrb.mxu1 %v5246_v14  ;;  %2785 = vmatpush.bf16.msrb.mxu3 %v5254_v19  ;;  %v5260_v14 = vld [vmem:[%s6566_s3 + $0x228] sm:$0xff] }
 0x1d4   : > { %2618 = vmatpush.bf16.msrb.mxu0 %v5240_v60 }
 0x1d5   : > { %2729 = vmatpush.bf16.msrb.mxu2 %v5249_v26 }
 0x1d6   : > { %2672 = vmatpush.bf16.msrb.mxu1 %v5245_v22  ;;  %2786 = vmatpush.bf16.msrb.mxu3 %v5253_v28 }
 0x1d8   : > { %2619 = vmatpush.bf16.msrb.mxu0 %v5239_v10 }
 0x1d9   : > { %2730 = vmatpush.bf16.msrb.mxu2 %v5248_v37 }
 0x1da   : > { %2673 = vmatpush.bf16.msrb.mxu1 %v5244_v33  ;;  %2787 = vmatpush.bf16.msrb.mxu3 %v5252_v38 }
 0x1db   : > { %4496 = vmatmul.msk.bf16.vlgmr.msra.gmra.mxu0 %vm256_vm0, %v2343_v30  ;;  %v5257_v30 = vld [vmem:[%s6566_s3 + $0x210] sm:$0xff] }
 0x1dc   : > { %2840 = vmatpush.bf16.msra.mxu0 %v5258_v20 }
 0x1de   : > { %2788 = vmatpush.bf16.msrb.mxu3 %v5251_v40 }
 0x1e0   : > { %2841 = vmatpush.bf16.msra.mxu0 %v5257_v30 }
 0x1e4   : > { %2842 = vmatpush.bf16.msra.mxu0 %v5256_v2 }
 0x1e8   : > { %2843 = vmatpush.bf16.msra.mxu0 %v5255_v4 }
 0x238   : > { %v1945_v43 = vpop.f32.mrf.mxu0 }
 0x23e   : > { %v1986_v45 = vpop.f32.mrf.mxu1 }
 0x23f   : > { %v1987_v52 = vadd.f32 %v1986_v45, %v1945_v43  ;;  %v5243_v43 = vld [vmem:[%s6566_s3 + $0x1a0] sm:$0xff] }
 0x240   : > { %v1947_v44 = vpop.f32.mrf.mxu0  ;;  %2674 = vmatpush.bf16.msrb.mxu1 %v5243_v43 }
 0x242   : > { %v2051_v48 = vpop.f32.mrf.mxu2 }
 0x243   : > { %v2108_v49 = vpop.f32.mrf.mxu3  ;;  %v2056_v57 = vadd.f32 %v2051_v48, %v1987_v52 }
 0x245   : > { %v2113_v62 = vadd.f32 %v2108_v49, %v2056_v57  ;;  %v5262_v57 = vld [vmem:[%s6566_s3 + $0x238] sm:$0xff] }
 0x246   : > { %v1988_v51 = vpop.f32.mrf.mxu1 }
 0x247   : > { %v1989_v11 = vadd.f32 %v1988_v51, %v1947_v44 }
 0x248   : > { %v2163_v47 = vpop.f32.mrf.mxu0 }
 0x249   : > { %v2168_v13 = vadd.f32 %v2163_v47, %v2113_v62  ;;  %v5247_v47 = vld [vmem:[%s6566_s3 + $0x1c0] sm:$0xff] }
 0x24a   : > { %v2053_v61 = vpop.f32.mrf.mxu2  ;;  %2731 = vmatpush.bf16.msrb.mxu2 %v5247_v47  ;;  %v5278_v47 = vld [vmem:[%s6566_s3 + $0x2b8] sm:$0xff] }
 0x24b   : > { %v2110_v63 = vpop.f32.mrf.mxu3  ;;  %v2057_v12 = vadd.f32 %v2053_v61, %v1989_v11 }
 0x24d   : > { %v2114_v23 = vadd.f32 %v2110_v63, %v2057_v12 }
 0x24e   : > { %v2220_v9 = vpop.f32.mrf.mxu1 }
 0x24f   : > { %v2225_v17 = vadd.f32 %v2220_v9, %v2168_v13  ;;  %v5261_v13 = vld [vmem:[%s6566_s3 + $0x230] sm:$0xff] }
 0x250   : > { %v2165_v5 = vpop.f32.mrf.mxu0 }
 0x251   : > { %v2169_v36 = vadd.f32 %v2165_v5, %v2114_v23 }
 0x252   : > { %v2277_v21 = vpop.f32.mrf.mxu2 }
 0x253   : > { %v2282_v24 = vadd.f32 %v2277_v21, %v2225_v17  ;;  %v2332_v25 = vpop.f32.mrf.mxu3  ;;  %v5259_v17 = vld [vmem:[%s6566_s3 + $0x220] sm:$0xff] }
 0x255   : > { %v2337_v31 = vadd.f32 %v2332_v25, %v2282_v24 }
 0x256   : > { %v2222_v34 = vpop.f32.mrf.mxu1 }
 0x257   : > { %v2226_v42 = vadd.f32 %v2222_v34, %v2169_v36 }
 0x258   : > { %v2389_v29 = vpop.f32.mrf.mxu0 }
 0x259   : > { %v2394_v35 = vadd.f32 %v2389_v29, %v2337_v31 }
 0x25a   : > { %v2279_v44 = vpop.f32.mrf.mxu2 }
 0x25b   : > { %v2400_v41 = vadd.f32 %v5390_v32, %v2394_v35  ;;  %v2283_v46 = vadd.f32 %v2279_v44, %v2226_v42  ;;  %v2334_v0 = vpop.f32.mrf.mxu3  ;;  %v5270_v44 = vld [vmem:[%s6566_s3 + $0x278] sm:$0xff] }
 0x25d   : > { %v2402_v45 = vmax.f32 %v2400_v41, 0.0  ;;  %v2338_v48 = vadd.f32 %v2334_v0, %v2283_v46  ;;  %v5274_v46 = vld [vmem:[%s6566_s3 + $0x298] sm:$0xff] }
 0x25f   : > { %2404 = vst.msk [vmem:[#allocation5 + $0x5] sm:$0xff] %vm256_vm0, %v2402_v45  ;;  %v5266_v45 = vld [vmem:[%s6566_s3 + $0x258] sm:$0xff] }
 0x260   : > { %v2391_v49 = vpop.f32.mrf.mxu0 }
 0x261   : > { %v2395_v50 = vadd.f32 %v2391_v49, %v2338_v48  ;;  %v5269_v49 = vld [vmem:[%s6566_s3 + $0x270] sm:$0xff] }
 0x263   : > { %v2401_v51 = vadd.f32 %v5390_v32, %v2395_v50  ;;  %v5265_v50 = vld [vmem:[%s6566_s3 + $0x250] sm:$0xff] }
 0x265   : > { %v2403_v52 = vmax.f32 %v2401_v51, 0.0  ;;  %v5273_v51 = vld [vmem:[%s6566_s3 + $0x290] sm:$0xff] }
 0x266   : > { %v2406_v53 = vld [vmem:[#allocation5] sm:$0xff] }
 0x267   : > { %2405 = vst.msk [vmem:[#allocation5 + $0xd] sm:$0xff] %vm256_vm0, %v2403_v52  ;;  %v2514_v54 = vld [vmem:[#allocation5 + $0x2] sm:$0xff]  ;;  %v2408_v60 = vmul.f32 %v2406_v53, %v6076_v7  ;;  %v5277_v53 = vld [vmem:[%s6566_s3 + $0x2b0] sm:$0xff] }
 0x268   : > { %v2420_v55 = vld [vmem:[#allocation5 + $0x1] sm:$0xff]  ;;  %v2516_v62 = vmul.f32 %v2514_v54, %v6078_v8 }
 0x269   : > { %v2571_v56 = vld [vmem:[#allocation5 + $0x4] sm:$0xff] }
 0x26a   : > { %v2573_v6 = vmul.f32 %v2571_v56, %v6076_v7  ;;  %v2628_v26 = vld [vmem:[#allocation5 + $0x5] sm:$0xff] }
 0x26b   : > { %v5268_v54 = vld [vmem:[%s6566_s3 + $0x268] sm:$0xff] }
 0x26e   : > { %v2421_v58 = vld [vmem:[#allocation5 + $0x9] sm:$0xff]  ;;  %v2798_v29 = vld [vmem:[#allocation5 + $0x11] sm:$0xff] }
 0x26f   : > { %v2407_v59 = vld [vmem:[#allocation5 + $0x8] sm:$0xff]  ;;  %v2422_v5 = vpack.c.bf16 %v2421_v58, %v2420_v55  ;;  %v2741_v20 = vld [vmem:[#allocation5 + $0x10] sm:$0xff]  ;;  %v2799_v32 = vpack.c.bf16 %v2798_v29, %v2421_v58 }
 0x270   : > { %v2515_v3 = vld [vmem:[#allocation5 + $0xa] sm:$0xff]  ;;  %v2409_v61 = vmul.f32 %v2407_v59, %v6080_v15  ;;  %v2742_v24 = vmul.f32 %v2407_v59, %v6076_v7  ;;  %v2743_v25 = vmul.f32 %v2741_v20, %v6080_v15  ;;  %v2853_v33 = vld [vmem:[#allocation5 + $0x12] sm:$0xff] }
 0x271   : > { %v2517_v63 = vmul.f32 %v2515_v3, %v6082_v16  ;;  %v2572_v1 = vld [vmem:[#allocation5 + $0xc] sm:$0xff]  ;;  %4529 = vmatmul.msk.bf16.vlgmr.msra.gmra.mxu1 %vm256_vm0, %v2422_v5  ;;  %v2854_v34 = vmul.f32 %v2515_v3, %v6078_v8  ;;  %v2855_v35 = vmul.f32 %v2853_v33, %v6082_v16  ;;  %v5267_v3 = vld [vmem:[%s6566_s3 + $0x260] sm:$0xff] }
 0x272   : > { %v2574_v9 = vmul.f32 %v2572_v1, %v6080_v15  ;;  %v2410_v10 = vpack.c.bf16 %v2409_v61, %v2408_v60  ;;  %2897 = vmatpush.bf16.msra.mxu1 %v5262_v57  ;;  %v2683_v18 = vld [vmem:[#allocation5 + $0x6] sm:$0xff]  ;;  %v2684_v19 = vld [vmem:[#allocation5 + $0xe] sm:$0xff]  ;;  %v2744_v31 = vpack.c.bf16 %v2743_v25, %v2742_v24 }
 0x273   : > { %v2518_v11 = vpack.c.bf16 %v2517_v63, %v2516_v62  ;;  %v2629_v21 = vld [vmem:[#allocation5 + $0xd] sm:$0xff]  ;;  %v2685_v22 = vmul.f32 %v2683_v18, %v6078_v8  ;;  %v2686_v23 = vmul.f32 %v2684_v19, %v6082_v16  ;;  %v2856_v36 = vpack.c.bf16 %v2855_v35, %v2854_v34  ;;  %v5290_v18 = vld [vmem:[%s6566_s3 + $0x318] sm:$0xff] }
 0x274   : > { %v2575_v12 = vpack.c.bf16 %v2574_v9, %v2573_v6  ;;  %4546 = vmatmul.msk.bf16.vlgmr.msra.gmra.mxu2 %vm256_vm0, %v2410_v10  ;;  %v2630_v28 = vpack.c.bf16 %v2629_v21, %v2628_v26  ;;  %v5264_v57 = vld [vmem:[%s6566_s3 + $0x248] sm:$0xff]  ;;  %v5263_v6 = vld [vmem:[%s6566_s3 + $0x240] sm:$0xff]  ;;  %v5294_v19 = vld [vmem:[%s6566_s3 + $0x338] sm:$0xff] }
 0x275   : > { %4571 = vmatmul.msk.bf16.vlgmr.msra.gmra.mxu3 %vm256_vm0, %v2518_v11  ;;  %v2687_v30 = vpack.c.bf16 %v2686_v23, %v2685_v22  ;;  %2979 = vmatpush.bf16.msra.mxu2 %v5270_v44  ;;  %v5272_v58 = vld [vmem:[%s6566_s3 + $0x288] sm:$0xff]  ;;  %v5271_v9 = vld [vmem:[%s6566_s3 + $0x280] sm:$0xff]  ;;  %v5281_v23 = vld [vmem:[%s6566_s3 + $0x2d0] sm:$0xff] }
 0x276   : > { %4596 = vmatmul.msk.bf16.vlgmr.msrb.gmra.mxu0 %vm256_vm0, %v2575_v12  ;;  %2898 = vmatpush.bf16.msra.mxu1 %v5261_v13  ;;  %v5276_v59 = vld [vmem:[%s6566_s3 + $0x2a8] sm:$0xff]  ;;  %v5275_v10 = vld [vmem:[%s6566_s3 + $0x2a0] sm:$0xff]  ;;  %v5282_v12 = vld [vmem:[%s6566_s3 + $0x2d8] sm:$0xff] }
 0x277   : > { %3020 = vmatpush.bf16.msra.mxu3 %v5266_v45  ;;  %3075 = vmatpush.bf16.msrb.mxu0 %v5274_v46  ;;  %v5391_v22 = vld [vmem:[%s6567_s4 + $0x1] ss:$0 sm:$0xff]  ;;  %v5285_v26 = vld [vmem:[%s6566_s3 + $0x2f0] sm:$0xff]  ;;  %v5280_v33 = vld [vmem:[%s6566_s3 + $0x2c8] sm:$0xff] }
 0x278   : > { %v5287_v46 = vld [vmem:[%s6566_s3 + $0x300] sm:$0xff] }
 0x279   : > { %2980 = vmatpush.bf16.msra.mxu2 %v5269_v49 }
 0x27a   : > { %2899 = vmatpush.bf16.msra.mxu1 %v5260_v14 }
 0x27b   : > { %3021 = vmatpush.bf16.msra.mxu3 %v5265_v50  ;;  %3076 = vmatpush.bf16.msrb.mxu0 %v5273_v51 }
 0x27d   : > { %2981 = vmatpush.bf16.msra.mxu2 %v5268_v54 }
 0x27e   : > { %2900 = vmatpush.bf16.msra.mxu1 %v5259_v17  ;;  %v5286_v17 = vld [vmem:[%s6566_s3 + $0x2f8] sm:$0xff] }
 0x27f   : > { %3022 = vmatpush.bf16.msra.mxu3 %v5264_v57  ;;  %3077 = vmatpush.bf16.msrb.mxu0 %v5272_v58 }
 0x281   : > { %4621 = vmatmul.msk.bf16.vlgmr.msrb.gmra.mxu1 %vm256_vm0, %v2630_v28  ;;  %2982 = vmatpush.bf16.msra.mxu2 %v5267_v3  ;;  %v5289_v28 = vld [vmem:[%s6566_s3 + $0x310] sm:$0xff] }
 0x282   : > { %3132 = vmatpush.bf16.msrb.mxu1 %v5278_v47 }
 0x283   : > { %3023 = vmatpush.bf16.msra.mxu3 %v5263_v6  ;;  %3078 = vmatpush.bf16.msrb.mxu0 %v5271_v9  ;;  %v5297_v6 = vld [vmem:[%s6566_s3 + $0x350] sm:$0xff]  ;;  %v5296_v9 = vld [vmem:[%s6566_s3 + $0x348] sm:$0xff] }
 0x284   : > { %4646 = vmatmul.msk.bf16.vlgmr.msrb.gmra.mxu2 %vm256_vm0, %v2687_v30 }
 0x285   : > { %4671 = vmatmul.msk.bf16.vlgmr.msrb.gmra.mxu3 %vm256_vm0, %v2744_v31  ;;  %3187 = vmatpush.bf16.msrb.mxu2 %v5282_v12  ;;  %v5293_v31 = vld [vmem:[%s6566_s3 + $0x330] sm:$0xff] }
 0x286   : > { %4696 = vmatmul.msk.bf16.vlgmr.msra.gmra.mxu0 %vm256_vm0, %v2799_v32  ;;  %3133 = vmatpush.bf16.msrb.mxu1 %v5277_v53  ;;  %v5298_v53 = vld [vmem:[%s6566_s3 + $0x358] sm:$0xff] }
 0x287   : > { %3244 = vmatpush.bf16.msrb.mxu3 %v5286_v17  ;;  %3301 = vmatpush.bf16.msra.mxu0 %v5290_v18 }
 0x289   : > { %3188 = vmatpush.bf16.msrb.mxu2 %v5281_v23 }
 0x28a   : > { %3134 = vmatpush.bf16.msrb.mxu1 %v5276_v59 }
 0x28b   : > { %3245 = vmatpush.bf16.msrb.mxu3 %v5285_v26  ;;  %3302 = vmatpush.bf16.msra.mxu0 %v5289_v28 }
 0x28d   : > { %3189 = vmatpush.bf16.msrb.mxu2 %v5280_v33 }
 0x28e   : > { %3135 = vmatpush.bf16.msrb.mxu1 %v5275_v10  ;;  %v5295_v10 = vld [vmem:[%s6566_s3 + $0x340] sm:$0xff] }
 0x291   : > { %4721 = vmatmul.msk.bf16.vlgmr.msra.gmra.mxu1 %vm256_vm0, %v2856_v36  ;;  %v5284_v36 = vld [vmem:[%s6566_s3 + $0x2e8] sm:$0xff] }
 0x292   : > { %3356 = vmatpush.bf16.msra.mxu1 %v5294_v19  ;;  %3246 = vmatpush.bf16.msrb.mxu3 %v5284_v36 }
 0x296   : > { %3357 = vmatpush.bf16.msra.mxu1 %v5293_v31 }
 0x2ee   : > { %v2468_v37 = vpop.f32.mrf.mxu1 }
 0x2f3   : > { %v2621_v38 = vpop.f32.mrf.mxu0 }
 0x2f6   : > { %v2470_v2 = vpop.f32.mrf.mxu1 }
 0x2f7   : > { %v2509_v41 = vpop.f32.mrf.mxu2 }
 0x2f8   : > { %v2564_v42 = vpop.f32.mrf.mxu3  ;;  %v2510_v43 = vadd.f32 %v2509_v41, %v2468_v37  ;;  %v5288_v37 = vld [vmem:[%s6566_s3 + $0x308] sm:$0xff] }
 0x2f9   : > { %3303 = vmatpush.bf16.msra.mxu0 %v5288_v37 }
 0x2fa   : > { %v2569_v4 = vadd.f32 %v2564_v42, %v2510_v43  ;;  %v5279_v42 = vld [vmem:[%s6566_s3 + $0x2c0] sm:$0xff] }
 0x2fb   : > { %v2623_v52 = vpop.f32.mrf.mxu0  ;;  %3190 = vmatpush.bf16.msrb.mxu2 %v5279_v42 }
 0x2fc   : > { %v2626_v56 = vadd.f32 %v2621_v38, %v2569_v4 }
 0x2fd   : > { %3304 = vmatpush.bf16.msra.mxu0 %v5287_v46 }
 0x2fe   : > { %v2676_v0 = vpop.f32.mrf.mxu1 }
 0x2ff   : > { %v2511_v40 = vpop.f32.mrf.mxu2  ;;  %v2681_v60 = vadd.f32 %v2676_v0, %v2626_v56 }
 0x300   : > { %v2566_v48 = vpop.f32.mrf.mxu3  ;;  %v2512_v55 = vadd.f32 %v2511_v40, %v2470_v2  ;;  %v5292_v2 = vld [vmem:[%s6566_s3 + $0x328] sm:$0xff]  ;;  %v5291_v40 = vld [vmem:[%s6566_s3 + $0x320] sm:$0xff] }
 0x301   : > { %3358 = vmatpush.bf16.msra.mxu1 %v5292_v2 }
 0x302   : > { %v2570_v62 = vadd.f32 %v2566_v48, %v2512_v55 }
 0x303   : > { %v2845_v13 = vpop.f32.mrf.mxu0 }
 0x304   : > { %v2627_v14 = vadd.f32 %v2623_v52, %v2570_v62 }
 0x305   : > { %3359 = vmatpush.bf16.msra.mxu1 %v5291_v40  ;;  %v5301_v40 = vld [vmem:[%s6566_s3 + $0x370] sm:$0xff] }
 0x306   : > { %v2678_v5 = vpop.f32.mrf.mxu1 }
 0x307   : > { %v2733_v61 = vpop.f32.mrf.mxu2  ;;  %v2682_v20 = vadd.f32 %v2678_v5, %v2627_v14 }
 0x308   : > { %v2738_v63 = vadd.f32 %v2733_v61, %v2681_v60  ;;  %v2790_v1 = vpop.f32.mrf.mxu3 }
 0x30a   : > { %v2795_v11 = vadd.f32 %v2790_v1, %v2738_v63 }
 0x30b   : > { %v2847_v41 = vpop.f32.mrf.mxu0 }
 0x30c   : > { %v2850_v21 = vadd.f32 %v2845_v13, %v2795_v11 }
 0x30e   : > { %v2902_v25 = vpop.f32.mrf.mxu1 }
 0x30f   : > { %v2735_v24 = vpop.f32.mrf.mxu2  ;;  %v2907_v30 = vadd.f32 %v2902_v25, %v2850_v21 }
 0x310   : > { %v2739_v29 = vadd.f32 %v2735_v24, %v2682_v20  ;;  %v2792_v32 = vpop.f32.mrf.mxu3 }
 0x311   : > { %v2914_v35 = vadd.f32 %v5391_v22, %v2907_v30 }
 0x312   : > { %v2796_v34 = vadd.f32 %v2792_v32, %v2739_v29 }
 0x313   : > { %v6323_v38 = vadd.f32 %v2914_v35, %v5968_v27  ;;  %v5283_v27 = vld [vmem:[%s6566_s3 + $0x2e0] sm:$0xff] }
 0x314   : > { %v2851_v44 = vadd.f32 %v2847_v41, %v2796_v34  ;;  %3247 = vmatpush.bf16.msrb.mxu3 %v5283_v27  ;;  %v5306_v41 = vld [vmem:[%s6566_s3 + $0x398] sm:$0xff] }
 0x315   : > { %v2918_v43 = vmax.f32 %v6323_v38, 0.0  ;;  %v5314_v27 = vld [vmem:[%s6566_s3 + $0x3d8] sm:$0xff] }
 0x316   : > { %v2904_v45 = vpop.f32.mrf.mxu1 }
 0x317   : > { %2920 = vst.msk [vmem:[#allocation5 + $0x5] sm:$0xff] %vm256_vm0, %v2918_v43  ;;  %v2908_v47 = vadd.f32 %v2904_v45, %v2851_v44  ;;  %v5302_v44 = vld [vmem:[%s6566_s3 + $0x378] sm:$0xff] }
 0x318   : > { %v5310_v45 = vld [vmem:[%s6566_s3 + $0x3b8] sm:$0xff] }
 0x319   : > { %v2915_v0 = vadd.f32 %v5391_v22, %v2908_v47  ;;  %v5305_v47 = vld [vmem:[%s6566_s3 + $0x390] sm:$0xff] }
 0x31b   : > { %v6345_v4 = vadd.f32 %v2915_v0, %v5992_v39  ;;  %v5309_v0 = vld [vmem:[%s6566_s3 + $0x3b0] sm:$0xff] }
 0x31d   : > { %v2919_v48 = vmax.f32 %v6345_v4, 0.0 }
 0x31e   : > { %v2922_v49 = vld [vmem:[#allocation5] sm:$0xff] }
 0x31f   : > { %2921 = vst.msk [vmem:[#allocation5 + $0xd] sm:$0xff] %vm256_vm0, %v2919_v48  ;;  %v3030_v50 = vld [vmem:[#allocation5 + $0x2] sm:$0xff]  ;;  %v2924_v39 = vmul.f32 %v2922_v49, %v6076_v7 }
 0x320   : > { %v2936_v51 = vld [vmem:[#allocation5 + $0x1] sm:$0xff]  ;;  %v3032_v59 = vmul.f32 %v3030_v50, %v6078_v8  ;;  %v5313_v50 = vld [vmem:[%s6566_s3 + $0x3d0] sm:$0xff] }
 0x321   : > { %v3087_v52 = vld [vmem:[#allocation5 + $0x4] sm:$0xff] }
 0x322   : > { %v3089_v5 = vmul.f32 %v3087_v52, %v6076_v7  ;;  %v3144_v21 = vld [vmem:[#allocation5 + $0x5] sm:$0xff] }
 0x326   : > { %v2937_v54 = vld [vmem:[#allocation5 + $0x9] sm:$0xff]  ;;  %v3314_v23 = vld [vmem:[#allocation5 + $0x11] sm:$0xff] }
 0x327   : > { %v2923_v55 = vld [vmem:[#allocation5 + $0x8] sm:$0xff]  ;;  %v2938_v57 = vpack.c.bf16 %v2937_v54, %v2936_v51  ;;  %v3257_v13 = vld [vmem:[#allocation5 + $0x10] sm:$0xff]  ;;  %v3315_v26 = vpack.c.bf16 %v3314_v23, %v2937_v54 }
 0x328   : > { %v3031_v56 = vld [vmem:[#allocation5 + $0xa] sm:$0xff]  ;;  %v2925_v58 = vmul.f32 %v2923_v55, %v6080_v15  ;;  %v3258_v19 = vmul.f32 %v2923_v55, %v6076_v7  ;;  %v3259_v20 = vmul.f32 %v3257_v13, %v6080_v15  ;;  %v3369_v28 = vld [vmem:[#allocation5 + $0x12] sm:$0xff] }
 0x329   : > { %v3033_v60 = vmul.f32 %v3031_v56, %v6082_v16  ;;  %v3088_v3 = vld [vmem:[#allocation5 + $0xc] sm:$0xff]  ;;  %4755 = vmatmul.msk.bf16.vlgmr.msra.gmra.mxu2 %vm256_vm0, %v2938_v57  ;;  %v3370_v29 = vmul.f32 %v3031_v56, %v6078_v8  ;;  %v3371_v30 = vmul.f32 %v3369_v28, %v6082_v16 }
 0x32a   : > { %v3090_v61 = vmul.f32 %v3088_v3, %v6080_v15  ;;  %v2926_v62 = vpack.c.bf16 %v2925_v58, %v2924_v39  ;;  %3413 = vmatpush.bf16.msra.mxu2 %v5298_v53  ;;  %v3199_v11 = vld [vmem:[#allocation5 + $0x6] sm:$0xff]  ;;  %v3200_v12 = vld [vmem:[#allocation5 + $0xe] sm:$0xff]  ;;  %v3260_v25 = vpack.c.bf16 %v3259_v20, %v3258_v19 }
 0x32b   : > { %v3034_v63 = vpack.c.bf16 %v3033_v60, %v3032_v59  ;;  %v3145_v14 = vld [vmem:[#allocation5 + $0xd] sm:$0xff]  ;;  %v3201_v17 = vmul.f32 %v3199_v11, %v6078_v8  ;;  %v3202_v18 = vmul.f32 %v3200_v12, %v6082_v16  ;;  %v3372_v31 = vpack.c.bf16 %v3371_v30, %v3370_v29  ;;  %v5303_v60 = vld [vmem:[%s6566_s3 + $0x380] sm:$0xff] }
 0x32c   : > { %v3091_v1 = vpack.c.bf16 %v3090_v61, %v3089_v5  ;;  %4772 = vmatmul.msk.bf16.vlgmr.msra.gmra.mxu3 %vm256_vm0, %v2926_v62  ;;  %v3146_v22 = vpack.c.bf16 %v3145_v14, %v3144_v21  ;;  %v5304_v53 = vld [vmem:[%s6566_s3 + $0x388] sm:$0xff]  ;;  %v5299_v5 = vld [vmem:[%s6566_s3 + $0x360] sm:$0xff]  ;;  %v5322_v14 = vld [vmem:[%s6566_s3 + $0x418] sm:$0xff] }
 0x32d   : > { %4797 = vmatmul.msk.bf16.vlgmr.msrb.gmra.mxu0 %vm256_vm0, %v3034_v63  ;;  %v3203_v24 = vpack.c.bf16 %v3202_v18, %v3201_v17  ;;  %3493 = vmatpush.bf16.msra.mxu3 %v5306_v41  ;;  %v5300_v56 = vld [vmem:[%s6566_s3 + $0x368] sm:$0xff]  ;;  %v5307_v61 = vld [vmem:[%s6566_s3 + $0x3a0] sm:$0xff]  ;;  %v5326_v17 = vld [vmem:[%s6566_s3 + $0x438] sm:$0xff] }
 0x32e   : > { %4822 = vmatmul.msk.bf16.vlgmr.msrb.gmra.mxu1 %vm256_vm0, %v3091_v1  ;;  %3414 = vmatpush.bf16.msra.mxu2 %v5297_v6  ;;  %v5308_v57 = vld [vmem:[%s6566_s3 + $0x3a8] sm:$0xff]  ;;  %v5311_v1 = vld [vmem:[%s6566_s3 + $0x3c0] sm:$0xff]  ;;  %v5330_v18 = vld [vmem:[%s6566_s3 + $0x458] sm:$0xff] }
 0x32f   : > { %3534 = vmatpush.bf16.msrb.mxu0 %v5302_v44  ;;  %3589 = vmatpush.bf16.msrb.mxu1 %v5310_v45  ;;  %v5312_v58 = vld [vmem:[%s6566_s3 + $0x3c8] sm:$0xff]  ;;  %v5317_v19 = vld [vmem:[%s6566_s3 + $0x3f0] sm:$0xff]  ;;  %v5319_v41 = vld [vmem:[%s6566_s3 + $0x400] sm:$0xff] }
 0x330   : > { %v5321_v20 = vld [vmem:[%s6566_s3 + $0x410] sm:$0xff]  ;;  %v5316_v28 = vld [vmem:[%s6566_s3 + $0x3e8] sm:$0xff]  ;;  %v5327_v45 = vld [vmem:[%s6566_s3 + $0x440] sm:$0xff] }
 0x331   : > { %3494 = vmatpush.bf16.msra.mxu3 %v5305_v47  ;;  %v5325_v21 = vld [vmem:[%s6566_s3 + $0x430] sm:$0xff] }
 0x332   : > { %3415 = vmatpush.bf16.msra.mxu2 %v5296_v9  ;;  %v5318_v9 = vld [vmem:[%s6566_s3 + $0x3f8] sm:$0xff] }
 0x333   : > { %3535 = vmatpush.bf16.msrb.mxu0 %v5301_v40  ;;  %3590 = vmatpush.bf16.msrb.mxu1 %v5309_v0 }
 0x335   : > { %3495 = vmatpush.bf16.msra.mxu3 %v5304_v53 }
 0x336   : > { %3416 = vmatpush.bf16.msra.mxu2 %v5295_v10 }
 0x337   : > { %3536 = vmatpush.bf16.msrb.mxu0 %v5300_v56  ;;  %3591 = vmatpush.bf16.msrb.mxu1 %v5308_v57 }
 0x339   : > { %4847 = vmatmul.msk.bf16.vlgmr.msrb.gmra.mxu2 %vm256_vm0, %v3146_v22  ;;  %3496 = vmatpush.bf16.msra.mxu3 %v5303_v60 }
 0x33a   : > { %3646 = vmatpush.bf16.msrb.mxu2 %v5314_v27 }
 0x33b   : > { %3537 = vmatpush.bf16.msrb.mxu0 %v5299_v5  ;;  %3592 = vmatpush.bf16.msrb.mxu1 %v5307_v61 }
 0x33c   : > { %4872 = vmatmul.msk.bf16.vlgmr.msrb.gmra.mxu3 %vm256_vm0, %v3203_v24  ;;  %v5392_v24 = vld [vmem:[%s6567_s4 + $0x2] ss:$0 sm:$0xff] }
 0x33d   : > { %4897 = vmatmul.msk.bf16.vlgmr.msra.gmra.mxu0 %vm256_vm0, %v3260_v25  ;;  %3701 = vmatpush.bf16.msrb.mxu3 %v5318_v9  ;;  %v5329_v25 = vld [vmem:[%s6566_s3 + $0x450] sm:$0xff]  ;;  %v5331_v9 = vld [vmem:[%s6566_s3 + $0x460] sm:$0xff] }
 0x33e   : > { %4922 = vmatmul.msk.bf16.vlgmr.msra.gmra.mxu1 %vm256_vm0, %v3315_v26  ;;  %3647 = vmatpush.bf16.msrb.mxu2 %v5313_v50 }
 0x33f   : > { %3758 = vmatpush.bf16.msra.mxu0 %v5322_v14  ;;  %3815 = vmatpush.bf16.msra.mxu1 %v5326_v17 }
 0x341   : > { %3702 = vmatpush.bf16.msrb.mxu3 %v5317_v19 }
 0x342   : > { %3648 = vmatpush.bf16.msrb.mxu2 %v5312_v58 }
 0x343   : > { %3759 = vmatpush.bf16.msra.mxu0 %v5321_v20  ;;  %3816 = vmatpush.bf16.msra.mxu1 %v5325_v21 }
 0x345   : > { %3703 = vmatpush.bf16.msrb.mxu3 %v5316_v28 }
 0x346   : > { %3649 = vmatpush.bf16.msrb.mxu2 %v5311_v1  ;;  %v5333_v1 = vld [vmem:[%s6566_s3 + $0x470] sm:$0xff] }
 0x349   : > { %4947 = vmatmul.msk.bf16.vlgmr.msra.gmra.mxu2 %vm256_vm0, %v3372_v31  ;;  %v5320_v31 = vld [vmem:[%s6566_s3 + $0x408] sm:$0xff] }
 0x34a   : > { %3870 = vmatpush.bf16.msra.mxu2 %v5330_v18  ;;  %3760 = vmatpush.bf16.msra.mxu0 %v5320_v31 }
 0x34e   : > { %3871 = vmatpush.bf16.msra.mxu2 %v5329_v25  ;;  %3761 = vmatpush.bf16.msra.mxu0 %v5319_v41 }
 0x3aa   : > { %v3080_v34 = vpop.f32.mrf.mxu0 }
 0x3ab   : > { %v3137_v35 = vpop.f32.mrf.mxu1 }
 0x3ac   : > { %v2984_v32 = vpop.f32.mrf.mxu2 }
 0x3af   : > { %v3025_v33 = vpop.f32.mrf.mxu3 }
 0x3b0   : > { %v3026_v37 = vadd.f32 %v3025_v33, %v2984_v32  ;;  %v5324_v32 = vld [vmem:[%s6566_s3 + $0x428] sm:$0xff] }
 0x3b1   : > { %3817 = vmatpush.bf16.msra.mxu1 %v5324_v32 }
 0x3b2   : > { %v3085_v42 = vadd.f32 %v3080_v34, %v3026_v37  ;;  %v3082_v46 = vpop.f32.mrf.mxu0 }
 0x3b3   : > { %v3139_v54 = vpop.f32.mrf.mxu1 }
 0x3b4   : > { %v2986_v36 = vpop.f32.mrf.mxu2  ;;  %v3142_v52 = vadd.f32 %v3137_v35, %v3085_v42  ;;  %v5328_v35 = vld [vmem:[%s6566_s3 + $0x448] sm:$0xff]  ;;  %v5323_v42 = vld [vmem:[%s6566_s3 + $0x420] sm:$0xff] }
 0x3b5   : > { %3872 = vmatpush.bf16.msra.mxu2 %v5328_v35  ;;  %3818 = vmatpush.bf16.msra.mxu1 %v5323_v42 }
 0x3b7   : > { %v3027_v2 = vpop.f32.mrf.mxu3 }
 0x3b8   : > { %v3028_v51 = vadd.f32 %v3027_v2, %v2986_v36  ;;  %v5315_v36 = vld [vmem:[%s6566_s3 + $0x3e0] sm:$0xff] }
 0x3b9   : > { %3704 = vmatpush.bf16.msrb.mxu3 %v5315_v36  ;;  %3873 = vmatpush.bf16.msra.mxu2 %v5327_v45 }
 0x3ba   : > { %v3086_v59 = vadd.f32 %v3082_v46, %v3028_v51  ;;  %v3306_v62 = vpop.f32.mrf.mxu0 }
 0x3bb   : > { %v3361_v12 = vpop.f32.mrf.mxu1 }
 0x3bc   : > { %v3192_v49 = vpop.f32.mrf.mxu2  ;;  %v3143_v6 = vadd.f32 %v3139_v54, %v3086_v59 }
 0x3bd   : > { %v3197_v39 = vadd.f32 %v3192_v49, %v3142_v52  ;;  %v5334_v52 = vld [vmem:[%s6566_s3 + $0x478] sm:$0xff] }
 0x3bf   : > { %v3249_v55 = vpop.f32.mrf.mxu3 }
 0x3c0   : > { %v3254_v3 = vadd.f32 %v3249_v55, %v3197_v39 }
 0x3c2   : > { %v3311_v10 = vadd.f32 %v3306_v62, %v3254_v3  ;;  %v3308_v30 = vpop.f32.mrf.mxu0 }
 0x3c3   : > { %v3363_v2 = vpop.f32.mrf.mxu1 }
 0x3c4   : > { %v3194_v63 = vpop.f32.mrf.mxu2  ;;  %v3366_v23 = vadd.f32 %v3361_v12, %v3311_v10 }
 0x3c5   : > { %v3198_v11 = vadd.f32 %v3194_v63, %v3143_v6  ;;  %v5332_v6 = vld [vmem:[%s6566_s3 + $0x468] sm:$0xff] }
 0x3c7   : > { %v3251_v13 = vpop.f32.mrf.mxu3 }
 0x3c8   : > { %v3255_v22 = vadd.f32 %v3251_v13, %v3198_v11 }
 0x3ca   : > { %v3312_v33 = vadd.f32 %v3308_v30, %v3255_v22 }
 0x3cc   : > { %v3418_v26 = vpop.f32.mrf.mxu2  ;;  %v3367_v44 = vadd.f32 %v3363_v2, %v3312_v33 }
 0x3cd   : > { %v3423_v29 = vadd.f32 %v3418_v26, %v3366_v23 }
 0x3cf   : > { %v3430_v34 = vadd.f32 %v5392_v24, %v3423_v29 }
 0x3d1   : > { %v3432_v37 = vmax.f32 %v3430_v34, 0.0 }
 0x3d3   : > { %3434 = vst.msk [vmem:[#allocation5 + $0x5] sm:$0xff] %vm256_vm0, %v3432_v37 }
 0x3d4   : > { %v3420_v27 = vpop.f32.mrf.mxu2 }
 0x3d5   : > { %v3424_v46 = vadd.f32 %v3420_v27, %v3367_v44 }
 0x3d7   : > { %v3431_v47 = vadd.f32 %v5392_v24, %v3424_v46 }
 0x3d9   : > { %v3433_v40 = vmax.f32 %v3431_v47, 0.0 }
 0x3da   : > { %v3436_v0 = vld [vmem:[#allocation5] sm:$0xff] }
 0x3db   : > { %3435 = vst.msk [vmem:[#allocation5 + $0xd] sm:$0xff] %vm256_vm0, %v3433_v40  ;;  %v3544_v49 = vld [vmem:[#allocation5 + $0x2] sm:$0xff]  ;;  %v3438_v55 = vmul.f32 %v3436_v0, %v6076_v7 }
 0x3dc   : > { %v3450_v50 = vld [vmem:[#allocation5 + $0x1] sm:$0xff]  ;;  %v3546_v58 = vmul.f32 %v3544_v49, %v6078_v8 }
 0x3dd   : > { %v3601_v51 = vld [vmem:[#allocation5 + $0x4] sm:$0xff] }
 0x3de   : > { %v3603_v3 = vmul.f32 %v3601_v51, %v6076_v7  ;;  %v3658_v20 = vld [vmem:[#allocation5 + $0x5] sm:$0xff] }
 0x3e2   : > { %v3451_v53 = vld [vmem:[#allocation5 + $0x9] sm:$0xff]  ;;  %v3828_v22 = vld [vmem:[#allocation5 + $0x11] sm:$0xff] }
 0x3e3   : > { %v3437_v54 = vld [vmem:[#allocation5 + $0x8] sm:$0xff]  ;;  %v3452_v56 = vpack.c.bf16 %v3451_v53, %v3450_v50  ;;  %v3771_v12 = vld [vmem:[#allocation5 + $0x10] sm:$0xff]  ;;  %v3829_v25 = vpack.c.bf16 %v3828_v22, %v3451_v53 }
 0x3e4   : > { %v3545_v39 = vld [vmem:[#allocation5 + $0xa] sm:$0xff]  ;;  %v3439_v57 = vmul.f32 %v3437_v54, %v6080_v15  ;;  %v3772_v18 = vmul.f32 %v3437_v54, %v6076_v7  ;;  %v3773_v19 = vmul.f32 %v3771_v12, %v6080_v15  ;;  %v3883_v26 = vld [vmem:[#allocation5 + $0x12] sm:$0xff]  ;;  %v5393_v54 = vld [vmem:[%s6567_s4 + $0x3] ss:$0 sm:$0xff] }
 0x3e5   : > { %v3547_v59 = vmul.f32 %v3545_v39, %v6082_v16  ;;  %v3602_v60 = vld [vmem:[#allocation5 + $0xc] sm:$0xff]  ;;  %4981 = vmatmul.msk.bf16.vlgmr.msra.gmra.mxu3 %vm256_vm0, %v3452_v56  ;;  %v3884_v7 = vmul.f32 %v3545_v39, %v6078_v8 }
 0x3e6   : > { %v3604_v5 = vmul.f32 %v3602_v60, %v6080_v15  ;;  %v3440_v61 = vpack.c.bf16 %v3439_v57, %v3438_v55  ;;  %3927 = vmatpush.bf16.msra.mxu3 %v5334_v52  ;;  %v3713_v10 = vld [vmem:[#allocation5 + $0x6] sm:$0xff]  ;;  %v3714_v11 = vld [vmem:[#allocation5 + $0xe] sm:$0xff]  ;;  %v3774_v24 = vpack.c.bf16 %v3773_v19, %v3772_v18  ;;  %v3885_v15 = vmul.f32 %v3883_v26, %v6082_v16 }
 0x3e7   : > { %v3548_v62 = vpack.c.bf16 %v3547_v59, %v3546_v58  ;;  %v3659_v13 = vld [vmem:[#allocation5 + $0xd] sm:$0xff]  ;;  %v3715_v14 = vmul.f32 %v3713_v10, %v6078_v8  ;;  %v3716_v17 = vmul.f32 %v3714_v11, %v6082_v16 }
 0x3e8   : > { %v3605_v63 = vpack.c.bf16 %v3604_v5, %v3603_v3  ;;  %4998 = vmatmul.msk.bf16.vlgmr.msrb.gmra.mxu0 %vm256_vm0, %v3440_v61  ;;  %v3660_v21 = vpack.c.bf16 %v3659_v13, %v3658_v20  ;;  %v3886_v28 = vpack.c.bf16 %v3885_v15, %v3884_v7 }
 0x3e9   : > { %5023 = vmatmul.msk.bf16.vlgmr.msrb.gmra.mxu1 %vm256_vm0, %v3548_v62  ;;  %v3717_v23 = vpack.c.bf16 %v3716_v17, %v3715_v14 }
 0x3ea   : > { %5048 = vmatmul.msk.bf16.vlgmr.msrb.gmra.mxu2 %vm256_vm0, %v3605_v63  ;;  %3928 = vmatpush.bf16.msra.mxu3 %v5333_v1 }
 0x3ee   : > { %3929 = vmatpush.bf16.msra.mxu3 %v5332_v6 }
 0x3f2   : > { %3930 = vmatpush.bf16.msra.mxu3 %v5331_v9 }
 0x3f5   : > { %5073 = vmatmul.msk.bf16.vlgmr.msrb.gmra.mxu3 %vm256_vm0, %v3660_v21 }
 0x3f8   : > { %5098 = vmatmul.msk.bf16.vlgmr.msra.gmra.mxu0 %vm256_vm0, %v3717_v23 }
 0x3f9   : > { %5123 = vmatmul.msk.bf16.vlgmr.msra.gmra.mxu1 %vm256_vm0, %v3774_v24 }
 0x3fa   : > { %5148 = vmatmul.msk.bf16.vlgmr.msra.gmra.mxu2 %vm256_vm0, %v3829_v25 }
 0x405   : > { %5173 = vmatmul.msk.bf16.vlgmr.msra.gmra.mxu3 %vm256_vm0, %v3886_v28 }
 0x465   : > { %v3539_v29 = vpop.f32.mrf.mxu0 }
 0x466   : > { %v3594_v31 = vpop.f32.mrf.mxu1 }
 0x468   : > { %v3498_v30 = vpop.f32.mrf.mxu3 }
 0x469   : > { %v3540_v34 = vadd.f32 %v3539_v29, %v3498_v30 }
 0x46b   : > { %v3599_v36 = vadd.f32 %v3594_v31, %v3540_v34 }
 0x46d   : > { %v3651_v32 = vpop.f32.mrf.mxu2  ;;  %v3541_v35 = vpop.f32.mrf.mxu0 }
 0x46e   : > { %v3596_v37 = vpop.f32.mrf.mxu1  ;;  %v3656_v41 = vadd.f32 %v3651_v32, %v3599_v36 }
 0x470   : > { %v3500_v33 = vpop.f32.mrf.mxu3 }
 0x471   : > { %v3542_v42 = vadd.f32 %v3541_v35, %v3500_v33 }
 0x473   : > { %v3600_v27 = vadd.f32 %v3596_v37, %v3542_v42 }
 0x475   : > { %v3653_v44 = vpop.f32.mrf.mxu2  ;;  %v3763_v8 = vpop.f32.mrf.mxu0 }
 0x476   : > { %v3820_v46 = vpop.f32.mrf.mxu1  ;;  %v3657_v40 = vadd.f32 %v3653_v44, %v3600_v27 }
 0x478   : > { %v3706_v2 = vpop.f32.mrf.mxu3 }
 0x479   : > { %v3711_v45 = vadd.f32 %v3706_v2, %v3656_v41 }
 0x47b   : > { %v3768_v16 = vadd.f32 %v3763_v8, %v3711_v45 }
 0x47d   : > { %v3825_v0 = vadd.f32 %v3820_v46, %v3768_v16  ;;  %v3875_v50 = vpop.f32.mrf.mxu2  ;;  %v3765_v51 = vpop.f32.mrf.mxu0 }
 0x47e   : > { %v3822_v56 = vpop.f32.mrf.mxu1 }
 0x47f   : > { %v3880_v52 = vadd.f32 %v3875_v50, %v3825_v0 }
 0x480   : > { %v3708_v47 = vpop.f32.mrf.mxu3 }
 0x481   : > { %v3712_v49 = vadd.f32 %v3708_v47, %v3657_v40 }
 0x483   : > { %v3769_v53 = vadd.f32 %v3765_v51, %v3712_v49 }
 0x485   : > { %v3826_v57 = vadd.f32 %v3822_v56, %v3769_v53  ;;  %v3877_v60 = vpop.f32.mrf.mxu2 }
 0x487   : > { %v3881_v3 = vadd.f32 %v3877_v60, %v3826_v57 }
 0x488   : > { %v3932_v55 = vpop.f32.mrf.mxu3 }
 0x489   : > { %v3937_v39 = vadd.f32 %v3932_v55, %v3880_v52 }
 0x48b   : > { %v3944_v58 = vadd.f32 %v5393_v54, %v3937_v39 }
 0x48d   : > { %v3946_v59 = vadd.f32 %v3944_v58, %v2918_v43 }
 0x48f   : > { %v3948_v5 = vmax.f32 %v3946_v59, 0.0 }
 0x490   : > { %v3934_v61 = vpop.f32.mrf.mxu3 }
 0x491   : > { %3950 = vst.msk [vmem:[%s5608_s10] sm:$0xff] %vm256_vm0, %v3948_v5  ;;  %v3938_v62 = vadd.f32 %v3934_v61, %v3881_v3 }
 0x493   : > { %v3945_v63 = vadd.f32 %v5393_v54, %v3938_v62 }
 0x495   : > { %v3947_v38 = vadd.f32 %v3945_v63, %v2919_v48 }
 0x497   : > { %v3949_v43 = vmax.f32 %v3947_v38, 0.0 }
 0x499   : > { %3951 = vst.msk [vmem:[%s5608_s10 + $0x8] sm:$0xff] %vm256_vm0, %v3949_v43 }
 0x49a   : > { %5421 = shalt.err (!%p5418_p4)
}
 0x49b   : > { %s5468_s9 = smov 128   ;;  %s5469_s10 = smov 8  }
 0x49c   : > { %5337 = dma.vmem_to_hbm [thread:$0]  (%p5543_p5), %s3966_s16, 256, %s3968_s17, %s3953_s25, %s5468_s9, %s5468_s9, %s5469_s10  }
 0x49d PF: > { %p5343_p7 = scmp.ge.s32.totalorder %s5460_s24, 2  ;;  %s3982_s28 = sand.u32 1, %s5448_s21  }
 0x49e   : > { %s3983_s15 = scalar_lea.sflag [#allocation7], %s3982_s28 }
 0x49f   : > { %p5340_p8 = pnand %p5343_p7, %p5547_p6 }
 0x4a1   : > { %p5341_p9 = pneg %p5340_p8 }
 0x4a3   : > { %5443 = dma.done.wait (%p5341_p9), %s3983_s15, 256  }
 0x4a4   : > { %5445 = vsyncadd (%p5341_p9), %s3983_s15, 4294967040  ;;  %p16_p10 = scmp.ge.s32.totalorder %s5530_s27, 4   ;;  %s6572_s21 = smov %s5452_s22 }
 0x4a5   : > { %s6573_s22 = smov %s5456_s23  ;;  %s6574_s23 = smov %s5541_s30 }
 0x4a6   : > { %s6575_s24 = smov %s5530_s27  ;;  %18 = sbr.rel (!%p16_p10) target bundleno = 3 (0x3), region = 209 }
 0x4ab   :  { %3989 = vsyncpa [#allocation7], 1 }
 0x4ac   :  { %3991 = vsyncpa [#allocation7 + $0x1], 1 }

</bundles_post_ra>
